<compile_context>
chip_gen: v7x
topology: tpu7x:2x2x1
jax: 0.10.0
libtpu: 0.0.40
codegen_flags: <defaults>
</compile_context>

<pallas_src>
import functools
import math

import jax
import jax.numpy as jnp
from jax.experimental import pallas as pl
from jax.experimental.pallas import tpu as pltpu


def lstm_stack_kernel(x_ref, wih_ref, whh_ref, bias_ref, y_ref, *,
                      seq_len, batch_pad, hidden, num_layers):
    """Single invocation: runs all num_layers LSTM layers over the sequence.

    x_ref:    (T*Bp, H)    time-major flattened input (row = t*Bp + b)
    wih_ref:  (L, H, 4H)   input->gates weights (pre-transposed)
    whh_ref:  (L, H, 4H)   hidden->gates weights (pre-transposed)
    bias_ref: (L, 1, 4H)   b_ih + b_hh
    y_ref:    (T*Bp, H)    output sequence of the last layer
    """
    act = x_ref[...]                                       # (T*Bp, H) value

    for layer in range(num_layers):                        # static, small
        w_ih = wih_ref[layer]                              # (H, 4H)
        w_hh = whh_ref[layer]                              # (H, 4H)
        bias = bias_ref[layer]                             # (1, 4H)

        # Input projection for all timesteps at once: one lane-dense MXU
        # matmul (T*Bp, H) @ (H, 4H) -> (T*Bp, 4H), 4H == 128 lanes.
        gates_x = jnp.dot(act, w_ih,
                          preferred_element_type=jnp.float32) + bias

        h = jnp.zeros((batch_pad, hidden), jnp.float32)
        c = jnp.zeros((batch_pad, hidden), jnp.float32)
        outs = []
        for t in range(seq_len):                           # small & static
            r0 = t * batch_pad
            # (Bp, 4H) sublane-aligned slice + sequential recurrence matmul.
            g = gates_x[r0:r0 + batch_pad, :] + jnp.dot(
                h, w_hh, preferred_element_type=jnp.float32)
            # Full-width activations (2 EUP ops), gates sliced afterwards.
            sg = 0.5 * jnp.tanh(0.5 * g) + 0.5             # == sigmoid(g)
            tg = jnp.tanh(g)
            i_g = sg[:, 0 * hidden:1 * hidden]
            f_g = sg[:, 1 * hidden:2 * hidden]
            g_g = tg[:, 2 * hidden:3 * hidden]
            o_g = sg[:, 3 * hidden:4 * hidden]
            c = f_g * c + i_g * g_g
            h = o_g * jnp.tanh(c)
            outs.append(h)

        # This layer's output sequence becomes the next layer's input; it stays
        # entirely in registers/values (no per-step VMEM stores).
        act = jnp.concatenate(outs, axis=0)                # (T*Bp, H)

    y_ref[...] = act


def recurrent_forward(x, params):
    """x: (B, T, H) batch_first (PyTorch convention). Returns (B, T, H)."""
    wih, whh, bias = params                  # (L,H,4H), (L,H,4H), (L,1,4H)
    num_layers = wih.shape[0]
    b, t, h = x.shape
    bp = ((b + 7) // 8) * 8                  # pad batch to a sublane multiple

    x_p = x.astype(jnp.float32)
    if bp != b:
        x_p = jnp.pad(x_p, ((0, bp - b), (0, 0), (0, 0)))
    # Time-major, flattened rows (row index = t*Bp + b): each timestep's batch
    # is one whole sublane group inside the kernel.
    x_tm = jnp.transpose(x_p, (1, 0, 2)).reshape(t * bp, h)

    kernel = functools.partial(lstm_stack_kernel, seq_len=t, batch_pad=bp,
                               hidden=h, num_layers=num_layers)
    vmem = pltpu.MemorySpace.VMEM
    y_tm = pl.pallas_call(
        kernel,
        out_shape=jax.ShapeDtypeStruct((t * bp, h), jnp.float32),
        in_specs=[
            pl.BlockSpec(memory_space=vmem),   # x
            pl.BlockSpec(memory_space=vmem),   # W_ih (all layers)
            pl.BlockSpec(memory_space=vmem),   # W_hh (all layers)
            pl.BlockSpec(memory_space=vmem),   # bias (all layers)
        ],
        out_specs=pl.BlockSpec(memory_space=vmem),
    )(x_tm, wih, whh, bias)

    y = jnp.transpose(y_tm.reshape(t, bp, h), (1, 0, 2))
    return y[:b]


def init_recurrent_params(key, vector_size, num_cells, layers_per_cell):
    """PyTorch-style LSTM init, repacked ONCE for the kernel (hoisted)."""
    hdim = vector_size
    num_layers = num_cells * layers_per_cell   # zero init states => chaining
    bound = 1.0 / math.sqrt(hdim)
    wih_l, whh_l, bias_l = [], [], []
    for _ in range(num_layers):
        key, k1, k2, k3, k4 = jax.random.split(key, 5)
        w_ih = jax.random.uniform(k1, (4 * hdim, hdim), jnp.float32, -bound, bound)
        w_hh = jax.random.uniform(k2, (4 * hdim, hdim), jnp.float32, -bound, bound)
        b_ih = jax.random.uniform(k3, (4 * hdim,), jnp.float32, -bound, bound)
        b_hh = jax.random.uniform(k4, (4 * hdim,), jnp.float32, -bound, bound)
        wih_l.append(w_ih.T)                           # (H, 4H)
        whh_l.append(w_hh.T)                           # (H, 4H)
        bias_l.append((b_ih + b_hh).reshape(1, 4 * hdim))
    return (jnp.stack(wih_l), jnp.stack(whh_l), jnp.stack(bias_l))


def reference_forward(x, params):
    """Pure-JAX reference of the stacked-LSTM forward (PyTorch semantics)."""
    wih, whh, bias = params
    b, t, hdim = x.shape
    y = x.astype(jnp.float32)
    for l in range(wih.shape[0]):
        h = jnp.zeros((b, hdim), jnp.float32)
        c = jnp.zeros((b, hdim), jnp.float32)
        outs = []
        for step in range(t):
            g = y[:, step, :] @ wih[l] + bias[l] + h @ whh[l]
            i_g = jax.nn.sigmoid(g[:, 0 * hdim:1 * hdim])
            f_g = jax.nn.sigmoid(g[:, 1 * hdim:2 * hdim])
            g_g = jnp.tanh(g[:, 2 * hdim:3 * hdim])
            o_g = jax.nn.sigmoid(g[:, 3 * hdim:4 * hdim])
            c = f_g * c + i_g * g_g
            h = o_g * jnp.tanh(c)
            outs.append(h)
        y = jnp.stack(outs, axis=1)
    return y


if __name__ == "__main__":
    # RecurrentNetwork(num_cells=2, vector_size=32, layers_per_cell=2, cell='lstm')
    batch, seq, vector_size = 2, 8, 32
    num_cells, layers_per_cell = 2, 2

    key = jax.random.PRNGKey(0)
    key, kx = jax.random.split(key)
    x = jax.random.normal(kx, (batch, seq, vector_size), jnp.float32)

    params = init_recurrent_params(jax.random.PRNGKey(0), vector_size,
                                   num_cells, layers_per_cell)

    fwd = jax.jit(recurrent_forward)
    out = jax.block_until_ready(fwd(x, params))

    assert out.shape == (batch, seq, vector_size), out.shape
    assert bool(jnp.all(jnp.isfinite(out)))

    ref = reference_forward(x, params)
    assert bool(jnp.allclose(out, ref, rtol=1e-2, atol=1e-2)), \
        float(jnp.max(jnp.abs(out - ref)))

    # TODO(synk): the GRU variant (cell='gru') of RecurrentNetwork is not
    # implemented; only the default LSTM path is covered.
    print("KERNEL_OK")
</pallas_src>

<mosaic_0001>
module attributes {stable_mosaic.version = 11 : i64} {
  func.func @lstm_stack_kernel(%arg0: memref<64x32xf32, #tpu.memory_space<vmem>>, %arg1: memref<4x32x128xf32, #tpu.memory_space<vmem>>, %arg2: memref<4x32x128xf32, #tpu.memory_space<vmem>>, %arg3: memref<4x1x128xf32, #tpu.memory_space<vmem>>, %arg4: memref<64x32xf32, #tpu.memory_space<vmem>>) attributes {dimension_semantics = [], scalar_prefetch = 0 : i64, scratch_operands = 0 : i64, tpu.core_type = #tpu.core_type<tc>} {
    %c0 = arith.constant 0 : index
    %c0_0 = arith.constant 0 : index
    %0 = vector.load %arg0[%c0, %c0_0] : memref<64x32xf32, #tpu.memory_space<vmem>>, vector<64x32xf32>
    %c0_1 = arith.constant 0 : index
    %c0_2 = arith.constant 0 : index
    %c0_3 = arith.constant 0 : index
    %1 = vector.load %arg1[%c0_1, %c0_2, %c0_3] : memref<4x32x128xf32, #tpu.memory_space<vmem>>, vector<1x32x128xf32>
    %2 = vector.shape_cast %1 : vector<1x32x128xf32> to vector<32x128xf32>
    %c0_4 = arith.constant 0 : index
    %c0_5 = arith.constant 0 : index
    %c0_6 = arith.constant 0 : index
    %3 = vector.load %arg2[%c0_4, %c0_5, %c0_6] : memref<4x32x128xf32, #tpu.memory_space<vmem>>, vector<1x32x128xf32>
    %4 = vector.shape_cast %3 : vector<1x32x128xf32> to vector<32x128xf32>
    %c0_7 = arith.constant 0 : index
    %c0_8 = arith.constant 0 : index
    %c0_9 = arith.constant 0 : index
    %5 = vector.load %arg3[%c0_7, %c0_8, %c0_9] : memref<4x1x128xf32, #tpu.memory_space<vmem>>, vector<1x1x128xf32>
    %6 = vector.shape_cast %5 : vector<1x1x128xf32> to vector<1x128xf32>
    %cst = arith.constant dense<0.000000e+00> : vector<64x128xf32>
    %7 = tpu.matmul %0, %2, %cst {dimension_numbers = #tpu.dot_dimension_numbers<[1], [0], [0], [1], [0, 0, 1, 1], [], []>} : vector<64x32xf32>, vector<32x128xf32>, vector<64x128xf32> -> vector<64x128xf32>
    %8 = vector.broadcast %6 : vector<1x128xf32> to vector<64x128xf32>
    %9 = arith.addf %7, %8 : vector<64x128xf32>
    %cst_10 = arith.constant 0.000000e+00 : f32
    %10 = vector.broadcast %cst_10 : f32 to vector<8x32xf32>
    %cst_11 = arith.constant 0.000000e+00 : f32
    %11 = vector.broadcast %cst_11 : f32 to vector<8x32xf32>
    %12 = vector.extract_strided_slice %9 {offsets = [0, 0], sizes = [8, 128], strides = [1, 1]} : vector<64x128xf32> to vector<8x128xf32>
    %cst_12 = arith.constant dense<0.000000e+00> : vector<8x128xf32>
    %13 = tpu.matmul %10, %4, %cst_12 {dimension_numbers = #tpu.dot_dimension_numbers<[1], [0], [0], [1], [0, 0, 1, 1], [], []>} : vector<8x32xf32>, vector<32x128xf32>, vector<8x128xf32> -> vector<8x128xf32>
    %14 = arith.addf %12, %13 : vector<8x128xf32>
    %cst_13 = arith.constant 5.000000e-01 : f32
    %15 = vector.broadcast %cst_13 : f32 to vector<8x128xf32>
    %16 = arith.mulf %15, %14 : vector<8x128xf32>
    %17 = math.tanh %16 : vector<8x128xf32>
    %cst_14 = arith.constant 5.000000e-01 : f32
    %18 = vector.broadcast %cst_14 : f32 to vector<8x128xf32>
    %19 = arith.mulf %18, %17 : vector<8x128xf32>
    %cst_15 = arith.constant 5.000000e-01 : f32
    %20 = vector.broadcast %cst_15 : f32 to vector<8x128xf32>
    %21 = arith.addf %19, %20 : vector<8x128xf32>
    %22 = math.tanh %14 : vector<8x128xf32>
    %23 = vector.extract_strided_slice %21 {offsets = [0, 0], sizes = [8, 32], strides = [1, 1]} : vector<8x128xf32> to vector<8x32xf32>
    %24 = vector.extract_strided_slice %21 {offsets = [0, 32], sizes = [8, 32], strides = [1, 1]} : vector<8x128xf32> to vector<8x32xf32>
    %25 = vector.extract_strided_slice %22 {offsets = [0, 64], sizes = [8, 32], strides = [1, 1]} : vector<8x128xf32> to vector<8x32xf32>
    %26 = vector.extract_strided_slice %21 {offsets = [0, 96], sizes = [8, 32], strides = [1, 1]} : vector<8x128xf32> to vector<8x32xf32>
    %27 = arith.mulf %24, %11 : vector<8x32xf32>
    %28 = arith.mulf %23, %25 : vector<8x32xf32>
    %29 = arith.addf %27, %28 : vector<8x32xf32>
    %30 = math.tanh %29 : vector<8x32xf32>
    %31 = arith.mulf %26, %30 : vector<8x32xf32>
    %32 = vector.extract_strided_slice %9 {offsets = [8, 0], sizes = [8, 128], strides = [1, 1]} : vector<64x128xf32> to vector<8x128xf32>
    %cst_16 = arith.constant dense<0.000000e+00> : vector<8x128xf32>
    %33 = tpu.matmul %31, %4, %cst_16 {dimension_numbers = #tpu.dot_dimension_numbers<[1], [0], [0], [1], [0, 0, 1, 1], [], []>} : vector<8x32xf32>, vector<32x128xf32>, vector<8x128xf32> -> vector<8x128xf32>
    %34 = arith.addf %32, %33 : vector<8x128xf32>
    %cst_17 = arith.constant 5.000000e-01 : f32
    %35 = vector.broadcast %cst_17 : f32 to vector<8x128xf32>
    %36 = arith.mulf %35, %34 : vector<8x128xf32>
    %37 = math.tanh %36 : vector<8x128xf32>
    %cst_18 = arith.constant 5.000000e-01 : f32
    %38 = vector.broadcast %cst_18 : f32 to vector<8x128xf32>
    %39 = arith.mulf %38, %37 : vector<8x128xf32>
    %cst_19 = arith.constant 5.000000e-01 : f32
    %40 = vector.broadcast %cst_19 : f32 to vector<8x128xf32>
    %41 = arith.addf %39, %40 : vector<8x128xf32>
    %42 = math.tanh %34 : vector<8x128xf32>
    %43 = vector.extract_strided_slice %41 {offsets = [0, 0], sizes = [8, 32], strides = [1, 1]} : vector<8x128xf32> to vector<8x32xf32>
    %44 = vector.extract_strided_slice %41 {offsets = [0, 32], sizes = [8, 32], strides = [1, 1]} : vector<8x128xf32> to vector<8x32xf32>
    %45 = vector.extract_strided_slice %42 {offsets = [0, 64], sizes = [8, 32], strides = [1, 1]} : vector<8x128xf32> to vector<8x32xf32>
    %46 = vector.extract_strided_slice %41 {offsets = [0, 96], sizes = [8, 32], strides = [1, 1]} : vector<8x128xf32> to vector<8x32xf32>
    %47 = arith.mulf %44, %29 : vector<8x32xf32>
    %48 = arith.mulf %43, %45 : vector<8x32xf32>
    %49 = arith.addf %47, %48 : vector<8x32xf32>
    %50 = math.tanh %49 : vector<8x32xf32>
    %51 = arith.mulf %46, %50 : vector<8x32xf32>
    %52 = vector.extract_strided_slice %9 {offsets = [16, 0], sizes = [8, 128], strides = [1, 1]} : vector<64x128xf32> to vector<8x128xf32>
    %cst_20 = arith.constant dense<0.000000e+00> : vector<8x128xf32>
    %53 = tpu.matmul %51, %4, %cst_20 {dimension_numbers = #tpu.dot_dimension_numbers<[1], [0], [0], [1], [0, 0, 1, 1], [], []>} : vector<8x32xf32>, vector<32x128xf32>, vector<8x128xf32> -> vector<8x128xf32>
    %54 = arith.addf %52, %53 : vector<8x128xf32>
    %cst_21 = arith.constant 5.000000e-01 : f32
    %55 = vector.broadcast %cst_21 : f32 to vector<8x128xf32>
    %56 = arith.mulf %55, %54 : vector<8x128xf32>
    %57 = math.tanh %56 : vector<8x128xf32>
    %cst_22 = arith.constant 5.000000e-01 : f32
    %58 = vector.broadcast %cst_22 : f32 to vector<8x128xf32>
    %59 = arith.mulf %58, %57 : vector<8x128xf32>
    %cst_23 = arith.constant 5.000000e-01 : f32
    %60 = vector.broadcast %cst_23 : f32 to vector<8x128xf32>
    %61 = arith.addf %59, %60 : vector<8x128xf32>
    %62 = math.tanh %54 : vector<8x128xf32>
    %63 = vector.extract_strided_slice %61 {offsets = [0, 0], sizes = [8, 32], strides = [1, 1]} : vector<8x128xf32> to vector<8x32xf32>
    %64 = vector.extract_strided_slice %61 {offsets = [0, 32], sizes = [8, 32], strides = [1, 1]} : vector<8x128xf32> to vector<8x32xf32>
    %65 = vector.extract_strided_slice %62 {offsets = [0, 64], sizes = [8, 32], strides = [1, 1]} : vector<8x128xf32> to vector<8x32xf32>
    %66 = vector.extract_strided_slice %61 {offsets = [0, 96], sizes = [8, 32], strides = [1, 1]} : vector<8x128xf32> to vector<8x32xf32>
    %67 = arith.mulf %64, %49 : vector<8x32xf32>
    %68 = arith.mulf %63, %65 : vector<8x32xf32>
    %69 = arith.addf %67, %68 : vector<8x32xf32>
    %70 = math.tanh %69 : vector<8x32xf32>
    %71 = arith.mulf %66, %70 : vector<8x32xf32>
    %72 = vector.extract_strided_slice %9 {offsets = [24, 0], sizes = [8, 128], strides = [1, 1]} : vector<64x128xf32> to vector<8x128xf32>
    %cst_24 = arith.constant dense<0.000000e+00> : vector<8x128xf32>
    %73 = tpu.matmul %71, %4, %cst_24 {dimension_numbers = #tpu.dot_dimension_numbers<[1], [0], [0], [1], [0, 0, 1, 1], [], []>} : vector<8x32xf32>, vector<32x128xf32>, vector<8x128xf32> -> vector<8x128xf32>
    %74 = arith.addf %72, %73 : vector<8x128xf32>
    %cst_25 = arith.constant 5.000000e-01 : f32
    %75 = vector.broadcast %cst_25 : f32 to vector<8x128xf32>
    %76 = arith.mulf %75, %74 : vector<8x128xf32>
    %77 = math.tanh %76 : vector<8x128xf32>
    %cst_26 = arith.constant 5.000000e-01 : f32
    %78 = vector.broadcast %cst_26 : f32 to vector<8x128xf32>
    %79 = arith.mulf %78, %77 : vector<8x128xf32>
    %cst_27 = arith.constant 5.000000e-01 : f32
    %80 = vector.broadcast %cst_27 : f32 to vector<8x128xf32>
    %81 = arith.addf %79, %80 : vector<8x128xf32>
    %82 = math.tanh %74 : vector<8x128xf32>
    %83 = vector.extract_strided_slice %81 {offsets = [0, 0], sizes = [8, 32], strides = [1, 1]} : vector<8x128xf32> to vector<8x32xf32>
    %84 = vector.extract_strided_slice %81 {offsets = [0, 32], sizes = [8, 32], strides = [1, 1]} : vector<8x128xf32> to vector<8x32xf32>
    %85 = vector.extract_strided_slice %82 {offsets = [0, 64], sizes = [8, 32], strides = [1, 1]} : vector<8x128xf32> to vector<8x32xf32>
    %86 = vector.extract_strided_slice %81 {offsets = [0, 96], sizes = [8, 32], strides = [1, 1]} : vector<8x128xf32> to vector<8x32xf32>
    %87 = arith.mulf %84, %69 : vector<8x32xf32>
    %88 = arith.mulf %83, %85 : vector<8x32xf32>
    %89 = arith.addf %87, %88 : vector<8x32xf32>
    %90 = math.tanh %89 : vector<8x32xf32>
    %91 = arith.mulf %86, %90 : vector<8x32xf32>
    %92 = vector.extract_strided_slice %9 {offsets = [32, 0], sizes = [8, 128], strides = [1, 1]} : vector<64x128xf32> to vector<8x128xf32>
    %cst_28 = arith.constant dense<0.000000e+00> : vector<8x128xf32>
    %93 = tpu.matmul %91, %4, %cst_28 {dimension_numbers = #tpu.dot_dimension_numbers<[1], [0], [0], [1], [0, 0, 1, 1], [], []>} : vector<8x32xf32>, vector<32x128xf32>, vector<8x128xf32> -> vector<8x128xf32>
    %94 = arith.addf %92, %93 : vector<8x128xf32>
    %cst_29 = arith.constant 5.000000e-01 : f32
    %95 = vector.broadcast %cst_29 : f32 to vector<8x128xf32>
    %96 = arith.mulf %95, %94 : vector<8x128xf32>
    %97 = math.tanh %96 : vector<8x128xf32>
    %cst_30 = arith.constant 5.000000e-01 : f32
    %98 = vector.broadcast %cst_30 : f32 to vector<8x128xf32>
    %99 = arith.mulf %98, %97 : vector<8x128xf32>
    %cst_31 = arith.constant 5.000000e-01 : f32
    %100 = vector.broadcast %cst_31 : f32 to vector<8x128xf32>
    %101 = arith.addf %99, %100 : vector<8x128xf32>
    %102 = math.tanh %94 : vector<8x128xf32>
    %103 = vector.extract_strided_slice %101 {offsets = [0, 0], sizes = [8, 32], strides = [1, 1]} : vector<8x128xf32> to vector<8x32xf32>
    %104 = vector.extract_strided_slice %101 {offsets = [0, 32], sizes = [8, 32], strides = [1, 1]} : vector<8x128xf32> to vector<8x32xf32>
    %105 = vector.extract_strided_slice %102 {offsets = [0, 64], sizes = [8, 32], strides = [1, 1]} : vector<8x128xf32> to vector<8x32xf32>
    %106 = vector.extract_strided_slice %101 {offsets = [0, 96], sizes = [8, 32], strides = [1, 1]} : vector<8x128xf32> to vector<8x32xf32>
    %107 = arith.mulf %104, %89 : vector<8x32xf32>
    %108 = arith.mulf %103, %105 : vector<8x32xf32>
    %109 = arith.addf %107, %108 : vector<8x32xf32>
    %110 = math.tanh %109 : vector<8x32xf32>
    %111 = arith.mulf %106, %110 : vector<8x32xf32>
    %112 = vector.extract_strided_slice %9 {offsets = [40, 0], sizes = [8, 128], strides = [1, 1]} : vector<64x128xf32> to vector<8x128xf32>
    %cst_32 = arith.constant dense<0.000000e+00> : vector<8x128xf32>
    %113 = tpu.matmul %111, %4, %cst_32 {dimension_numbers = #tpu.dot_dimension_numbers<[1], [0], [0], [1], [0, 0, 1, 1], [], []>} : vector<8x32xf32>, vector<32x128xf32>, vector<8x128xf32> -> vector<8x128xf32>
    %114 = arith.addf %112, %113 : vector<8x128xf32>
    %cst_33 = arith.constant 5.000000e-01 : f32
    %115 = vector.broadcast %cst_33 : f32 to vector<8x128xf32>
    %116 = arith.mulf %115, %114 : vector<8x128xf32>
    %117 = math.tanh %116 : vector<8x128xf32>
    %cst_34 = arith.constant 5.000000e-01 : f32
    %118 = vector.broadcast %cst_34 : f32 to vector<8x128xf32>
    %119 = arith.mulf %118, %117 : vector<8x128xf32>
    %cst_35 = arith.constant 5.000000e-01 : f32
    %120 = vector.broadcast %cst_35 : f32 to vector<8x128xf32>
    %121 = arith.addf %119, %120 : vector<8x128xf32>
    %122 = math.tanh %114 : vector<8x128xf32>
    %123 = vector.extract_strided_slice %121 {offsets = [0, 0], sizes = [8, 32], strides = [1, 1]} : vector<8x128xf32> to vector<8x32xf32>
    %124 = vector.extract_strided_slice %121 {offsets = [0, 32], sizes = [8, 32], strides = [1, 1]} : vector<8x128xf32> to vector<8x32xf32>
    %125 = vector.extract_strided_slice %122 {offsets = [0, 64], sizes = [8, 32], strides = [1, 1]} : vector<8x128xf32> to vector<8x32xf32>
    %126 = vector.extract_strided_slice %121 {offsets = [0, 96], sizes = [8, 32], strides = [1, 1]} : vector<8x128xf32> to vector<8x32xf32>
    %127 = arith.mulf %124, %109 : vector<8x32xf32>
    %128 = arith.mulf %123, %125 : vector<8x32xf32>
    %129 = arith.addf %127, %128 : vector<8x32xf32>
    %130 = math.tanh %129 : vector<8x32xf32>
    %131 = arith.mulf %126, %130 : vector<8x32xf32>
    %132 = vector.extract_strided_slice %9 {offsets = [48, 0], sizes = [8, 128], strides = [1, 1]} : vector<64x128xf32> to vector<8x128xf32>
    %cst_36 = arith.constant dense<0.000000e+00> : vector<8x128xf32>
    %133 = tpu.matmul %131, %4, %cst_36 {dimension_numbers = #tpu.dot_dimension_numbers<[1], [0], [0], [1], [0, 0, 1, 1], [], []>} : vector<8x32xf32>, vector<32x128xf32>, vector<8x128xf32> -> vector<8x128xf32>
    %134 = arith.addf %132, %133 : vector<8x128xf32>
    %cst_37 = arith.constant 5.000000e-01 : f32
    %135 = vector.broadcast %cst_37 : f32 to vector<8x128xf32>
    %136 = arith.mulf %135, %134 : vector<8x128xf32>
    %137 = math.tanh %136 : vector<8x128xf32>
    %cst_38 = arith.constant 5.000000e-01 : f32
    %138 = vector.broadcast %cst_38 : f32 to vector<8x128xf32>
    %139 = arith.mulf %138, %137 : vector<8x128xf32>
    %cst_39 = arith.constant 5.000000e-01 : f32
    %140 = vector.broadcast %cst_39 : f32 to vector<8x128xf32>
    %141 = arith.addf %139, %140 : vector<8x128xf32>
    %142 = math.tanh %134 : vector<8x128xf32>
    %143 = vector.extract_strided_slice %141 {offsets = [0, 0], sizes = [8, 32], strides = [1, 1]} : vector<8x128xf32> to vector<8x32xf32>
    %144 = vector.extract_strided_slice %141 {offsets = [0, 32], sizes = [8, 32], strides = [1, 1]} : vector<8x128xf32> to vector<8x32xf32>
    %145 = vector.extract_strided_slice %142 {offsets = [0, 64], sizes = [8, 32], strides = [1, 1]} : vector<8x128xf32> to vector<8x32xf32>
    %146 = vector.extract_strided_slice %141 {offsets = [0, 96], sizes = [8, 32], strides = [1, 1]} : vector<8x128xf32> to vector<8x32xf32>
    %147 = arith.mulf %144, %129 : vector<8x32xf32>
    %148 = arith.mulf %143, %145 : vector<8x32xf32>
    %149 = arith.addf %147, %148 : vector<8x32xf32>
    %150 = math.tanh %149 : vector<8x32xf32>
    %151 = arith.mulf %146, %150 : vector<8x32xf32>
    %152 = vector.extract_strided_slice %9 {offsets = [56, 0], sizes = [8, 128], strides = [1, 1]} : vector<64x128xf32> to vector<8x128xf32>
    %cst_40 = arith.constant dense<0.000000e+00> : vector<8x128xf32>
    %153 = tpu.matmul %151, %4, %cst_40 {dimension_numbers = #tpu.dot_dimension_numbers<[1], [0], [0], [1], [0, 0, 1, 1], [], []>} : vector<8x32xf32>, vector<32x128xf32>, vector<8x128xf32> -> vector<8x128xf32>
    %154 = arith.addf %152, %153 : vector<8x128xf32>
    %cst_41 = arith.constant 5.000000e-01 : f32
    %155 = vector.broadcast %cst_41 : f32 to vector<8x128xf32>
    %156 = arith.mulf %155, %154 : vector<8x128xf32>
    %157 = math.tanh %156 : vector<8x128xf32>
    %cst_42 = arith.constant 5.000000e-01 : f32
    %158 = vector.broadcast %cst_42 : f32 to vector<8x128xf32>
    %159 = arith.mulf %158, %157 : vector<8x128xf32>
    %cst_43 = arith.constant 5.000000e-01 : f32
    %160 = vector.broadcast %cst_43 : f32 to vector<8x128xf32>
    %161 = arith.addf %159, %160 : vector<8x128xf32>
    %162 = math.tanh %154 : vector<8x128xf32>
    %163 = vector.extract_strided_slice %161 {offsets = [0, 0], sizes = [8, 32], strides = [1, 1]} : vector<8x128xf32> to vector<8x32xf32>
    %164 = vector.extract_strided_slice %161 {offsets = [0, 32], sizes = [8, 32], strides = [1, 1]} : vector<8x128xf32> to vector<8x32xf32>
    %165 = vector.extract_strided_slice %162 {offsets = [0, 64], sizes = [8, 32], strides = [1, 1]} : vector<8x128xf32> to vector<8x32xf32>
    %166 = vector.extract_strided_slice %161 {offsets = [0, 96], sizes = [8, 32], strides = [1, 1]} : vector<8x128xf32> to vector<8x32xf32>
    %167 = arith.mulf %164, %149 : vector<8x32xf32>
    %168 = arith.mulf %163, %165 : vector<8x32xf32>
    %169 = arith.addf %167, %168 : vector<8x32xf32>
    %170 = math.tanh %169 : vector<8x32xf32>
    %171 = arith.mulf %166, %170 : vector<8x32xf32>
    %172 = tpu.concatenate %31, %51, %71, %91, %111, %131, %151, %171 in 0 : vector<8x32xf32>, vector<8x32xf32>, vector<8x32xf32>, vector<8x32xf32>, vector<8x32xf32>, vector<8x32xf32>, vector<8x32xf32>, vector<8x32xf32> -> vector<64x32xf32>
    %c1 = arith.constant 1 : index
    %c0_44 = arith.constant 0 : index
    %c0_45 = arith.constant 0 : index
    %173 = vector.load %arg1[%c1, %c0_44, %c0_45] : memref<4x32x128xf32, #tpu.memory_space<vmem>>, vector<1x32x128xf32>
    %174 = vector.shape_cast %173 : vector<1x32x128xf32> to vector<32x128xf32>
    %c1_46 = arith.constant 1 : index
    %c0_47 = arith.constant 0 : index
    %c0_48 = arith.constant 0 : index
    %175 = vector.load %arg2[%c1_46, %c0_47, %c0_48] : memref<4x32x128xf32, #tpu.memory_space<vmem>>, vector<1x32x128xf32>
    %176 = vector.shape_cast %175 : vector<1x32x128xf32> to vector<32x128xf32>
    %c1_49 = arith.constant 1 : index
    %c0_50 = arith.constant 0 : index
    %c0_51 = arith.constant 0 : index
    %177 = vector.load %arg3[%c1_49, %c0_50, %c0_51] : memref<4x1x128xf32, #tpu.memory_space<vmem>>, vector<1x1x128xf32>
    %178 = vector.shape_cast %177 : vector<1x1x128xf32> to vector<1x128xf32>
    %cst_52 = arith.constant dense<0.000000e+00> : vector<64x128xf32>
    %179 = tpu.matmul %172, %174, %cst_52 {dimension_numbers = #tpu.dot_dimension_numbers<[1], [0], [0], [1], [0, 0, 1, 1], [], []>} : vector<64x32xf32>, vector<32x128xf32>, vector<64x128xf32> -> vector<64x128xf32>
    %180 = vector.broadcast %178 : vector<1x128xf32> to vector<64x128xf32>
    %181 = arith.addf %179, %180 : vector<64x128xf32>
    %cst_53 = arith.constant 0.000000e+00 : f32
    %182 = vector.broadcast %cst_53 : f32 to vector<8x32xf32>
    %cst_54 = arith.constant 0.000000e+00 : f32
    %183 = vector.broadcast %cst_54 : f32 to vector<8x32xf32>
    %184 = vector.extract_strided_slice %181 {offsets = [0, 0], sizes = [8, 128], strides = [1, 1]} : vector<64x128xf32> to vector<8x128xf32>
    %cst_55 = arith.constant dense<0.000000e+00> : vector<8x128xf32>
    %185 = tpu.matmul %182, %176, %cst_55 {dimension_numbers = #tpu.dot_dimension_numbers<[1], [0], [0], [1], [0, 0, 1, 1], [], []>} : vector<8x32xf32>, vector<32x128xf32>, vector<8x128xf32> -> vector<8x128xf32>
    %186 = arith.addf %184, %185 : vector<8x128xf32>
    %cst_56 = arith.constant 5.000000e-01 : f32
    %187 = vector.broadcast %cst_56 : f32 to vector<8x128xf32>
    %188 = arith.mulf %187, %186 : vector<8x128xf32>
    %189 = math.tanh %188 : vector<8x128xf32>
    %cst_57 = arith.constant 5.000000e-01 : f32
    %190 = vector.broadcast %cst_57 : f32 to vector<8x128xf32>
    %191 = arith.mulf %190, %189 : vector<8x128xf32>
    %cst_58 = arith.constant 5.000000e-01 : f32
    %192 = vector.broadcast %cst_58 : f32 to vector<8x128xf32>
    %193 = arith.addf %191, %192 : vector<8x128xf32>
    %194 = math.tanh %186 : vector<8x128xf32>
    %195 = vector.extract_strided_slice %193 {offsets = [0, 0], sizes = [8, 32], strides = [1, 1]} : vector<8x128xf32> to vector<8x32xf32>
    %196 = vector.extract_strided_slice %193 {offsets = [0, 32], sizes = [8, 32], strides = [1, 1]} : vector<8x128xf32> to vector<8x32xf32>
    %197 = vector.extract_strided_slice %194 {offsets = [0, 64], sizes = [8, 32], strides = [1, 1]} : vector<8x128xf32> to vector<8x32xf32>
    %198 = vector.extract_strided_slice %193 {offsets = [0, 96], sizes = [8, 32], strides = [1, 1]} : vector<8x128xf32> to vector<8x32xf32>
    %199 = arith.mulf %196, %183 : vector<8x32xf32>
    %200 = arith.mulf %195, %197 : vector<8x32xf32>
    %201 = arith.addf %199, %200 : vector<8x32xf32>
    %202 = math.tanh %201 : vector<8x32xf32>
    %203 = arith.mulf %198, %202 : vector<8x32xf32>
    %204 = vector.extract_strided_slice %181 {offsets = [8, 0], sizes = [8, 128], strides = [1, 1]} : vector<64x128xf32> to vector<8x128xf32>
    %cst_59 = arith.constant dense<0.000000e+00> : vector<8x128xf32>
    %205 = tpu.matmul %203, %176, %cst_59 {dimension_numbers = #tpu.dot_dimension_numbers<[1], [0], [0], [1], [0, 0, 1, 1], [], []>} : vector<8x32xf32>, vector<32x128xf32>, vector<8x128xf32> -> vector<8x128xf32>
    %206 = arith.addf %204, %205 : vector<8x128xf32>
    %cst_60 = arith.constant 5.000000e-01 : f32
    %207 = vector.broadcast %cst_60 : f32 to vector<8x128xf32>
    %208 = arith.mulf %207, %206 : vector<8x128xf32>
    %209 = math.tanh %208 : vector<8x128xf32>
    %cst_61 = arith.constant 5.000000e-01 : f32
    %210 = vector.broadcast %cst_61 : f32 to vector<8x128xf32>
    %211 = arith.mulf %210, %209 : vector<8x128xf32>
    %cst_62 = arith.constant 5.000000e-01 : f32
    %212 = vector.broadcast %cst_62 : f32 to vector<8x128xf32>
    %213 = arith.addf %211, %212 : vector<8x128xf32>
    %214 = math.tanh %206 : vector<8x128xf32>
    %215 = vector.extract_strided_slice %213 {offsets = [0, 0], sizes = [8, 32], strides = [1, 1]} : vector<8x128xf32> to vector<8x32xf32>
    %216 = vector.extract_strided_slice %213 {offsets = [0, 32], sizes = [8, 32], strides = [1, 1]} : vector<8x128xf32> to vector<8x32xf32>
    %217 = vector.extract_strided_slice %214 {offsets = [0, 64], sizes = [8, 32], strides = [1, 1]} : vector<8x128xf32> to vector<8x32xf32>
    %218 = vector.extract_strided_slice %213 {offsets = [0, 96], sizes = [8, 32], strides = [1, 1]} : vector<8x128xf32> to vector<8x32xf32>
    %219 = arith.mulf %216, %201 : vector<8x32xf32>
    %220 = arith.mulf %215, %217 : vector<8x32xf32>
    %221 = arith.addf %219, %220 : vector<8x32xf32>
    %222 = math.tanh %221 : vector<8x32xf32>
    %223 = arith.mulf %218, %222 : vector<8x32xf32>
    %224 = vector.extract_strided_slice %181 {offsets = [16, 0], sizes = [8, 128], strides = [1, 1]} : vector<64x128xf32> to vector<8x128xf32>
    %cst_63 = arith.constant dense<0.000000e+00> : vector<8x128xf32>
    %225 = tpu.matmul %223, %176, %cst_63 {dimension_numbers = #tpu.dot_dimension_numbers<[1], [0], [0], [1], [0, 0, 1, 1], [], []>} : vector<8x32xf32>, vector<32x128xf32>, vector<8x128xf32> -> vector<8x128xf32>
    %226 = arith.addf %224, %225 : vector<8x128xf32>
    %cst_64 = arith.constant 5.000000e-01 : f32
    %227 = vector.broadcast %cst_64 : f32 to vector<8x128xf32>
    %228 = arith.mulf %227, %226 : vector<8x128xf32>
    %229 = math.tanh %228 : vector<8x128xf32>
    %cst_65 = arith.constant 5.000000e-01 : f32
    %230 = vector.broadcast %cst_65 : f32 to vector<8x128xf32>
    %231 = arith.mulf %230, %229 : vector<8x128xf32>
    %cst_66 = arith.constant 5.000000e-01 : f32
    %232 = vector.broadcast %cst_66 : f32 to vector<8x128xf32>
    %233 = arith.addf %231, %232 : vector<8x128xf32>
    %234 = math.tanh %226 : vector<8x128xf32>
    %235 = vector.extract_strided_slice %233 {offsets = [0, 0], sizes = [8, 32], strides = [1, 1]} : vector<8x128xf32> to vector<8x32xf32>
    %236 = vector.extract_strided_slice %233 {offsets = [0, 32], sizes = [8, 32], strides = [1, 1]} : vector<8x128xf32> to vector<8x32xf32>
    %237 = vector.extract_strided_slice %234 {offsets = [0, 64], sizes = [8, 32], strides = [1, 1]} : vector<8x128xf32> to vector<8x32xf32>
    %238 = vector.extract_strided_slice %233 {offsets = [0, 96], sizes = [8, 32], strides = [1, 1]} : vector<8x128xf32> to vector<8x32xf32>
    %239 = arith.mulf %236, %221 : vector<8x32xf32>
    %240 = arith.mulf %235, %237 : vector<8x32xf32>
    %241 = arith.addf %239, %240 : vector<8x32xf32>
    %242 = math.tanh %241 : vector<8x32xf32>
    %243 = arith.mulf %238, %242 : vector<8x32xf32>
    %244 = vector.extract_strided_slice %181 {offsets = [24, 0], sizes = [8, 128], strides = [1, 1]} : vector<64x128xf32> to vector<8x128xf32>
    %cst_67 = arith.constant dense<0.000000e+00> : vector<8x128xf32>
    %245 = tpu.matmul %243, %176, %cst_67 {dimension_numbers = #tpu.dot_dimension_numbers<[1], [0], [0], [1], [0, 0, 1, 1], [], []>} : vector<8x32xf32>, vector<32x128xf32>, vector<8x128xf32> -> vector<8x128xf32>
    %246 = arith.addf %244, %245 : vector<8x128xf32>
    %cst_68 = arith.constant 5.000000e-01 : f32
    %247 = vector.broadcast %cst_68 : f32 to vector<8x128xf32>
    %248 = arith.mulf %247, %246 : vector<8x128xf32>
    %249 = math.tanh %248 : vector<8x128xf32>
    %cst_69 = arith.constant 5.000000e-01 : f32
    %250 = vector.broadcast %cst_69 : f32 to vector<8x128xf32>
    %251 = arith.mulf %250, %249 : vector<8x128xf32>
    %cst_70 = arith.constant 5.000000e-01 : f32
    %252 = vector.broadcast %cst_70 : f32 to vector<8x128xf32>
    %253 = arith.addf %251, %252 : vector<8x128xf32>
    %254 = math.tanh %246 : vector<8x128xf32>
    %255 = vector.extract_strided_slice %253 {offsets = [0, 0], sizes = [8, 32], strides = [1, 1]} : vector<8x128xf32> to vector<8x32xf32>
    %256 = vector.extract_strided_slice %253 {offsets = [0, 32], sizes = [8, 32], strides = [1, 1]} : vector<8x128xf32> to vector<8x32xf32>
    %257 = vector.extract_strided_slice %254 {offsets = [0, 64], sizes = [8, 32], strides = [1, 1]} : vector<8x128xf32> to vector<8x32xf32>
    %258 = vector.extract_strided_slice %253 {offsets = [0, 96], sizes = [8, 32], strides = [1, 1]} : vector<8x128xf32> to vector<8x32xf32>
    %259 = arith.mulf %256, %241 : vector<8x32xf32>
    %260 = arith.mulf %255, %257 : vector<8x32xf32>
    %261 = arith.addf %259, %260 : vector<8x32xf32>
    %262 = math.tanh %261 : vector<8x32xf32>
    %263 = arith.mulf %258, %262 : vector<8x32xf32>
    %264 = vector.extract_strided_slice %181 {offsets = [32, 0], sizes = [8, 128], strides = [1, 1]} : vector<64x128xf32> to vector<8x128xf32>
    %cst_71 = arith.constant dense<0.000000e+00> : vector<8x128xf32>
    %265 = tpu.matmul %263, %176, %cst_71 {dimension_numbers = #tpu.dot_dimension_numbers<[1], [0], [0], [1], [0, 0, 1, 1], [], []>} : vector<8x32xf32>, vector<32x128xf32>, vector<8x128xf32> -> vector<8x128xf32>
    %266 = arith.addf %264, %265 : vector<8x128xf32>
    %cst_72 = arith.constant 5.000000e-01 : f32
    %267 = vector.broadcast %cst_72 : f32 to vector<8x128xf32>
    %268 = arith.mulf %267, %266 : vector<8x128xf32>
    %269 = math.tanh %268 : vector<8x128xf32>
    %cst_73 = arith.constant 5.000000e-01 : f32
    %270 = vector.broadcast %cst_73 : f32 to vector<8x128xf32>
    %271 = arith.mulf %270, %269 : vector<8x128xf32>
    %cst_74 = arith.constant 5.000000e-01 : f32
    %272 = vector.broadcast %cst_74 : f32 to vector<8x128xf32>
    %273 = arith.addf %271, %272 : vector<8x128xf32>
    %274 = math.tanh %266 : vector<8x128xf32>
    %275 = vector.extract_strided_slice %273 {offsets = [0, 0], sizes = [8, 32], strides = [1, 1]} : vector<8x128xf32> to vector<8x32xf32>
    %276 = vector.extract_strided_slice %273 {offsets = [0, 32], sizes = [8, 32], strides = [1, 1]} : vector<8x128xf32> to vector<8x32xf32>
    %277 = vector.extract_strided_slice %274 {offsets = [0, 64], sizes = [8, 32], strides = [1, 1]} : vector<8x128xf32> to vector<8x32xf32>
    %278 = vector.extract_strided_slice %273 {offsets = [0, 96], sizes = [8, 32], strides = [1, 1]} : vector<8x128xf32> to vector<8x32xf32>
    %279 = arith.mulf %276, %261 : vector<8x32xf32>
    %280 = arith.mulf %275, %277 : vector<8x32xf32>
    %281 = arith.addf %279, %280 : vector<8x32xf32>
    %282 = math.tanh %281 : vector<8x32xf32>
    %283 = arith.mulf %278, %282 : vector<8x32xf32>
    %284 = vector.extract_strided_slice %181 {offsets = [40, 0], sizes = [8, 128], strides = [1, 1]} : vector<64x128xf32> to vector<8x128xf32>
    %cst_75 = arith.constant dense<0.000000e+00> : vector<8x128xf32>
    %285 = tpu.matmul %283, %176, %cst_75 {dimension_numbers = #tpu.dot_dimension_numbers<[1], [0], [0], [1], [0, 0, 1, 1], [], []>} : vector<8x32xf32>, vector<32x128xf32>, vector<8x128xf32> -> vector<8x128xf32>
    %286 = arith.addf %284, %285 : vector<8x128xf32>
    %cst_76 = arith.constant 5.000000e-01 : f32
    %287 = vector.broadcast %cst_76 : f32 to vector<8x128xf32>
    %288 = arith.mulf %287, %286 : vector<8x128xf32>
    %289 = math.tanh %288 : vector<8x128xf32>
    %cst_77 = arith.constant 5.000000e-01 : f32
    %290 = vector.broadcast %cst_77 : f32 to vector<8x128xf32>
    %291 = arith.mulf %290, %289 : vector<8x128xf32>
    %cst_78 = arith.constant 5.000000e-01 : f32
    %292 = vector.broadcast %cst_78 : f32 to vector<8x128xf32>
    %293 = arith.addf %291, %292 : vector<8x128xf32>
    %294 = math.tanh %286 : vector<8x128xf32>
    %295 = vector.extract_strided_slice %293 {offsets = [0, 0], sizes = [8, 32], strides = [1, 1]} : vector<8x128xf32> to vector<8x32xf32>
    %296 = vector.extract_strided_slice %293 {offsets = [0, 32], sizes = [8, 32], strides = [1, 1]} : vector<8x128xf32> to vector<8x32xf32>
    %297 = vector.extract_strided_slice %294 {offsets = [0, 64], sizes = [8, 32], strides = [1, 1]} : vector<8x128xf32> to vector<8x32xf32>
    %298 = vector.extract_strided_slice %293 {offsets = [0, 96], sizes = [8, 32], strides = [1, 1]} : vector<8x128xf32> to vector<8x32xf32>
    %299 = arith.mulf %296, %281 : vector<8x32xf32>
    %300 = arith.mulf %295, %297 : vector<8x32xf32>
    %301 = arith.addf %299, %300 : vector<8x32xf32>
    %302 = math.tanh %301 : vector<8x32xf32>
    %303 = arith.mulf %298, %302 : vector<8x32xf32>
    %304 = vector.extract_strided_slice %181 {offsets = [48, 0], sizes = [8, 128], strides = [1, 1]} : vector<64x128xf32> to vector<8x128xf32>
    %cst_79 = arith.constant dense<0.000000e+00> : vector<8x128xf32>
    %305 = tpu.matmul %303, %176, %cst_79 {dimension_numbers = #tpu.dot_dimension_numbers<[1], [0], [0], [1], [0, 0, 1, 1], [], []>} : vector<8x32xf32>, vector<32x128xf32>, vector<8x128xf32> -> vector<8x128xf32>
    %306 = arith.addf %304, %305 : vector<8x128xf32>
    %cst_80 = arith.constant 5.000000e-01 : f32
    %307 = vector.broadcast %cst_80 : f32 to vector<8x128xf32>
    %308 = arith.mulf %307, %306 : vector<8x128xf32>
    %309 = math.tanh %308 : vector<8x128xf32>
    %cst_81 = arith.constant 5.000000e-01 : f32
    %310 = vector.broadcast %cst_81 : f32 to vector<8x128xf32>
    %311 = arith.mulf %310, %309 : vector<8x128xf32>
    %cst_82 = arith.constant 5.000000e-01 : f32
    %312 = vector.broadcast %cst_82 : f32 to vector<8x128xf32>
    %313 = arith.addf %311, %312 : vector<8x128xf32>
    %314 = math.tanh %306 : vector<8x128xf32>
    %315 = vector.extract_strided_slice %313 {offsets = [0, 0], sizes = [8, 32], strides = [1, 1]} : vector<8x128xf32> to vector<8x32xf32>
    %316 = vector.extract_strided_slice %313 {offsets = [0, 32], sizes = [8, 32], strides = [1, 1]} : vector<8x128xf32> to vector<8x32xf32>
    %317 = vector.extract_strided_slice %314 {offsets = [0, 64], sizes = [8, 32], strides = [1, 1]} : vector<8x128xf32> to vector<8x32xf32>
    %318 = vector.extract_strided_slice %313 {offsets = [0, 96], sizes = [8, 32], strides = [1, 1]} : vector<8x128xf32> to vector<8x32xf32>
    %319 = arith.mulf %316, %301 : vector<8x32xf32>
    %320 = arith.mulf %315, %317 : vector<8x32xf32>
    %321 = arith.addf %319, %320 : vector<8x32xf32>
    %322 = math.tanh %321 : vector<8x32xf32>
    %323 = arith.mulf %318, %322 : vector<8x32xf32>
    %324 = vector.extract_strided_slice %181 {offsets = [56, 0], sizes = [8, 128], strides = [1, 1]} : vector<64x128xf32> to vector<8x128xf32>
    %cst_83 = arith.constant dense<0.000000e+00> : vector<8x128xf32>
    %325 = tpu.matmul %323, %176, %cst_83 {dimension_numbers = #tpu.dot_dimension_numbers<[1], [0], [0], [1], [0, 0, 1, 1], [], []>} : vector<8x32xf32>, vector<32x128xf32>, vector<8x128xf32> -> vector<8x128xf32>
    %326 = arith.addf %324, %325 : vector<8x128xf32>
    %cst_84 = arith.constant 5.000000e-01 : f32
    %327 = vector.broadcast %cst_84 : f32 to vector<8x128xf32>
    %328 = arith.mulf %327, %326 : vector<8x128xf32>
    %329 = math.tanh %328 : vector<8x128xf32>
    %cst_85 = arith.constant 5.000000e-01 : f32
    %330 = vector.broadcast %cst_85 : f32 to vector<8x128xf32>
    %331 = arith.mulf %330, %329 : vector<8x128xf32>
    %cst_86 = arith.constant 5.000000e-01 : f32
    %332 = vector.broadcast %cst_86 : f32 to vector<8x128xf32>
    %333 = arith.addf %331, %332 : vector<8x128xf32>
    %334 = math.tanh %326 : vector<8x128xf32>
    %335 = vector.extract_strided_slice %333 {offsets = [0, 0], sizes = [8, 32], strides = [1, 1]} : vector<8x128xf32> to vector<8x32xf32>
    %336 = vector.extract_strided_slice %333 {offsets = [0, 32], sizes = [8, 32], strides = [1, 1]} : vector<8x128xf32> to vector<8x32xf32>
    %337 = vector.extract_strided_slice %334 {offsets = [0, 64], sizes = [8, 32], strides = [1, 1]} : vector<8x128xf32> to vector<8x32xf32>
    %338 = vector.extract_strided_slice %333 {offsets = [0, 96], sizes = [8, 32], strides = [1, 1]} : vector<8x128xf32> to vector<8x32xf32>
    %339 = arith.mulf %336, %321 : vector<8x32xf32>
    %340 = arith.mulf %335, %337 : vector<8x32xf32>
    %341 = arith.addf %339, %340 : vector<8x32xf32>
    %342 = math.tanh %341 : vector<8x32xf32>
    %343 = arith.mulf %338, %342 : vector<8x32xf32>
    %344 = tpu.concatenate %203, %223, %243, %263, %283, %303, %323, %343 in 0 : vector<8x32xf32>, vector<8x32xf32>, vector<8x32xf32>, vector<8x32xf32>, vector<8x32xf32>, vector<8x32xf32>, vector<8x32xf32>, vector<8x32xf32> -> vector<64x32xf32>
    %c2 = arith.constant 2 : index
    %c0_87 = arith.constant 0 : index
    %c0_88 = arith.constant 0 : index
    %345 = vector.load %arg1[%c2, %c0_87, %c0_88] : memref<4x32x128xf32, #tpu.memory_space<vmem>>, vector<1x32x128xf32>
    %346 = vector.shape_cast %345 : vector<1x32x128xf32> to vector<32x128xf32>
    %c2_89 = arith.constant 2 : index
    %c0_90 = arith.constant 0 : index
    %c0_91 = arith.constant 0 : index
    %347 = vector.load %arg2[%c2_89, %c0_90, %c0_91] : memref<4x32x128xf32, #tpu.memory_space<vmem>>, vector<1x32x128xf32>
    %348 = vector.shape_cast %347 : vector<1x32x128xf32> to vector<32x128xf32>
    %c2_92 = arith.constant 2 : index
    %c0_93 = arith.constant 0 : index
    %c0_94 = arith.constant 0 : index
    %349 = vector.load %arg3[%c2_92, %c0_93, %c0_94] : memref<4x1x128xf32, #tpu.memory_space<vmem>>, vector<1x1x128xf32>
    %350 = vector.shape_cast %349 : vector<1x1x128xf32> to vector<1x128xf32>
    %cst_95 = arith.constant dense<0.000000e+00> : vector<64x128xf32>
    %351 = tpu.matmul %344, %346, %cst_95 {dimension_numbers = #tpu.dot_dimension_numbers<[1], [0], [0], [1], [0, 0, 1, 1], [], []>} : vector<64x32xf32>, vector<32x128xf32>, vector<64x128xf32> -> vector<64x128xf32>
    %352 = vector.broadcast %350 : vector<1x128xf32> to vector<64x128xf32>
    %353 = arith.addf %351, %352 : vector<64x128xf32>
    %cst_96 = arith.constant 0.000000e+00 : f32
    %354 = vector.broadcast %cst_96 : f32 to vector<8x32xf32>
    %cst_97 = arith.constant 0.000000e+00 : f32
    %355 = vector.broadcast %cst_97 : f32 to vector<8x32xf32>
    %356 = vector.extract_strided_slice %353 {offsets = [0, 0], sizes = [8, 128], strides = [1, 1]} : vector<64x128xf32> to vector<8x128xf32>
    %cst_98 = arith.constant dense<0.000000e+00> : vector<8x128xf32>
    %357 = tpu.matmul %354, %348, %cst_98 {dimension_numbers = #tpu.dot_dimension_numbers<[1], [0], [0], [1], [0, 0, 1, 1], [], []>} : vector<8x32xf32>, vector<32x128xf32>, vector<8x128xf32> -> vector<8x128xf32>
    %358 = arith.addf %356, %357 : vector<8x128xf32>
    %cst_99 = arith.constant 5.000000e-01 : f32
    %359 = vector.broadcast %cst_99 : f32 to vector<8x128xf32>
    %360 = arith.mulf %359, %358 : vector<8x128xf32>
    %361 = math.tanh %360 : vector<8x128xf32>
    %cst_100 = arith.constant 5.000000e-01 : f32
    %362 = vector.broadcast %cst_100 : f32 to vector<8x128xf32>
    %363 = arith.mulf %362, %361 : vector<8x128xf32>
    %cst_101 = arith.constant 5.000000e-01 : f32
    %364 = vector.broadcast %cst_101 : f32 to vector<8x128xf32>
    %365 = arith.addf %363, %364 : vector<8x128xf32>
    %366 = math.tanh %358 : vector<8x128xf32>
    %367 = vector.extract_strided_slice %365 {offsets = [0, 0], sizes = [8, 32], strides = [1, 1]} : vector<8x128xf32> to vector<8x32xf32>
    %368 = vector.extract_strided_slice %365 {offsets = [0, 32], sizes = [8, 32], strides = [1, 1]} : vector<8x128xf32> to vector<8x32xf32>
    %369 = vector.extract_strided_slice %366 {offsets = [0, 64], sizes = [8, 32], strides = [1, 1]} : vector<8x128xf32> to vector<8x32xf32>
    %370 = vector.extract_strided_slice %365 {offsets = [0, 96], sizes = [8, 32], strides = [1, 1]} : vector<8x128xf32> to vector<8x32xf32>
    %371 = arith.mulf %368, %355 : vector<8x32xf32>
    %372 = arith.mulf %367, %369 : vector<8x32xf32>
    %373 = arith.addf %371, %372 : vector<8x32xf32>
    %374 = math.tanh %373 : vector<8x32xf32>
    %375 = arith.mulf %370, %374 : vector<8x32xf32>
    %376 = vector.extract_strided_slice %353 {offsets = [8, 0], sizes = [8, 128], strides = [1, 1]} : vector<64x128xf32> to vector<8x128xf32>
    %cst_102 = arith.constant dense<0.000000e+00> : vector<8x128xf32>
    %377 = tpu.matmul %375, %348, %cst_102 {dimension_numbers = #tpu.dot_dimension_numbers<[1], [0], [0], [1], [0, 0, 1, 1], [], []>} : vector<8x32xf32>, vector<32x128xf32>, vector<8x128xf32> -> vector<8x128xf32>
    %378 = arith.addf %376, %377 : vector<8x128xf32>
    %cst_103 = arith.constant 5.000000e-01 : f32
    %379 = vector.broadcast %cst_103 : f32 to vector<8x128xf32>
    %380 = arith.mulf %379, %378 : vector<8x128xf32>
    %381 = math.tanh %380 : vector<8x128xf32>
    %cst_104 = arith.constant 5.000000e-01 : f32
    %382 = vector.broadcast %cst_104 : f32 to vector<8x128xf32>
    %383 = arith.mulf %382, %381 : vector<8x128xf32>
    %cst_105 = arith.constant 5.000000e-01 : f32
    %384 = vector.broadcast %cst_105 : f32 to vector<8x128xf32>
    %385 = arith.addf %383, %384 : vector<8x128xf32>
    %386 = math.tanh %378 : vector<8x128xf32>
    %387 = vector.extract_strided_slice %385 {offsets = [0, 0], sizes = [8, 32], strides = [1, 1]} : vector<8x128xf32> to vector<8x32xf32>
    %388 = vector.extract_strided_slice %385 {offsets = [0, 32], sizes = [8, 32], strides = [1, 1]} : vector<8x128xf32> to vector<8x32xf32>
    %389 = vector.extract_strided_slice %386 {offsets = [0, 64], sizes = [8, 32], strides = [1, 1]} : vector<8x128xf32> to vector<8x32xf32>
    %390 = vector.extract_strided_slice %385 {offsets = [0, 96], sizes = [8, 32], strides = [1, 1]} : vector<8x128xf32> to vector<8x32xf32>
    %391 = arith.mulf %388, %373 : vector<8x32xf32>
    %392 = arith.mulf %387, %389 : vector<8x32xf32>
    %393 = arith.addf %391, %392 : vector<8x32xf32>
    %394 = math.tanh %393 : vector<8x32xf32>
    %395 = arith.mulf %390, %394 : vector<8x32xf32>
    %396 = vector.extract_strided_slice %353 {offsets = [16, 0], sizes = [8, 128], strides = [1, 1]} : vector<64x128xf32> to vector<8x128xf32>
    %cst_106 = arith.constant dense<0.000000e+00> : vector<8x128xf32>
    %397 = tpu.matmul %395, %348, %cst_106 {dimension_numbers = #tpu.dot_dimension_numbers<[1], [0], [0], [1], [0, 0, 1, 1], [], []>} : vector<8x32xf32>, vector<32x128xf32>, vector<8x128xf32> -> vector<8x128xf32>
    %398 = arith.addf %396, %397 : vector<8x128xf32>
    %cst_107 = arith.constant 5.000000e-01 : f32
    %399 = vector.broadcast %cst_107 : f32 to vector<8x128xf32>
    %400 = arith.mulf %399, %398 : vector<8x128xf32>
    %401 = math.tanh %400 : vector<8x128xf32>
    %cst_108 = arith.constant 5.000000e-01 : f32
    %402 = vector.broadcast %cst_108 : f32 to vector<8x128xf32>
    %403 = arith.mulf %402, %401 : vector<8x128xf32>
    %cst_109 = arith.constant 5.000000e-01 : f32
    %404 = vector.broadcast %cst_109 : f32 to vector<8x128xf32>
    %405 = arith.addf %403, %404 : vector<8x128xf32>
    %406 = math.tanh %398 : vector<8x128xf32>
    %407 = vector.extract_strided_slice %405 {offsets = [0, 0], sizes = [8, 32], strides = [1, 1]} : vector<8x128xf32> to vector<8x32xf32>
    %408 = vector.extract_strided_slice %405 {offsets = [0, 32], sizes = [8, 32], strides = [1, 1]} : vector<8x128xf32> to vector<8x32xf32>
    %409 = vector.extract_strided_slice %406 {offsets = [0, 64], sizes = [8, 32], strides = [1, 1]} : vector<8x128xf32> to vector<8x32xf32>
    %410 = vector.extract_strided_slice %405 {offsets = [0, 96], sizes = [8, 32], strides = [1, 1]} : vector<8x128xf32> to vector<8x32xf32>
    %411 = arith.mulf %408, %393 : vector<8x32xf32>
    %412 = arith.mulf %407, %409 : vector<8x32xf32>
    %413 = arith.addf %411, %412 : vector<8x32xf32>
    %414 = math.tanh %413 : vector<8x32xf32>
    %415 = arith.mulf %410, %414 : vector<8x32xf32>
    %416 = vector.extract_strided_slice %353 {offsets = [24, 0], sizes = [8, 128], strides = [1, 1]} : vector<64x128xf32> to vector<8x128xf32>
    %cst_110 = arith.constant dense<0.000000e+00> : vector<8x128xf32>
    %417 = tpu.matmul %415, %348, %cst_110 {dimension_numbers = #tpu.dot_dimension_numbers<[1], [0], [0], [1], [0, 0, 1, 1], [], []>} : vector<8x32xf32>, vector<32x128xf32>, vector<8x128xf32> -> vector<8x128xf32>
    %418 = arith.addf %416, %417 : vector<8x128xf32>
    %cst_111 = arith.constant 5.000000e-01 : f32
    %419 = vector.broadcast %cst_111 : f32 to vector<8x128xf32>
    %420 = arith.mulf %419, %418 : vector<8x128xf32>
    %421 = math.tanh %420 : vector<8x128xf32>
    %cst_112 = arith.constant 5.000000e-01 : f32
    %422 = vector.broadcast %cst_112 : f32 to vector<8x128xf32>
    %423 = arith.mulf %422, %421 : vector<8x128xf32>
    %cst_113 = arith.constant 5.000000e-01 : f32
    %424 = vector.broadcast %cst_113 : f32 to vector<8x128xf32>
    %425 = arith.addf %423, %424 : vector<8x128xf32>
    %426 = math.tanh %418 : vector<8x128xf32>
    %427 = vector.extract_strided_slice %425 {offsets = [0, 0], sizes = [8, 32], strides = [1, 1]} : vector<8x128xf32> to vector<8x32xf32>
    %428 = vector.extract_strided_slice %425 {offsets = [0, 32], sizes = [8, 32], strides = [1, 1]} : vector<8x128xf32> to vector<8x32xf32>
    %429 = vector.extract_strided_slice %426 {offsets = [0, 64], sizes = [8, 32], strides = [1, 1]} : vector<8x128xf32> to vector<8x32xf32>
    %430 = vector.extract_strided_slice %425 {offsets = [0, 96], sizes = [8, 32], strides = [1, 1]} : vector<8x128xf32> to vector<8x32xf32>
    %431 = arith.mulf %428, %413 : vector<8x32xf32>
    %432 = arith.mulf %427, %429 : vector<8x32xf32>
    %433 = arith.addf %431, %432 : vector<8x32xf32>
    %434 = math.tanh %433 : vector<8x32xf32>
    %435 = arith.mulf %430, %434 : vector<8x32xf32>
    %436 = vector.extract_strided_slice %353 {offsets = [32, 0], sizes = [8, 128], strides = [1, 1]} : vector<64x128xf32> to vector<8x128xf32>
    %cst_114 = arith.constant dense<0.000000e+00> : vector<8x128xf32>
    %437 = tpu.matmul %435, %348, %cst_114 {dimension_numbers = #tpu.dot_dimension_numbers<[1], [0], [0], [1], [0, 0, 1, 1], [], []>} : vector<8x32xf32>, vector<32x128xf32>, vector<8x128xf32> -> vector<8x128xf32>
    %438 = arith.addf %436, %437 : vector<8x128xf32>
    %cst_115 = arith.constant 5.000000e-01 : f32
    %439 = vector.broadcast %cst_115 : f32 to vector<8x128xf32>
    %440 = arith.mulf %439, %438 : vector<8x128xf32>
    %441 = math.tanh %440 : vector<8x128xf32>
    %cst_116 = arith.constant 5.000000e-01 : f32
    %442 = vector.broadcast %cst_116 : f32 to vector<8x128xf32>
    %443 = arith.mulf %442, %441 : vector<8x128xf32>
    %cst_117 = arith.constant 5.000000e-01 : f32
    %444 = vector.broadcast %cst_117 : f32 to vector<8x128xf32>
    %445 = arith.addf %443, %444 : vector<8x128xf32>
    %446 = math.tanh %438 : vector<8x128xf32>
    %447 = vector.extract_strided_slice %445 {offsets = [0, 0], sizes = [8, 32], strides = [1, 1]} : vector<8x128xf32> to vector<8x32xf32>
    %448 = vector.extract_strided_slice %445 {offsets = [0, 32], sizes = [8, 32], strides = [1, 1]} : vector<8x128xf32> to vector<8x32xf32>
    %449 = vector.extract_strided_slice %446 {offsets = [0, 64], sizes = [8, 32], strides = [1, 1]} : vector<8x128xf32> to vector<8x32xf32>
    %450 = vector.extract_strided_slice %445 {offsets = [0, 96], sizes = [8, 32], strides = [1, 1]} : vector<8x128xf32> to vector<8x32xf32>
    %451 = arith.mulf %448, %433 : vector<8x32xf32>
    %452 = arith.mulf %447, %449 : vector<8x32xf32>
    %453 = arith.addf %451, %452 : vector<8x32xf32>
    %454 = math.tanh %453 : vector<8x32xf32>
    %455 = arith.mulf %450, %454 : vector<8x32xf32>
    %456 = vector.extract_strided_slice %353 {offsets = [40, 0], sizes = [8, 128], strides = [1, 1]} : vector<64x128xf32> to vector<8x128xf32>
    %cst_118 = arith.constant dense<0.000000e+00> : vector<8x128xf32>
    %457 = tpu.matmul %455, %348, %cst_118 {dimension_numbers = #tpu.dot_dimension_numbers<[1], [0], [0], [1], [0, 0, 1, 1], [], []>} : vector<8x32xf32>, vector<32x128xf32>, vector<8x128xf32> -> vector<8x128xf32>
    %458 = arith.addf %456, %457 : vector<8x128xf32>
    %cst_119 = arith.constant 5.000000e-01 : f32
    %459 = vector.broadcast %cst_119 : f32 to vector<8x128xf32>
    %460 = arith.mulf %459, %458 : vector<8x128xf32>
    %461 = math.tanh %460 : vector<8x128xf32>
    %cst_120 = arith.constant 5.000000e-01 : f32
    %462 = vector.broadcast %cst_120 : f32 to vector<8x128xf32>
    %463 = arith.mulf %462, %461 : vector<8x128xf32>
    %cst_121 = arith.constant 5.000000e-01 : f32
    %464 = vector.broadcast %cst_121 : f32 to vector<8x128xf32>
    %465 = arith.addf %463, %464 : vector<8x128xf32>
    %466 = math.tanh %458 : vector<8x128xf32>
    %467 = vector.extract_strided_slice %465 {offsets = [0, 0], sizes = [8, 32], strides = [1, 1]} : vector<8x128xf32> to vector<8x32xf32>
    %468 = vector.extract_strided_slice %465 {offsets = [0, 32], sizes = [8, 32], strides = [1, 1]} : vector<8x128xf32> to vector<8x32xf32>
    %469 = vector.extract_strided_slice %466 {offsets = [0, 64], sizes = [8, 32], strides = [1, 1]} : vector<8x128xf32> to vector<8x32xf32>
    %470 = vector.extract_strided_slice %465 {offsets = [0, 96], sizes = [8, 32], strides = [1, 1]} : vector<8x128xf32> to vector<8x32xf32>
    %471 = arith.mulf %468, %453 : vector<8x32xf32>
    %472 = arith.mulf %467, %469 : vector<8x32xf32>
    %473 = arith.addf %471, %472 : vector<8x32xf32>
    %474 = math.tanh %473 : vector<8x32xf32>
    %475 = arith.mulf %470, %474 : vector<8x32xf32>
    %476 = vector.extract_strided_slice %353 {offsets = [48, 0], sizes = [8, 128], strides = [1, 1]} : vector<64x128xf32> to vector<8x128xf32>
    %cst_122 = arith.constant dense<0.000000e+00> : vector<8x128xf32>
    %477 = tpu.matmul %475, %348, %cst_122 {dimension_numbers = #tpu.dot_dimension_numbers<[1], [0], [0], [1], [0, 0, 1, 1], [], []>} : vector<8x32xf32>, vector<32x128xf32>, vector<8x128xf32> -> vector<8x128xf32>
    %478 = arith.addf %476, %477 : vector<8x128xf32>
    %cst_123 = arith.constant 5.000000e-01 : f32
    %479 = vector.broadcast %cst_123 : f32 to vector<8x128xf32>
    %480 = arith.mulf %479, %478 : vector<8x128xf32>
    %481 = math.tanh %480 : vector<8x128xf32>
    %cst_124 = arith.constant 5.000000e-01 : f32
    %482 = vector.broadcast %cst_124 : f32 to vector<8x128xf32>
    %483 = arith.mulf %482, %481 : vector<8x128xf32>
    %cst_125 = arith.constant 5.000000e-01 : f32
    %484 = vector.broadcast %cst_125 : f32 to vector<8x128xf32>
    %485 = arith.addf %483, %484 : vector<8x128xf32>
    %486 = math.tanh %478 : vector<8x128xf32>
    %487 = vector.extract_strided_slice %485 {offsets = [0, 0], sizes = [8, 32], strides = [1, 1]} : vector<8x128xf32> to vector<8x32xf32>
    %488 = vector.extract_strided_slice %485 {offsets = [0, 32], sizes = [8, 32], strides = [1, 1]} : vector<8x128xf32> to vector<8x32xf32>
    %489 = vector.extract_strided_slice %486 {offsets = [0, 64], sizes = [8, 32], strides = [1, 1]} : vector<8x128xf32> to vector<8x32xf32>
    %490 = vector.extract_strided_slice %485 {offsets = [0, 96], sizes = [8, 32], strides = [1, 1]} : vector<8x128xf32> to vector<8x32xf32>
    %491 = arith.mulf %488, %473 : vector<8x32xf32>
    %492 = arith.mulf %487, %489 : vector<8x32xf32>
    %493 = arith.addf %491, %492 : vector<8x32xf32>
    %494 = math.tanh %493 : vector<8x32xf32>
    %495 = arith.mulf %490, %494 : vector<8x32xf32>
    %496 = vector.extract_strided_slice %353 {offsets = [56, 0], sizes = [8, 128], strides = [1, 1]} : vector<64x128xf32> to vector<8x128xf32>
    %cst_126 = arith.constant dense<0.000000e+00> : vector<8x128xf32>
    %497 = tpu.matmul %495, %348, %cst_126 {dimension_numbers = #tpu.dot_dimension_numbers<[1], [0], [0], [1], [0, 0, 1, 1], [], []>} : vector<8x32xf32>, vector<32x128xf32>, vector<8x128xf32> -> vector<8x128xf32>
    %498 = arith.addf %496, %497 : vector<8x128xf32>
    %cst_127 = arith.constant 5.000000e-01 : f32
    %499 = vector.broadcast %cst_127 : f32 to vector<8x128xf32>
    %500 = arith.mulf %499, %498 : vector<8x128xf32>
    %501 = math.tanh %500 : vector<8x128xf32>
    %cst_128 = arith.constant 5.000000e-01 : f32
    %502 = vector.broadcast %cst_128 : f32 to vector<8x128xf32>
    %503 = arith.mulf %502, %501 : vector<8x128xf32>
    %cst_129 = arith.constant 5.000000e-01 : f32
    %504 = vector.broadcast %cst_129 : f32 to vector<8x128xf32>
    %505 = arith.addf %503, %504 : vector<8x128xf32>
    %506 = math.tanh %498 : vector<8x128xf32>
    %507 = vector.extract_strided_slice %505 {offsets = [0, 0], sizes = [8, 32], strides = [1, 1]} : vector<8x128xf32> to vector<8x32xf32>
    %508 = vector.extract_strided_slice %505 {offsets = [0, 32], sizes = [8, 32], strides = [1, 1]} : vector<8x128xf32> to vector<8x32xf32>
    %509 = vector.extract_strided_slice %506 {offsets = [0, 64], sizes = [8, 32], strides = [1, 1]} : vector<8x128xf32> to vector<8x32xf32>
    %510 = vector.extract_strided_slice %505 {offsets = [0, 96], sizes = [8, 32], strides = [1, 1]} : vector<8x128xf32> to vector<8x32xf32>
    %511 = arith.mulf %508, %493 : vector<8x32xf32>
    %512 = arith.mulf %507, %509 : vector<8x32xf32>
    %513 = arith.addf %511, %512 : vector<8x32xf32>
    %514 = math.tanh %513 : vector<8x32xf32>
    %515 = arith.mulf %510, %514 : vector<8x32xf32>
    %516 = tpu.concatenate %375, %395, %415, %435, %455, %475, %495, %515 in 0 : vector<8x32xf32>, vector<8x32xf32>, vector<8x32xf32>, vector<8x32xf32>, vector<8x32xf32>, vector<8x32xf32>, vector<8x32xf32>, vector<8x32xf32> -> vector<64x32xf32>
    %c3 = arith.constant 3 : index
    %c0_130 = arith.constant 0 : index
    %c0_131 = arith.constant 0 : index
    %517 = vector.load %arg1[%c3, %c0_130, %c0_131] : memref<4x32x128xf32, #tpu.memory_space<vmem>>, vector<1x32x128xf32>
    %518 = vector.shape_cast %517 : vector<1x32x128xf32> to vector<32x128xf32>
    %c3_132 = arith.constant 3 : index
    %c0_133 = arith.constant 0 : index
    %c0_134 = arith.constant 0 : index
    %519 = vector.load %arg2[%c3_132, %c0_133, %c0_134] : memref<4x32x128xf32, #tpu.memory_space<vmem>>, vector<1x32x128xf32>
    %520 = vector.shape_cast %519 : vector<1x32x128xf32> to vector<32x128xf32>
    %c3_135 = arith.constant 3 : index
    %c0_136 = arith.constant 0 : index
    %c0_137 = arith.constant 0 : index
    %521 = vector.load %arg3[%c3_135, %c0_136, %c0_137] : memref<4x1x128xf32, #tpu.memory_space<vmem>>, vector<1x1x128xf32>
    %522 = vector.shape_cast %521 : vector<1x1x128xf32> to vector<1x128xf32>
    %cst_138 = arith.constant dense<0.000000e+00> : vector<64x128xf32>
    %523 = tpu.matmul %516, %518, %cst_138 {dimension_numbers = #tpu.dot_dimension_numbers<[1], [0], [0], [1], [0, 0, 1, 1], [], []>} : vector<64x32xf32>, vector<32x128xf32>, vector<64x128xf32> -> vector<64x128xf32>
    %524 = vector.broadcast %522 : vector<1x128xf32> to vector<64x128xf32>
    %525 = arith.addf %523, %524 : vector<64x128xf32>
    %cst_139 = arith.constant 0.000000e+00 : f32
    %526 = vector.broadcast %cst_139 : f32 to vector<8x32xf32>
    %cst_140 = arith.constant 0.000000e+00 : f32
    %527 = vector.broadcast %cst_140 : f32 to vector<8x32xf32>
    %528 = vector.extract_strided_slice %525 {offsets = [0, 0], sizes = [8, 128], strides = [1, 1]} : vector<64x128xf32> to vector<8x128xf32>
    %cst_141 = arith.constant dense<0.000000e+00> : vector<8x128xf32>
    %529 = tpu.matmul %526, %520, %cst_141 {dimension_numbers = #tpu.dot_dimension_numbers<[1], [0], [0], [1], [0, 0, 1, 1], [], []>} : vector<8x32xf32>, vector<32x128xf32>, vector<8x128xf32> -> vector<8x128xf32>
    %530 = arith.addf %528, %529 : vector<8x128xf32>
    %cst_142 = arith.constant 5.000000e-01 : f32
    %531 = vector.broadcast %cst_142 : f32 to vector<8x128xf32>
    %532 = arith.mulf %531, %530 : vector<8x128xf32>
    %533 = math.tanh %532 : vector<8x128xf32>
    %cst_143 = arith.constant 5.000000e-01 : f32
    %534 = vector.broadcast %cst_143 : f32 to vector<8x128xf32>
    %535 = arith.mulf %534, %533 : vector<8x128xf32>
    %cst_144 = arith.constant 5.000000e-01 : f32
    %536 = vector.broadcast %cst_144 : f32 to vector<8x128xf32>
    %537 = arith.addf %535, %536 : vector<8x128xf32>
    %538 = math.tanh %530 : vector<8x128xf32>
    %539 = vector.extract_strided_slice %537 {offsets = [0, 0], sizes = [8, 32], strides = [1, 1]} : vector<8x128xf32> to vector<8x32xf32>
    %540 = vector.extract_strided_slice %537 {offsets = [0, 32], sizes = [8, 32], strides = [1, 1]} : vector<8x128xf32> to vector<8x32xf32>
    %541 = vector.extract_strided_slice %538 {offsets = [0, 64], sizes = [8, 32], strides = [1, 1]} : vector<8x128xf32> to vector<8x32xf32>
    %542 = vector.extract_strided_slice %537 {offsets = [0, 96], sizes = [8, 32], strides = [1, 1]} : vector<8x128xf32> to vector<8x32xf32>
    %543 = arith.mulf %540, %527 : vector<8x32xf32>
    %544 = arith.mulf %539, %541 : vector<8x32xf32>
    %545 = arith.addf %543, %544 : vector<8x32xf32>
    %546 = math.tanh %545 : vector<8x32xf32>
    %547 = arith.mulf %542, %546 : vector<8x32xf32>
    %548 = vector.extract_strided_slice %525 {offsets = [8, 0], sizes = [8, 128], strides = [1, 1]} : vector<64x128xf32> to vector<8x128xf32>
    %cst_145 = arith.constant dense<0.000000e+00> : vector<8x128xf32>
    %549 = tpu.matmul %547, %520, %cst_145 {dimension_numbers = #tpu.dot_dimension_numbers<[1], [0], [0], [1], [0, 0, 1, 1], [], []>} : vector<8x32xf32>, vector<32x128xf32>, vector<8x128xf32> -> vector<8x128xf32>
    %550 = arith.addf %548, %549 : vector<8x128xf32>
    %cst_146 = arith.constant 5.000000e-01 : f32
    %551 = vector.broadcast %cst_146 : f32 to vector<8x128xf32>
    %552 = arith.mulf %551, %550 : vector<8x128xf32>
    %553 = math.tanh %552 : vector<8x128xf32>
    %cst_147 = arith.constant 5.000000e-01 : f32
    %554 = vector.broadcast %cst_147 : f32 to vector<8x128xf32>
    %555 = arith.mulf %554, %553 : vector<8x128xf32>
    %cst_148 = arith.constant 5.000000e-01 : f32
    %556 = vector.broadcast %cst_148 : f32 to vector<8x128xf32>
    %557 = arith.addf %555, %556 : vector<8x128xf32>
    %558 = math.tanh %550 : vector<8x128xf32>
    %559 = vector.extract_strided_slice %557 {offsets = [0, 0], sizes = [8, 32], strides = [1, 1]} : vector<8x128xf32> to vector<8x32xf32>
    %560 = vector.extract_strided_slice %557 {offsets = [0, 32], sizes = [8, 32], strides = [1, 1]} : vector<8x128xf32> to vector<8x32xf32>
    %561 = vector.extract_strided_slice %558 {offsets = [0, 64], sizes = [8, 32], strides = [1, 1]} : vector<8x128xf32> to vector<8x32xf32>
    %562 = vector.extract_strided_slice %557 {offsets = [0, 96], sizes = [8, 32], strides = [1, 1]} : vector<8x128xf32> to vector<8x32xf32>
    %563 = arith.mulf %560, %545 : vector<8x32xf32>
    %564 = arith.mulf %559, %561 : vector<8x32xf32>
    %565 = arith.addf %563, %564 : vector<8x32xf32>
    %566 = math.tanh %565 : vector<8x32xf32>
    %567 = arith.mulf %562, %566 : vector<8x32xf32>
    %568 = vector.extract_strided_slice %525 {offsets = [16, 0], sizes = [8, 128], strides = [1, 1]} : vector<64x128xf32> to vector<8x128xf32>
    %cst_149 = arith.constant dense<0.000000e+00> : vector<8x128xf32>
    %569 = tpu.matmul %567, %520, %cst_149 {dimension_numbers = #tpu.dot_dimension_numbers<[1], [0], [0], [1], [0, 0, 1, 1], [], []>} : vector<8x32xf32>, vector<32x128xf32>, vector<8x128xf32> -> vector<8x128xf32>
    %570 = arith.addf %568, %569 : vector<8x128xf32>
    %cst_150 = arith.constant 5.000000e-01 : f32
    %571 = vector.broadcast %cst_150 : f32 to vector<8x128xf32>
    %572 = arith.mulf %571, %570 : vector<8x128xf32>
    %573 = math.tanh %572 : vector<8x128xf32>
    %cst_151 = arith.constant 5.000000e-01 : f32
    %574 = vector.broadcast %cst_151 : f32 to vector<8x128xf32>
    %575 = arith.mulf %574, %573 : vector<8x128xf32>
    %cst_152 = arith.constant 5.000000e-01 : f32
    %576 = vector.broadcast %cst_152 : f32 to vector<8x128xf32>
    %577 = arith.addf %575, %576 : vector<8x128xf32>
    %578 = math.tanh %570 : vector<8x128xf32>
    %579 = vector.extract_strided_slice %577 {offsets = [0, 0], sizes = [8, 32], strides = [1, 1]} : vector<8x128xf32> to vector<8x32xf32>
    %580 = vector.extract_strided_slice %577 {offsets = [0, 32], sizes = [8, 32], strides = [1, 1]} : vector<8x128xf32> to vector<8x32xf32>
    %581 = vector.extract_strided_slice %578 {offsets = [0, 64], sizes = [8, 32], strides = [1, 1]} : vector<8x128xf32> to vector<8x32xf32>
    %582 = vector.extract_strided_slice %577 {offsets = [0, 96], sizes = [8, 32], strides = [1, 1]} : vector<8x128xf32> to vector<8x32xf32>
    %583 = arith.mulf %580, %565 : vector<8x32xf32>
    %584 = arith.mulf %579, %581 : vector<8x32xf32>
    %585 = arith.addf %583, %584 : vector<8x32xf32>
    %586 = math.tanh %585 : vector<8x32xf32>
    %587 = arith.mulf %582, %586 : vector<8x32xf32>
    %588 = vector.extract_strided_slice %525 {offsets = [24, 0], sizes = [8, 128], strides = [1, 1]} : vector<64x128xf32> to vector<8x128xf32>
    %cst_153 = arith.constant dense<0.000000e+00> : vector<8x128xf32>
    %589 = tpu.matmul %587, %520, %cst_153 {dimension_numbers = #tpu.dot_dimension_numbers<[1], [0], [0], [1], [0, 0, 1, 1], [], []>} : vector<8x32xf32>, vector<32x128xf32>, vector<8x128xf32> -> vector<8x128xf32>
    %590 = arith.addf %588, %589 : vector<8x128xf32>
    %cst_154 = arith.constant 5.000000e-01 : f32
    %591 = vector.broadcast %cst_154 : f32 to vector<8x128xf32>
    %592 = arith.mulf %591, %590 : vector<8x128xf32>
    %593 = math.tanh %592 : vector<8x128xf32>
    %cst_155 = arith.constant 5.000000e-01 : f32
    %594 = vector.broadcast %cst_155 : f32 to vector<8x128xf32>
    %595 = arith.mulf %594, %593 : vector<8x128xf32>
    %cst_156 = arith.constant 5.000000e-01 : f32
    %596 = vector.broadcast %cst_156 : f32 to vector<8x128xf32>
    %597 = arith.addf %595, %596 : vector<8x128xf32>
    %598 = math.tanh %590 : vector<8x128xf32>
    %599 = vector.extract_strided_slice %597 {offsets = [0, 0], sizes = [8, 32], strides = [1, 1]} : vector<8x128xf32> to vector<8x32xf32>
    %600 = vector.extract_strided_slice %597 {offsets = [0, 32], sizes = [8, 32], strides = [1, 1]} : vector<8x128xf32> to vector<8x32xf32>
    %601 = vector.extract_strided_slice %598 {offsets = [0, 64], sizes = [8, 32], strides = [1, 1]} : vector<8x128xf32> to vector<8x32xf32>
    %602 = vector.extract_strided_slice %597 {offsets = [0, 96], sizes = [8, 32], strides = [1, 1]} : vector<8x128xf32> to vector<8x32xf32>
    %603 = arith.mulf %600, %585 : vector<8x32xf32>
    %604 = arith.mulf %599, %601 : vector<8x32xf32>
    %605 = arith.addf %603, %604 : vector<8x32xf32>
    %606 = math.tanh %605 : vector<8x32xf32>
    %607 = arith.mulf %602, %606 : vector<8x32xf32>
    %608 = vector.extract_strided_slice %525 {offsets = [32, 0], sizes = [8, 128], strides = [1, 1]} : vector<64x128xf32> to vector<8x128xf32>
    %cst_157 = arith.constant dense<0.000000e+00> : vector<8x128xf32>
    %609 = tpu.matmul %607, %520, %cst_157 {dimension_numbers = #tpu.dot_dimension_numbers<[1], [0], [0], [1], [0, 0, 1, 1], [], []>} : vector<8x32xf32>, vector<32x128xf32>, vector<8x128xf32> -> vector<8x128xf32>
    %610 = arith.addf %608, %609 : vector<8x128xf32>
    %cst_158 = arith.constant 5.000000e-01 : f32
    %611 = vector.broadcast %cst_158 : f32 to vector<8x128xf32>
    %612 = arith.mulf %611, %610 : vector<8x128xf32>
    %613 = math.tanh %612 : vector<8x128xf32>
    %cst_159 = arith.constant 5.000000e-01 : f32
    %614 = vector.broadcast %cst_159 : f32 to vector<8x128xf32>
    %615 = arith.mulf %614, %613 : vector<8x128xf32>
    %cst_160 = arith.constant 5.000000e-01 : f32
    %616 = vector.broadcast %cst_160 : f32 to vector<8x128xf32>
    %617 = arith.addf %615, %616 : vector<8x128xf32>
    %618 = math.tanh %610 : vector<8x128xf32>
    %619 = vector.extract_strided_slice %617 {offsets = [0, 0], sizes = [8, 32], strides = [1, 1]} : vector<8x128xf32> to vector<8x32xf32>
    %620 = vector.extract_strided_slice %617 {offsets = [0, 32], sizes = [8, 32], strides = [1, 1]} : vector<8x128xf32> to vector<8x32xf32>
    %621 = vector.extract_strided_slice %618 {offsets = [0, 64], sizes = [8, 32], strides = [1, 1]} : vector<8x128xf32> to vector<8x32xf32>
    %622 = vector.extract_strided_slice %617 {offsets = [0, 96], sizes = [8, 32], strides = [1, 1]} : vector<8x128xf32> to vector<8x32xf32>
    %623 = arith.mulf %620, %605 : vector<8x32xf32>
    %624 = arith.mulf %619, %621 : vector<8x32xf32>
    %625 = arith.addf %623, %624 : vector<8x32xf32>
    %626 = math.tanh %625 : vector<8x32xf32>
    %627 = arith.mulf %622, %626 : vector<8x32xf32>
    %628 = vector.extract_strided_slice %525 {offsets = [40, 0], sizes = [8, 128], strides = [1, 1]} : vector<64x128xf32> to vector<8x128xf32>
    %cst_161 = arith.constant dense<0.000000e+00> : vector<8x128xf32>
    %629 = tpu.matmul %627, %520, %cst_161 {dimension_numbers = #tpu.dot_dimension_numbers<[1], [0], [0], [1], [0, 0, 1, 1], [], []>} : vector<8x32xf32>, vector<32x128xf32>, vector<8x128xf32> -> vector<8x128xf32>
    %630 = arith.addf %628, %629 : vector<8x128xf32>
    %cst_162 = arith.constant 5.000000e-01 : f32
    %631 = vector.broadcast %cst_162 : f32 to vector<8x128xf32>
    %632 = arith.mulf %631, %630 : vector<8x128xf32>
    %633 = math.tanh %632 : vector<8x128xf32>
    %cst_163 = arith.constant 5.000000e-01 : f32
    %634 = vector.broadcast %cst_163 : f32 to vector<8x128xf32>
    %635 = arith.mulf %634, %633 : vector<8x128xf32>
    %cst_164 = arith.constant 5.000000e-01 : f32
    %636 = vector.broadcast %cst_164 : f32 to vector<8x128xf32>
    %637 = arith.addf %635, %636 : vector<8x128xf32>
    %638 = math.tanh %630 : vector<8x128xf32>
    %639 = vector.extract_strided_slice %637 {offsets = [0, 0], sizes = [8, 32], strides = [1, 1]} : vector<8x128xf32> to vector<8x32xf32>
    %640 = vector.extract_strided_slice %637 {offsets = [0, 32], sizes = [8, 32], strides = [1, 1]} : vector<8x128xf32> to vector<8x32xf32>
    %641 = vector.extract_strided_slice %638 {offsets = [0, 64], sizes = [8, 32], strides = [1, 1]} : vector<8x128xf32> to vector<8x32xf32>
    %642 = vector.extract_strided_slice %637 {offsets = [0, 96], sizes = [8, 32], strides = [1, 1]} : vector<8x128xf32> to vector<8x32xf32>
    %643 = arith.mulf %640, %625 : vector<8x32xf32>
    %644 = arith.mulf %639, %641 : vector<8x32xf32>
    %645 = arith.addf %643, %644 : vector<8x32xf32>
    %646 = math.tanh %645 : vector<8x32xf32>
    %647 = arith.mulf %642, %646 : vector<8x32xf32>
    %648 = vector.extract_strided_slice %525 {offsets = [48, 0], sizes = [8, 128], strides = [1, 1]} : vector<64x128xf32> to vector<8x128xf32>
    %cst_165 = arith.constant dense<0.000000e+00> : vector<8x128xf32>
    %649 = tpu.matmul %647, %520, %cst_165 {dimension_numbers = #tpu.dot_dimension_numbers<[1], [0], [0], [1], [0, 0, 1, 1], [], []>} : vector<8x32xf32>, vector<32x128xf32>, vector<8x128xf32> -> vector<8x128xf32>
    %650 = arith.addf %648, %649 : vector<8x128xf32>
    %cst_166 = arith.constant 5.000000e-01 : f32
    %651 = vector.broadcast %cst_166 : f32 to vector<8x128xf32>
    %652 = arith.mulf %651, %650 : vector<8x128xf32>
    %653 = math.tanh %652 : vector<8x128xf32>
    %cst_167 = arith.constant 5.000000e-01 : f32
    %654 = vector.broadcast %cst_167 : f32 to vector<8x128xf32>
    %655 = arith.mulf %654, %653 : vector<8x128xf32>
    %cst_168 = arith.constant 5.000000e-01 : f32
    %656 = vector.broadcast %cst_168 : f32 to vector<8x128xf32>
    %657 = arith.addf %655, %656 : vector<8x128xf32>
    %658 = math.tanh %650 : vector<8x128xf32>
    %659 = vector.extract_strided_slice %657 {offsets = [0, 0], sizes = [8, 32], strides = [1, 1]} : vector<8x128xf32> to vector<8x32xf32>
    %660 = vector.extract_strided_slice %657 {offsets = [0, 32], sizes = [8, 32], strides = [1, 1]} : vector<8x128xf32> to vector<8x32xf32>
    %661 = vector.extract_strided_slice %658 {offsets = [0, 64], sizes = [8, 32], strides = [1, 1]} : vector<8x128xf32> to vector<8x32xf32>
    %662 = vector.extract_strided_slice %657 {offsets = [0, 96], sizes = [8, 32], strides = [1, 1]} : vector<8x128xf32> to vector<8x32xf32>
    %663 = arith.mulf %660, %645 : vector<8x32xf32>
    %664 = arith.mulf %659, %661 : vector<8x32xf32>
    %665 = arith.addf %663, %664 : vector<8x32xf32>
    %666 = math.tanh %665 : vector<8x32xf32>
    %667 = arith.mulf %662, %666 : vector<8x32xf32>
    %668 = vector.extract_strided_slice %525 {offsets = [56, 0], sizes = [8, 128], strides = [1, 1]} : vector<64x128xf32> to vector<8x128xf32>
    %cst_169 = arith.constant dense<0.000000e+00> : vector<8x128xf32>
    %669 = tpu.matmul %667, %520, %cst_169 {dimension_numbers = #tpu.dot_dimension_numbers<[1], [0], [0], [1], [0, 0, 1, 1], [], []>} : vector<8x32xf32>, vector<32x128xf32>, vector<8x128xf32> -> vector<8x128xf32>
    %670 = arith.addf %668, %669 : vector<8x128xf32>
    %cst_170 = arith.constant 5.000000e-01 : f32
    %671 = vector.broadcast %cst_170 : f32 to vector<8x128xf32>
    %672 = arith.mulf %671, %670 : vector<8x128xf32>
    %673 = math.tanh %672 : vector<8x128xf32>
    %cst_171 = arith.constant 5.000000e-01 : f32
    %674 = vector.broadcast %cst_171 : f32 to vector<8x128xf32>
    %675 = arith.mulf %674, %673 : vector<8x128xf32>
    %cst_172 = arith.constant 5.000000e-01 : f32
    %676 = vector.broadcast %cst_172 : f32 to vector<8x128xf32>
    %677 = arith.addf %675, %676 : vector<8x128xf32>
    %678 = math.tanh %670 : vector<8x128xf32>
    %679 = vector.extract_strided_slice %677 {offsets = [0, 0], sizes = [8, 32], strides = [1, 1]} : vector<8x128xf32> to vector<8x32xf32>
    %680 = vector.extract_strided_slice %677 {offsets = [0, 32], sizes = [8, 32], strides = [1, 1]} : vector<8x128xf32> to vector<8x32xf32>
    %681 = vector.extract_strided_slice %678 {offsets = [0, 64], sizes = [8, 32], strides = [1, 1]} : vector<8x128xf32> to vector<8x32xf32>
    %682 = vector.extract_strided_slice %677 {offsets = [0, 96], sizes = [8, 32], strides = [1, 1]} : vector<8x128xf32> to vector<8x32xf32>
    %683 = arith.mulf %680, %665 : vector<8x32xf32>
    %684 = arith.mulf %679, %681 : vector<8x32xf32>
    %685 = arith.addf %683, %684 : vector<8x32xf32>
    %686 = math.tanh %685 : vector<8x32xf32>
    %687 = arith.mulf %682, %686 : vector<8x32xf32>
    %688 = tpu.concatenate %547, %567, %587, %607, %627, %647, %667, %687 in 0 : vector<8x32xf32>, vector<8x32xf32>, vector<8x32xf32>, vector<8x32xf32>, vector<8x32xf32>, vector<8x32xf32>, vector<8x32xf32>, vector<8x32xf32> -> vector<64x32xf32>
    %c0_173 = arith.constant 0 : index
    %c0_174 = arith.constant 0 : index
    %689 = vector.load %arg4[%c0_173, %c0_174] : memref<64x32xf32, #tpu.memory_space<vmem>>, vector<64x32xf32>
    tpu.vector_store %arg4[%c0_173, %c0_174], %688 {strides = array<i32>} : memref<64x32xf32, #tpu.memory_space<vmem>>, vector<64x32xf32>,
    return
  }
}

</mosaic_0001>

<bundles_post_ra>
// kernel: recurrent_forward.1
= control target key start
LH: loop header
LB: loop body
LE: loop exit
PB: predicated region body
PF: predicated region fallthrough
CT: control target
= control target key end

     0   :  { %9 = vsyncpa [#allocation3], 0  ;;  %s4878_s15 = smov [#allocation2]   ;;  %s5614_s0 = inlined_call_operand.vmem [shape: f32[64,32], index: 0, kind: input, shape index: {}]   ;;  %s5615_s1 = inlined_call_operand.vmem [shape: f32[4,32,128], index: 1, kind: input, shape index: {}]   ;;  %s5616_s2 = inlined_call_operand.hbm [shape: f32[4,32,128], index: 2, kind: input, shape index: {}]   ;;  %s5617_s3 = inlined_call_operand.vmem [shape: f32[4,1,128], index: 3, kind: input, shape index: {}]   ;;  %s5618_s4 = inlined_call_operand.vmem [shape: f32[64,32], index: 4, kind: output, shape index: {}]  }
   0x1   :  { %s19_s16 = sshll.u32 %s4878_s15, 4  ;;  %s4854_s19 = scalar_lea.hbm %s5616_s2, 2048  ;;  %s20_s16 = int_to_ptr.vmem [resolvable:$true] %s19_s16 }
   0x2   :  { %p4855_p0 = scmp.ne.s32.totalorder %s5616_s2, %s4854_s19  ;;  %p4858_p1 = scmp.lt.u32.totalorder %s4854_s19, %s5616_s2 }
   0x4   :  { %p4860_p2 = pnand %p4858_p1, %p4855_p0 }
   0x6   :  { %4863 = shalt.err (!%p4860_p2)
}
   0x7   :  { %s4864_s24 = scalar_lea.vmem %s20_s16, 2048  ;;  %p4869_p4 = scmp.lt.s32.totalorder %s20_s16, %s20_s16 }
   0x8   :  { %p4865_p3 = scmp.ne.s32.totalorder %s20_s16, %s4864_s24  ;;  %p4870_p5 = scmp.lt.s32.totalorder %s4864_s24, %s4864_s24 }
   0xa   :  { %p4871_p6 = por %p4870_p5, %p4869_p4 }
   0xc   :  { %p4872_p7 = pnand %p4871_p6, %p4865_p3 }
   0xe   :  { %4875 = shalt.err (!%p4872_p7)
}
   0xf   :  { %s4879_s25 = smov 128   ;;  %s4880_s26 = smov 8  }
  0x10   :  { %25 = dma.hbm_to_vmem [thread:$0]  %s5616_s2, 2048, %s20_s16, [#allocation3], %s4879_s25, %s4879_s25, %s4880_s26  }
  0x11   :  { %4876 = dma.done.wait [#allocation3], 2048  }
  0x12   :  { %4877 = vsyncadd [#allocation3], 4294965248  ;;  %v4881_v0 = vmov 0.0|0.0   ;;  %vm4882_vm0 = vmmov 0   ;;  %v4883_v1 = vmov 0.0   ;;  %v39_v2 = vld [vmem:[%s5615_s1] sm:$0xff] }
  0x13   :  { %4438 = vmatprep.subr.bf16.mxu1 %v4881_v0  ;;  %4026 = vmatprep.mubr.msk.f32.mxu1 %vm4882_vm0, %v4883_v1  ;;  %v40_v3 = vld [vmem:[%s5615_s1 + $0x8] sm:$0xff]  ;;  %v43_v4 = vld [vmem:[#allocation2] sm:$0xff]  ;;  %vm54_vm1 = vcmask 261120   ;;  %v41_v7 = vld [vmem:[%s5615_s1 + $0x10] sm:$0xff]  ;;  %s4884_s16 = smov 64   ;;  %s4885_s17 = smov 32  }
  0x14   :  { %v4430_v5 = vpack.c.bf16 %v40_v3, %v39_v2  ;;  %v44_v6 = vld [vmem:[#allocation2 + $0x8] sm:$0xff]  ;;  %v42_v8 = vld [vmem:[%s5615_s1 + $0x18] sm:$0xff]  ;;  %v31_v11 = vld [vmem:[%s5614_s0] sm:$0xff] }
  0x15   :  { %v4938_v9 = vpack.c.bf16 %v44_v6, %v43_v4  ;;  %v4434_v10 = vpack.c.bf16 %v42_v8, %v41_v7  ;;  %v45_v12 = vld [vmem:[#allocation2 + $0x10] sm:$0xff]  ;;  %v46_v13 = vld [vmem:[#allocation2 + $0x18] sm:$0xff]  ;;  %4006 = vmatprep.mubr.msk.f32.mxu0 %vm54_vm1, %v31_v11  ;;  %v32_v15 = vld [vmem:[%s5614_s0 + $0x8] sm:$0xff] }
  0x16   :  { %4431 = vmatprep.subr.bf16.mxu0 %v4430_v5  ;;  %v4945_v14 = vpack.c.bf16 %v46_v13, %v45_v12  ;;  %v4969_v16 = vld [vmem:[%s5617_s3] ss:$0 sm:$0xff]  ;;  %v33_v51 = vld [vmem:[%s5614_s0 + $0x10] sm:$0xff]  ;;  %v34_v52 = vld [vmem:[%s5614_s0 + $0x18] sm:$0xff] }
  0x17   :  { %4433 = vmatpush3.bf16.msra.mxu0 %v4430_v5  ;;  %4440 = vmatpush3.bf16.msra.mxu1 %v4938_v9  ;;  %v35_v53 = vld [vmem:[%s5614_s0 + $0x20] sm:$0xff]  ;;  %v36_v54 = vld [vmem:[%s5614_s0 + $0x28] sm:$0xff]  ;;  %v37_v55 = vld [vmem:[%s5614_s0 + $0x30] sm:$0xff] }
  0x18   :  { %4435 = vmatprep.subr.bf16.mxu0 %v4434_v10  ;;  %4441 = vmatprep.subr.bf16.mxu1 %v4881_v0  ;;  %v38_v56 = vld [vmem:[%s5614_s0 + $0x38] sm:$0xff] }
  0x1b   :  { %4437 = vmatpush3.bf16.msra.mxu0 %v4434_v10  ;;  %4443 = vmatpush3.bf16.msra.mxu1 %v4945_v14 }
  0x1c   :  { %4444 = vmatprep.subr.bf16.mxu1 %v4881_v0  ;;  %4450 = vmatprep.subr.bf16.mxu0 %v4881_v0 }
  0x1e   :  { %4007 = vmatmul.mubr.msk.f32.vlgmr.msra.gmra.mrb[0].mxu0 %vm54_vm1, %v32_v15  ;;  %4027 = vmatmul.mubr.f32.vlgmr.msra.gmra.mrb[0].mxu1 %v4883_v1 }
  0x1f   :  { %4446 = vmatpush3.bf16.msra.mxu1 %v4938_v9  ;;  %4037 = vmatprep.mubr.msk.f32.mxu1 %vm4882_vm0, %v4883_v1 }
  0x20   :  { %4447 = vmatprep.subr.bf16.mxu1 %v4881_v0  ;;  %4452 = vmatpush3.bf16.msra.mxu0 %v4938_v9 }
  0x21   :  { %4453 = vmatprep.subr.bf16.mxu0 %v4881_v0  ;;  %4009 = vmatprep.mubr.msk.f32.mxu0 %vm54_vm1, %v33_v51 }
  0x22   :  { %4010 = vmatmul.mubr.msk.f32.gmra.mrb[2].mxu0 %vm54_vm1, %v34_v52 }
  0x23   :  { %4449 = vmatpush3.bf16.msra.mxu1 %v4945_v14  ;;  %4012 = vmatprep.mubr.msk.f32.mxu0 %vm54_vm1, %v35_v53 }
  0x24   :  { %4455 = vmatpush3.bf16.msra.mxu0 %v4945_v14  ;;  %4456 = vmatprep.subr.bf16.mxu1 %v4881_v0 }
  0x25   :  { %4462 = vmatprep.subr.bf16.mxu0 %v4881_v0 }
  0x26   :  { %4013 = vmatmul.mubr.msk.f32.gmra.mrb[4].mxu0 %vm54_vm1, %v36_v54 }
  0x27   :  { %4015 = vmatprep.mubr.msk.f32.mxu0 %vm54_vm1, %v37_v55 }
  0x2a   :  { %4016 = vmatmul.mubr.msk.f32.gmra.mrb[6].mxu0 %vm54_vm1, %v38_v56 }
  0x2b   :  { %4048 = vmatprep.mubr.msk.f32.mxu0 %vm4882_vm0, %v4883_v1 }
  0xf1   :  { %v4008_v17 = vpop.f32.mrb[0].mxu0  ;;  %v253_v18 = vpop.f32.mrb[0].mxu1 }
  0xf2   :  { %v145_v19 = vpop.f32.mrb[1].mxu0  ;;  %v4028_v20 = vpop.f32.mrb[1].mxu1  ;;  %v151_v37 = vadd.f32 %v4008_v17, %v4969_v16 }
  0xf3   :  { %v146_v21 = vadd.f32 %v4969_v16, %v145_v19 }
  0xf5   :  { %v257_v22 = vadd.f32 %v253_v18, %v146_v21  ;;  %v4011_v60 = vpop.f32.mrb[2].mxu0 }
  0xf6   :  { %v155_v61 = vpop.f32.mrb[3].mxu0 }
  0xf7   :  { %4662 = vtanh.f32 %v257_v22  ;;  %v258_v24 = vmul.f32 0.5, %v257_v22  ;;  %v156_v5 = vadd.f32 %v4969_v16, %v155_v61 }
  0xf9   :  { %4664 = vtanh.f32 %v258_v24  ;;  %v5017_v62 = vpop.f32.mrb[4].mxu0 }
  0xfa   :  { %v5019_v63 = vpop.f32.mrb[5].mxu0 }
  0xfd   :  { %v5021_v2 = vpop.f32.mrb[6].mxu0 }
  0xfe   :  { %v5023_v3 = vpop.f32.mrb[7].mxu0 }
 0x101   :  { %v4663_v23 = vpop.eup %4662 }
 0x102   :  { %265 = vrot.lane.b32.xlu0 %v4663_v23, %s4884_s16 }
 0x103   :  { %v4665_v25 = vpop.eup %4664 }
 0x104   :  { %v260_v26 = vmul.f32 0.5, %v4665_v25 }
 0x106   :  { %v261_v27 = vadd.f32 0.5, %v260_v26  ;;  %v161_v26 = vadd.f32 %v4011_v60, %v4969_v16 }
 0x108   :  { %v263_v30 = vmul.f32 0.0, %v261_v27 }
 0x174   :  { %v266_v28 = vpop.permute.xlu0 %265 }
 0x175   :  { %v268_v29 = vmul.f32 %v266_v28, %v261_v27 }
 0x177   :  { %270 = vrot.lane.b32.xlu0 %v268_v29, %s4885_s17 }
 0x1e9   :  { %v271_v31 = vpop.permute.xlu0 %270 }
 0x1ea   :  { %v273_v32 = vadd.f32 %v271_v31, %v263_v30 }
 0x1ec   :  { %4666 = vtanh.f32 %v273_v32 }
 0x1f6   :  { %v4667_v33 = vpop.eup %4666 }
 0x1f7   :  { %276 = vrot.lane.b32.xlu1 %v4667_v33, %s4884_s16 }
 0x269   :  { %v277_v34 = vpop.permute.xlu1 %276 }
 0x26a   :  { %v279_v35 = vmul.f32 %v277_v34, %v261_v27 }
 0x26c   :  { %281 = vrot.lane.b32.xlu1 %v279_v35, %s4885_s17 }
 0x2de   :  { %v4976_v36 = vpop.permute.xlu1 %281 }
 0x2df   :  { %4038 = vmatmul.mubr.msk.f32.vlgmr.msra.gmra.mrb[2].mxu1 %vm54_vm1, %v4976_v36 }
 0x2e0   :  { %4458 = vmatpush3.bf16.msra.mxu1 %v4938_v9  ;;  %4059 = vmatprep.mubr.msk.f32.mxu1 %vm4882_vm0, %v4883_v1 }
 0x2e1   :  { %4459 = vmatprep.subr.bf16.mxu1 %v4881_v0 }
 0x2e4   :  { %4461 = vmatpush3.bf16.msra.mxu1 %v4945_v14 }
 0x2e5   :  { %4468 = vmatprep.subr.bf16.mxu1 %v4881_v0 }
 0x3b2   :  { %v351_v38 = vpop.f32.mrb[2].mxu1 }
 0x3b3   :  { %v355_v39 = vadd.f32 %v351_v38, %v151_v37  ;;  %v4039_v40 = vpop.f32.mrb[3].mxu1 }
 0x3b5   :  { %4668 = vtanh.f32 %v355_v39  ;;  %v356_v42 = vmul.f32 0.5, %v355_v39 }
 0x3b7   :  { %4670 = vtanh.f32 %v356_v42 }
 0x3bf   :  { %v4669_v41 = vpop.eup %4668 }
 0x3c0   :  { %363 = vrot.lane.b32.xlu0 %v4669_v41, %s4884_s16 }
 0x3c1   :  { %v4671_v43 = vpop.eup %4670 }
 0x3c2   :  { %v358_v44 = vmul.f32 0.5, %v4671_v43 }
 0x3c4   :  { %v359_v45 = vadd.f32 0.5, %v358_v44 }
 0x3c6   :  { %v361_v48 = vmul.f32 %v359_v45, %v273_v32 }
 0x432   :  { %v364_v46 = vpop.permute.xlu0 %363 }
 0x433   :  { %v366_v47 = vmul.f32 %v364_v46, %v359_v45 }
 0x435   :  { %368 = vrot.lane.b32.xlu1 %v366_v47, %s4885_s17 }
 0x4a7   :  { %v369_v49 = vpop.permute.xlu1 %368 }
 0x4a8   :  { %v371_v50 = vadd.f32 %v369_v49, %v361_v48 }
 0x4aa   :  { %4672 = vtanh.f32 %v371_v50 }
 0x4b4   :  { %v4673_v57 = vpop.eup %4672 }
 0x4b5   :  { %374 = vrot.lane.b32.xlu0 %v4673_v57, %s4884_s16 }
 0x527   :  { %v375_v58 = vpop.permute.xlu0 %374 }
 0x528   :  { %v377_v59 = vmul.f32 %v375_v58, %v359_v45  ;;  %v166_v45 = vadd.f32 %v4969_v16, %v5019_v63 }
 0x52a   :  { %379 = vrot.lane.b32.xlu1 %v377_v59, %s4885_s17 }
 0x59c   :  { %v5025_v4 = vpop.permute.xlu1 %379 }
 0x59d   :  { %4049 = vmatmul.mubr.msk.f32.vlgmr.msra.gmra.mrb[8].mxu0 %vm54_vm1, %v5025_v4 }
 0x59e   :  { %4464 = vmatpush3.bf16.msra.mxu0 %v4938_v9  ;;  %4070 = vmatprep.mubr.msk.f32.mxu0 %vm4882_vm0, %v4883_v1 }
 0x59f   :  { %4465 = vmatprep.subr.bf16.mxu0 %v4881_v0 }
 0x5a2   :  { %4467 = vmatpush3.bf16.msra.mxu0 %v4945_v14 }
 0x5a3   :  { %4474 = vmatprep.subr.bf16.mxu0 %v4881_v0 }
 0x670   :  { %v449_v6 = vpop.f32.mrb[8].mxu0 }
 0x671   :  { %v453_v7 = vadd.f32 %v449_v6, %v156_v5  ;;  %v4050_v8 = vpop.f32.mrb[9].mxu0  ;;  %v171_v5 = vadd.f32 %v5017_v62, %v4969_v16  ;;  %v3727_v62 = vld [vmem:[%s5615_s1 + $0x20] sm:$0xff] }
 0x673   :  { %4674 = vtanh.f32 %v453_v7  ;;  %v454_v11 = vmul.f32 0.5, %v453_v7 }
 0x675   :  { %4676 = vtanh.f32 %v454_v11 }
 0x67d   :  { %v4675_v10 = vpop.eup %4674 }
 0x67e   :  { %461 = vrot.lane.b32.xlu0 %v4675_v10, %s4884_s16 }
 0x67f   :  { %v4677_v12 = vpop.eup %4676 }
 0x680   :  { %v456_v13 = vmul.f32 0.5, %v4677_v12 }
 0x682   :  { %v457_v15 = vadd.f32 0.5, %v456_v13 }
 0x684   :  { %v459_v19 = vmul.f32 %v457_v15, %v371_v50 }
 0x6f0   :  { %v462_v17 = vpop.permute.xlu0 %461 }
 0x6f1   :  { %v464_v18 = vmul.f32 %v462_v17, %v457_v15 }
 0x6f3   :  { %466 = vrot.lane.b32.xlu1 %v464_v18, %s4885_s17 }
 0x765   :  { %v467_v20 = vpop.permute.xlu1 %466 }
 0x766   :  { %v469_v21 = vadd.f32 %v467_v20, %v459_v19  ;;  %v3728_v20 = vld [vmem:[%s5615_s1 + $0x28] sm:$0xff] }
 0x768   :  { %4678 = vtanh.f32 %v469_v21 }
 0x772   :  { %v4679_v22 = vpop.eup %4678 }
 0x773   :  { %472 = vrot.lane.b32.xlu0 %v4679_v22, %s4884_s16 }
 0x7e5   :  { %v473_v23 = vpop.permute.xlu0 %472 }
 0x7e6   :  { %v475_v24 = vmul.f32 %v473_v23, %v457_v15 }
 0x7e8   :  { %477 = vrot.lane.b32.xlu1 %v475_v24, %s4885_s17 }
 0x85a   :  { %v5040_v25 = vpop.permute.xlu1 %477 }
 0x85b   :  { %4060 = vmatmul.mubr.msk.f32.vlgmr.msra.gmra.mrb[4].mxu1 %vm54_vm1, %v5040_v25 }
 0x85c   :  { %4470 = vmatpush3.bf16.msra.mxu1 %v4938_v9  ;;  %4081 = vmatprep.mubr.msk.f32.mxu1 %vm4882_vm0, %v4883_v1 }
 0x85d   :  { %4471 = vmatprep.subr.bf16.mxu1 %v4881_v0 }
 0x860   :  { %4473 = vmatpush3.bf16.msra.mxu1 %v4945_v14 }
 0x861   :  { %4480 = vmatprep.subr.bf16.mxu1 %v4881_v0 }
 0x92e   :  { %v547_v27 = vpop.f32.mrb[4].mxu1 }
 0x92f   :  { %v551_v28 = vadd.f32 %v547_v27, %v161_v26  ;;  %v4061_v29 = vpop.f32.mrb[5].mxu1  ;;  %v3729_v26 = vld [vmem:[%s5615_s1 + $0x30] sm:$0xff]  ;;  %v3730_v27 = vld [vmem:[%s5615_s1 + $0x38] sm:$0xff] }
 0x931   :  { %4680 = vtanh.f32 %v551_v28  ;;  %v552_v31 = vmul.f32 0.5, %v551_v28  ;;  %v4490_v28 = vpack.c.bf16 %v3730_v27, %v3729_v26 }
 0x933   :  { %4682 = vtanh.f32 %v552_v31 }
 0x93b   :  { %v4681_v30 = vpop.eup %4680 }
 0x93c   :  { %559 = vrot.lane.b32.xlu0 %v4681_v30, %s4884_s16 }
 0x93d   :  { %v4683_v32 = vpop.eup %4682 }
 0x93e   :  { %v554_v33 = vmul.f32 0.5, %v4683_v32 }
 0x940   :  { %v555_v34 = vadd.f32 0.5, %v554_v33 }
 0x942   :  { %v557_v38 = vmul.f32 %v555_v34, %v469_v21  ;;  %v4486_v21 = vpack.c.bf16 %v3728_v20, %v3727_v62 }
 0x9ae   :  { %v560_v35 = vpop.permute.xlu0 %559 }
 0x9af   :  { %v562_v37 = vmul.f32 %v560_v35, %v555_v34 }
 0x9b1   :  { %564 = vrot.lane.b32.xlu1 %v562_v37, %s4885_s17 }
 0xa23   :  { %v565_v39 = vpop.permute.xlu1 %564 }
 0xa24   :  { %v567_v40 = vadd.f32 %v565_v39, %v557_v38 }
 0xa26   :  { %4684 = vtanh.f32 %v567_v40 }
 0xa30   :  { %v4685_v41 = vpop.eup %4684 }
 0xa31   :  { %570 = vrot.lane.b32.xlu0 %v4685_v41, %s4884_s16 }
 0xaa3   :  { %v571_v42 = vpop.permute.xlu0 %570 }
 0xaa4   :  { %v573_v43 = vmul.f32 %v571_v42, %v555_v34 }
 0xaa6   :  { %575 = vrot.lane.b32.xlu1 %v573_v43, %s4885_s17 }
 0xb18   :  { %v5055_v44 = vpop.permute.xlu1 %575 }
 0xb19   :  { %4071 = vmatmul.mubr.msk.f32.vlgmr.msra.gmra.mrb[10].mxu0 %vm54_vm1, %v5055_v44 }
 0xb1a   :  { %4476 = vmatpush3.bf16.msra.mxu0 %v4938_v9  ;;  %4092 = vmatprep.mubr.msk.f32.mxu0 %vm4882_vm0, %v4883_v1 }
 0xb1b   :  { %4477 = vmatprep.subr.bf16.mxu0 %v4881_v0 }
 0xb1e   :  { %4479 = vmatpush3.bf16.msra.mxu0 %v4945_v14 }
 0xb1f   :  { %4487 = vmatprep.subr.bf16.mxu0 %v4486_v21 }
 0xbec   :  { %v645_v46 = vpop.f32.mrb[10].mxu0 }
 0xbed   :  { %v649_v47 = vadd.f32 %v645_v46, %v166_v45  ;;  %v4072_v48 = vpop.f32.mrb[11].mxu0 }
 0xbee   :  { %v972_v48 = vld [vmem:[#allocation2 + $0x20] sm:$0xff] }
 0xbef   :  { %4686 = vtanh.f32 %v649_v47  ;;  %v650_v50 = vmul.f32 0.5, %v649_v47 }
 0xbf1   :  { %4688 = vtanh.f32 %v650_v50 }
 0xbf9   :  { %v4687_v49 = vpop.eup %4686 }
 0xbfa   :  { %657 = vrot.lane.b32.xlu0 %v4687_v49, %s4884_s16  ;;  %v973_v49 = vld [vmem:[#allocation2 + $0x28] sm:$0xff] }
 0xbfb   :  { %v4689_v51 = vpop.eup %4688  ;;  %v5125_v50 = vpack.c.bf16 %v973_v49, %v972_v48 }
 0xbfc   :  { %v652_v52 = vmul.f32 0.5, %v4689_v51  ;;  %v974_v51 = vld [vmem:[#allocation2 + $0x30] sm:$0xff] }
 0xbfe   :  { %v653_v53 = vadd.f32 0.5, %v652_v52  ;;  %v975_v52 = vld [vmem:[#allocation2 + $0x38] sm:$0xff] }
 0xc00   :  { %v655_v56 = vmul.f32 %v653_v53, %v567_v40 }
 0xc6c   :  { %v658_v54 = vpop.permute.xlu0 %657 }
 0xc6d   :  { %v660_v55 = vmul.f32 %v658_v54, %v653_v53 }
 0xc6f   :  { %662 = vrot.lane.b32.xlu1 %v660_v55, %s4885_s17 }
 0xce1   :  { %v663_v57 = vpop.permute.xlu1 %662 }
 0xce2   :  { %v665_v58 = vadd.f32 %v663_v57, %v655_v56  ;;  %v181_v57 = vadd.f32 %v5021_v2, %v4969_v16 }
 0xce4   :  { %4690 = vtanh.f32 %v665_v58 }
 0xcee   :  { %v4691_v59 = vpop.eup %4690 }
 0xcef   :  { %668 = vrot.lane.b32.xlu0 %v4691_v59, %s4884_s16 }
 0xd61   :  { %v669_v60 = vpop.permute.xlu0 %668 }
 0xd62   :  { %v671_v61 = vmul.f32 %v669_v60, %v653_v53  ;;  %v5129_v53 = vpack.c.bf16 %v975_v52, %v974_v51 }
 0xd64   :  { %673 = vrot.lane.b32.xlu1 %v671_v61, %s4885_s17  ;;  %v5154_v61 = vld [vmem:[%s5617_s3 + $0x1] ss:$0 sm:$0xff] }
 0xdd6   :  { %v674_v63 = vpop.permute.xlu1 %673 }
 0xdd7   :  { %4082 = vmatmul.mubr.msk.f32.vlgmr.msra.gmra.mrb[6].mxu1 %vm54_vm1, %v674_v63 }
 0xdd8   :  { %4482 = vmatpush3.bf16.msra.mxu1 %v4938_v9  ;;  %4103 = vmatprep.mubr.msk.f32.mxu1 %vm4882_vm0, %v4883_v1 }
 0xdd9   :  { %4483 = vmatprep.subr.bf16.mxu1 %v4881_v0 }
 0xddc   :  { %4485 = vmatpush3.bf16.msra.mxu1 %v4945_v14 }
 0xddd   :  { %4494 = vmatprep.subr.bf16.mxu1 %v4881_v0 }
 0xeaa   :  { %v743_v6 = vpop.f32.mrb[6].mxu1 }
 0xeab   :  { %v747_v7 = vadd.f32 %v743_v6, %v171_v5  ;;  %v4083_v8 = vpop.f32.mrb[7].mxu1 }
 0xead   :  { %4692 = vtanh.f32 %v747_v7  ;;  %v748_v9 = vmul.f32 0.5, %v747_v7 }
 0xeaf   :  { %4694 = vtanh.f32 %v748_v9 }
 0xeb7   :  { %v4693_v10 = vpop.eup %4692 }
 0xeb8   :  { %755 = vrot.lane.b32.xlu0 %v4693_v10, %s4884_s16 }
 0xeb9   :  { %v4695_v11 = vpop.eup %4694 }
 0xeba   :  { %v750_v12 = vmul.f32 0.5, %v4695_v11 }
 0xebc   :  { %v751_v13 = vadd.f32 0.5, %v750_v12 }
 0xebe   :  { %v753_v14 = vmul.f32 %v751_v13, %v665_v58 }
 0xf2a   :  { %v756_v15 = vpop.permute.xlu0 %755 }
 0xf2b   :  { %v758_v17 = vmul.f32 %v756_v15, %v751_v13 }
 0xf2d   :  { %760 = vrot.lane.b32.xlu1 %v758_v17, %s4885_s17 }
 0xf9f   :  { %v761_v18 = vpop.permute.xlu1 %760 }
 0xfa0   :  { %v763_v19 = vadd.f32 %v761_v18, %v753_v14 }
 0xfa2   :  { %4696 = vtanh.f32 %v763_v19 }
 0xfac   :  { %v4697_v22 = vpop.eup %4696 }
 0xfad   :  { %766 = vrot.lane.b32.xlu0 %v4697_v22, %s4884_s16 }
0x101f   :  { %v767_v23 = vpop.permute.xlu0 %766 }
0x1020   :  { %v769_v24 = vmul.f32 %v767_v23, %v751_v13 }
0x1022   :  { %771 = vrot.lane.b32.xlu1 %v769_v24, %s4885_s17 }
0x1094   :  { %v772_v29 = vpop.permute.xlu1 %771 }
0x1095   :  { %4093 = vmatmul.mubr.msk.f32.vlgmr.msra.gmra.mrb[12].mxu0 %vm54_vm1, %v772_v29 }
0x1096   :  { %4489 = vmatpush3.bf16.msra.mxu0 %v4486_v21  ;;  %4114 = vmatprep.mubr.msk.f32.mxu0 %vm54_vm1, %v4976_v36  ;;  %v176_v36 = vadd.f32 %v4969_v16, %v5023_v3 }
0x1097   :  { %4491 = vmatprep.subr.bf16.mxu0 %v4490_v28 }
0x109a   :  { %4493 = vmatpush3.bf16.msra.mxu0 %v4490_v28 }
0x109b   :  { %4506 = vmatprep.subr.bf16.mxu0 %v4881_v0 }
0x109d   :  { %4115 = vmatmul.mubr.msk.f32.vlgmr.msra.gmra.mrb[14].mxu0 %vm54_vm1, %v5025_v4 }
0x109e   :  { %4117 = vmatprep.mubr.msk.f32.mxu0 %vm54_vm1, %v5040_v25  ;;  %4508 = vmatpush3.bf16.msra.mxu0 %v5125_v50 }
0x109f   :  { %4509 = vmatprep.subr.bf16.mxu0 %v4881_v0 }
0x10a1   :  { %4118 = vmatmul.mubr.msk.f32.gmra.mrb[16].mxu0 %vm54_vm1, %v5055_v44 }
0x10a2   :  { %4120 = vmatprep.mubr.msk.f32.mxu0 %vm54_vm1, %v674_v63  ;;  %4511 = vmatpush3.bf16.msra.mxu0 %v5129_v53 }
0x10a3   :  { %4518 = vmatprep.subr.bf16.mxu0 %v4881_v0 }
0x10a5   :  { %4121 = vmatmul.mubr.msk.f32.gmra.mrb[18].mxu0 %vm54_vm1, %v772_v29 }
0x1168   :  { %v841_v30 = vpop.f32.mrb[12].mxu0 }
0x1169   :  { %v845_v31 = vadd.f32 %v841_v30, %v176_v36  ;;  %v4094_v32 = vpop.f32.mrb[13].mxu0 }
0x116b   :  { %4698 = vtanh.f32 %v845_v31  ;;  %v846_v39 = vmul.f32 0.5, %v845_v31 }
0x116d   :  { %4700 = vtanh.f32 %v846_v39 }
0x1170   :  { %v5109_v33 = vpop.f32.mrb[14].mxu0 }
0x1171   :  { %v1055_v4 = vpop.f32.mrb[15].mxu0 }
0x1172   :  { %v1056_v63 = vadd.f32 %v5154_v61, %v1055_v4  ;;  %v1061_v4 = vadd.f32 %v5109_v33, %v5154_v61 }
0x1174   :  { %v5111_v34 = vpop.f32.mrb[16].mxu0 }
0x1175   :  { %v4699_v25 = vpop.eup %4698  ;;  %v5113_v35 = vpop.f32.mrb[17].mxu0 }
0x1176   :  { %853 = vrot.lane.b32.xlu0 %v4699_v25, %s4884_s16 }
0x1177   :  { %v4701_v3 = vpop.eup %4700 }
0x1178   :  { %v5116_v37 = vpop.f32.mrb[18].mxu0  ;;  %v848_v40 = vmul.f32 0.5, %v4701_v3 }
0x1179   :  { %v5118_v38 = vpop.f32.mrb[19].mxu0 }
0x117a   :  { %v849_v41 = vadd.f32 0.5, %v848_v40 }
0x117c   :  { %v851_v44 = vmul.f32 %v849_v41, %v763_v19 }
0x11e8   :  { %v854_v42 = vpop.permute.xlu0 %853 }
0x11e9   :  { %v856_v43 = vmul.f32 %v854_v42, %v849_v41 }
0x11eb   :  { %858 = vrot.lane.b32.xlu1 %v856_v43, %s4885_s17 }
0x125d   :  { %v859_v45 = vpop.permute.xlu1 %858 }
0x125e   :  { %v5121_v46 = vadd.f32 %v859_v45, %v851_v44 }
0x1260   :  { %4702 = vtanh.f32 %v5121_v46 }
0x126a   :  { %v4703_v47 = vpop.eup %4702 }
0x126b   :  { %864 = vrot.lane.b32.xlu0 %v4703_v47, %s4884_s16 }
0x12dd   :  { %v865_v54 = vpop.permute.xlu0 %864 }
0x12de   :  { %v867_v55 = vmul.f32 %v865_v54, %v849_v41 }
0x12e0   :  { %869 = vrot.lane.b32.xlu1 %v867_v55, %s4885_s17 }
0x1352   :  { %v870_v56 = vpop.permute.xlu1 %869 }
0x1353   :  { %4104 = vmatmul.mubr.msk.f32.vlgmr.msra.gmra.mrb[8].mxu1 %vm54_vm1, %v870_v56  ;;  %4123 = vmatprep.mubr.msk.f32.mxu0 %vm54_vm1, %v870_v56 }
0x1354   :  { %4496 = vmatpush3.bf16.msra.mxu1 %v5125_v50  ;;  %4134 = vmatprep.mubr.msk.f32.mxu1 %vm4882_vm0, %v4883_v1 }
0x1355   :  { %4497 = vmatprep.subr.bf16.mxu1 %v4881_v0 }
0x1358   :  { %4499 = vmatpush3.bf16.msra.mxu1 %v5129_v53 }
0x1359   :  { %4500 = vmatprep.subr.bf16.mxu1 %v4881_v0 }
0x135b   :  { %4135 = vmatmul.mubr.f32.vlgmr.msra.gmra.mrb[10].mxu1 %v4883_v1 }
0x135c   :  { %4502 = vmatpush3.bf16.msra.mxu1 %v5125_v50  ;;  %4145 = vmatprep.mubr.msk.f32.mxu1 %vm4882_vm0, %v4883_v1 }
0x135d   :  { %4503 = vmatprep.subr.bf16.mxu1 %v4881_v0 }
0x1360   :  { %4505 = vmatpush3.bf16.msra.mxu1 %v5129_v53 }
0x1361   :  { %4512 = vmatprep.subr.bf16.mxu1 %v4881_v0 }
0x1426   :  { %v939_v58 = vpop.f32.mrb[8].mxu1 }
0x1427   :  { %v943_v59 = vadd.f32 %v939_v58, %v181_v57  ;;  %v4105_v60 = vpop.f32.mrb[9].mxu1  ;;  %v1066_v58 = vadd.f32 %v5154_v61, %v5113_v35 }
0x1429   :  { %v944_v19 = vmul.f32 0.5, %v943_v59 }
0x142e   :  { %v1160_v5 = vpop.f32.mrb[10].mxu1 }
0x142f   :  { %v1164_v6 = vadd.f32 %v1160_v5, %v1056_v63  ;;  %v4136_v7 = vpop.f32.mrb[11].mxu1 }
0x1431   :  { %4704 = vtanh.f32 %v1164_v6  ;;  %v1165_v10 = vmul.f32 0.5, %v1164_v6 }
0x1433   :  { %4706 = vtanh.f32 %v1165_v10 }
0x143b   :  { %v4705_v8 = vpop.eup %4704 }
0x143c   :  { %1172 = vrot.lane.b32.xlu0 %v4705_v8, %s4884_s16 }
0x143d   :  { %v4707_v16 = vpop.eup %4706 }
0x143e   :  { %v1167_v2 = vmul.f32 0.5, %v4707_v16 }
0x1440   :  { %v1168_v9 = vadd.f32 0.5, %v1167_v2 }
0x1442   :  { %v1170_v13 = vmul.f32 0.0, %v1168_v9 }
0x14ae   :  { %v1173_v11 = vpop.permute.xlu0 %1172 }
0x14af   :  { %v1175_v12 = vmul.f32 %v1173_v11, %v1168_v9 }
0x14b1   :  { %1177 = vrot.lane.b32.xlu1 %v1175_v12, %s4885_s17 }
0x1523   :  { %v1178_v15 = vpop.permute.xlu1 %1177 }
0x1524   :  { %v1180_v17 = vadd.f32 %v1178_v15, %v1170_v13 }
0x1526   :  { %4708 = vtanh.f32 %v1180_v17 }
0x1527   :  { %4710 = vtanh.f32 %v943_v59 }
0x1528   :  { %4712 = vtanh.f32 %v944_v19 }
0x1530   :  { %v4709_v14 = vpop.eup %4708 }
0x1531   :  { %1183 = vrot.lane.b32.xlu0 %v4709_v14, %s4884_s16  ;;  %v4711_v18 = vpop.eup %4710  ;;  %v1071_v14 = vadd.f32 %v5111_v34, %v5154_v61 }
0x1532   :  { %v4713_v62 = vpop.eup %4712 }
0x1533   :  { %v946_v20 = vmul.f32 0.5, %v4713_v62 }
0x1535   :  { %951 = vrot.lane.b32.xlu0 %v4711_v18, %s4884_s16  ;;  %v947_v23 = vadd.f32 0.5, %v946_v20 }
0x1537   :  { %v949_v28 = vmul.f32 %v947_v23, %v5121_v46 }
0x15a3   :  { %v1184_v21 = vpop.permute.xlu0 %1183 }
0x15a4   :  { %v1186_v22 = vmul.f32 %v1184_v21, %v1168_v9 }
0x15a6   :  { %1188 = vrot.lane.b32.xlu1 %v1186_v22, %s4885_s17 }
0x15a7   :  { %v952_v24 = vpop.permute.xlu0 %951 }
0x15a8   :  { %v954_v26 = vmul.f32 %v952_v24, %v947_v23 }
0x15aa   :  { %956 = vrot.lane.b32.xlu0 %v954_v26, %s4885_s17 }
0x1618   :  { %v5163_v27 = vpop.permute.xlu1 %1188 }
0x1619   :  { %4146 = vmatmul.mubr.msk.f32.vlgmr.msra.gmra.mrb[12].mxu1 %vm54_vm1, %v5163_v27 }
0x161a   :  { %4514 = vmatpush3.bf16.msra.mxu1 %v5125_v50  ;;  %4167 = vmatprep.mubr.msk.f32.mxu1 %vm4882_vm0, %v4883_v1 }
0x161b   :  { %4515 = vmatprep.subr.bf16.mxu1 %v4881_v0 }
0x161c   :  { %v957_v29 = vpop.permute.xlu0 %956 }
0x161d   :  { %v959_v36 = vadd.f32 %v957_v29, %v949_v28 }
0x161e   :  { %4517 = vmatpush3.bf16.msra.mxu1 %v5129_v53 }
0x161f   :  { %4714 = vtanh.f32 %v959_v36  ;;  %4524 = vmatprep.subr.bf16.mxu1 %v4881_v0 }
0x1629   :  { %v4715_v30 = vpop.eup %4714 }
0x162a   :  { %962 = vrot.lane.b32.xlu0 %v4715_v30, %s4884_s16 }
0x169c   :  { %v963_v31 = vpop.permute.xlu0 %962 }
0x169d   :  { %v965_v32 = vmul.f32 %v963_v31, %v947_v23 }
0x169f   :  { %985 = vrot.lane.b32.xlu0 %v965_v32, %s4885_s17 }
0x16ec   :  { %v1258_v25 = vpop.f32.mrb[12].mxu1 }
0x16ed   :  { %v1262_v39 = vadd.f32 %v1258_v25, %v1061_v4  ;;  %v4147_v3 = vpop.f32.mrb[13].mxu1  ;;  %v1076_v25 = vadd.f32 %v5154_v61, %v5118_v38 }
0x16ef   :  { %4716 = vtanh.f32 %v1262_v39  ;;  %v1263_v42 = vmul.f32 0.5, %v1262_v39 }
0x16f1   :  { %4718 = vtanh.f32 %v1263_v42 }
0x16f9   :  { %v4717_v40 = vpop.eup %4716 }
0x16fa   :  { %1270 = vrot.lane.b32.xlu1 %v4717_v40, %s4884_s16 }
0x16fb   :  { %v4719_v43 = vpop.eup %4718 }
0x16fc   :  { %v1265_v44 = vmul.f32 0.5, %v4719_v43 }
0x16fe   :  { %v1266_v45 = vadd.f32 0.5, %v1265_v44 }
0x1700   :  { %v1268_v47 = vmul.f32 %v1266_v45, %v1180_v17 }
0x1711   :  { %v986_v41 = vpop.permute.xlu0 %985 }
0x1712   :  { %4124 = vmatmul.mubr.msk.f32.gmra.mrb[20].mxu0 %vm54_vm1, %v986_v41 }
0x1713   :  { %4156 = vmatprep.mubr.msk.f32.mxu0 %vm4882_vm0, %v4883_v1 }
0x176c   :  { %v1271_v46 = vpop.permute.xlu1 %1270 }
0x176d   :  { %v1273_v33 = vmul.f32 %v1271_v46, %v1266_v45 }
0x176f   :  { %1275 = vrot.lane.b32.xlu1 %v1273_v33, %s4885_s17 }
0x17e1   :  { %v1276_v48 = vpop.permute.xlu1 %1275 }
0x17e2   :  { %v1278_v49 = vadd.f32 %v1276_v48, %v1268_v47 }
0x17e4   :  { %4720 = vtanh.f32 %v1278_v49 }
0x17e5   :  { %v5183_v51 = vpop.f32.mrb[20].mxu0 }
0x17e6   :  { %v5185_v52 = vpop.f32.mrb[21].mxu0 }
0x17ee   :  { %v4721_v54 = vpop.eup %4720 }
0x17ef   :  { %1281 = vrot.lane.b32.xlu1 %v4721_v54, %s4884_s16 }
0x1861   :  { %v1282_v55 = vpop.permute.xlu1 %1281 }
0x1862   :  { %v1284_v56 = vmul.f32 %v1282_v55, %v1266_v45 }
0x1864   :  { %1286 = vrot.lane.b32.xlu1 %v1284_v56, %s4885_s17 }
0x18d6   :  { %v5189_v57 = vpop.permute.xlu1 %1286 }
0x18d7   :  { %4157 = vmatmul.mubr.msk.f32.vlgmr.msra.gmra.mrb[22].mxu0 %vm54_vm1, %v5189_v57 }
0x18d8   :  { %4520 = vmatpush3.bf16.msra.mxu0 %v5125_v50  ;;  %4178 = vmatprep.mubr.msk.f32.mxu0 %vm4882_vm0, %v4883_v1 }
0x18d9   :  { %4521 = vmatprep.subr.bf16.mxu0 %v4881_v0 }
0x18dc   :  { %4523 = vmatpush3.bf16.msra.mxu0 %v5129_v53 }
0x18dd   :  { %4530 = vmatprep.subr.bf16.mxu0 %v4881_v0 }
0x19aa   :  { %v1356_v59 = vpop.f32.mrb[22].mxu0 }
0x19ab   :  { %v1360_v60 = vadd.f32 %v1356_v59, %v1066_v58  ;;  %v4158_v63 = vpop.f32.mrb[23].mxu0  ;;  %v1081_v58 = vadd.f32 %v5116_v37, %v5154_v61  ;;  %v3748_v37 = vld [vmem:[%s5615_s1 + $0x40] sm:$0xff] }
0x19ad   :  { %4722 = vtanh.f32 %v1360_v60  ;;  %v1361_v6 = vmul.f32 0.5, %v1360_v60 }
0x19af   :  { %4724 = vtanh.f32 %v1361_v6 }
0x19b7   :  { %v4723_v5 = vpop.eup %4722 }
0x19b8   :  { %1368 = vrot.lane.b32.xlu0 %v4723_v5, %s4884_s16 }
0x19b9   :  { %v4725_v7 = vpop.eup %4724 }
0x19ba   :  { %v1363_v8 = vmul.f32 0.5, %v4725_v7 }
0x19bc   :  { %v1364_v10 = vadd.f32 0.5, %v1363_v8 }
0x19be   :  { %v1366_v9 = vmul.f32 %v1364_v10, %v1278_v49 }
0x1a2a   :  { %v1369_v16 = vpop.permute.xlu0 %1368 }
0x1a2b   :  { %v1371_v2 = vmul.f32 %v1369_v16, %v1364_v10 }
0x1a2d   :  { %1373 = vrot.lane.b32.xlu1 %v1371_v2, %s4885_s17 }
0x1a9f   :  { %v1374_v11 = vpop.permute.xlu1 %1373 }
0x1aa0   :  { %v1376_v12 = vadd.f32 %v1374_v11, %v1366_v9  ;;  %v3749_v11 = vld [vmem:[%s5615_s1 + $0x48] sm:$0xff] }
0x1aa2   :  { %4726 = vtanh.f32 %v1376_v12 }
0x1aac   :  { %v4727_v35 = vpop.eup %4726 }
0x1aad   :  { %1379 = vrot.lane.b32.xlu0 %v4727_v35, %s4884_s16 }
0x1b1f   :  { %v1380_v13 = vpop.permute.xlu0 %1379 }
0x1b20   :  { %v1382_v15 = vmul.f32 %v1380_v13, %v1364_v10 }
0x1b22   :  { %1384 = vrot.lane.b32.xlu1 %v1382_v15, %s4885_s17 }
0x1b94   :  { %v5205_v17 = vpop.permute.xlu1 %1384 }
0x1b95   :  { %4168 = vmatmul.mubr.msk.f32.vlgmr.msra.gmra.mrb[14].mxu1 %vm54_vm1, %v5205_v17 }
0x1b96   :  { %4526 = vmatpush3.bf16.msra.mxu1 %v5125_v50  ;;  %4189 = vmatprep.mubr.msk.f32.mxu1 %vm4882_vm0, %v4883_v1 }
0x1b97   :  { %4527 = vmatprep.subr.bf16.mxu1 %v4881_v0 }
0x1b9a   :  { %4529 = vmatpush3.bf16.msra.mxu1 %v5129_v53 }
0x1b9b   :  { %4536 = vmatprep.subr.bf16.mxu1 %v4881_v0 }
0x1c68   :  { %v1454_v18 = vpop.f32.mrb[14].mxu1 }
0x1c69   :  { %v1458_v19 = vadd.f32 %v1454_v18, %v1071_v14  ;;  %v4169_v62 = vpop.f32.mrb[15].mxu1  ;;  %v3750_v14 = vld [vmem:[%s5615_s1 + $0x50] sm:$0xff]  ;;  %v3751_v18 = vld [vmem:[%s5615_s1 + $0x58] sm:$0xff] }
0x1c6b   :  { %4728 = vtanh.f32 %v1458_v19  ;;  %v1459_v21 = vmul.f32 0.5, %v1458_v19  ;;  %v4546_v19 = vpack.c.bf16 %v3751_v18, %v3750_v14 }
0x1c6d   :  { %4730 = vtanh.f32 %v1459_v21 }
0x1c75   :  { %v4729_v20 = vpop.eup %4728 }
0x1c76   :  { %1466 = vrot.lane.b32.xlu0 %v4729_v20, %s4884_s16 }
0x1c77   :  { %v4731_v22 = vpop.eup %4730 }
0x1c78   :  { %v1461_v23 = vmul.f32 0.5, %v4731_v22 }
0x1c7a   :  { %v1462_v24 = vadd.f32 0.5, %v1461_v23 }
0x1c7c   :  { %v1464_v29 = vmul.f32 %v1462_v24, %v1376_v12  ;;  %v4542_v12 = vpack.c.bf16 %v3749_v11, %v3748_v37 }
0x1ce8   :  { %v1467_v26 = vpop.permute.xlu0 %1466 }
0x1ce9   :  { %v1469_v28 = vmul.f32 %v1467_v26, %v1462_v24 }
0x1ceb   :  { %1471 = vrot.lane.b32.xlu1 %v1469_v28, %s4885_s17 }
0x1d5d   :  { %v1472_v36 = vpop.permute.xlu1 %1471 }
0x1d5e   :  { %v1474_v30 = vadd.f32 %v1472_v36, %v1464_v29 }
0x1d60   :  { %4732 = vtanh.f32 %v1474_v30 }
0x1d6a   :  { %v4733_v34 = vpop.eup %4732 }
0x1d6b   :  { %1477 = vrot.lane.b32.xlu0 %v4733_v34, %s4884_s16 }
0x1ddd   :  { %v1478_v31 = vpop.permute.xlu0 %1477 }
0x1dde   :  { %v1480_v32 = vmul.f32 %v1478_v31, %v1462_v24 }
0x1de0   :  { %1482 = vrot.lane.b32.xlu1 %v1480_v32, %s4885_s17 }
0x1e52   :  { %v5221_v4 = vpop.permute.xlu1 %1482 }
0x1e53   :  { %4179 = vmatmul.mubr.msk.f32.vlgmr.msra.gmra.mrb[24].mxu0 %vm54_vm1, %v5221_v4 }
0x1e54   :  { %4532 = vmatpush3.bf16.msra.mxu0 %v5125_v50  ;;  %4200 = vmatprep.mubr.msk.f32.mxu0 %vm4882_vm0, %v4883_v1 }
0x1e55   :  { %4533 = vmatprep.subr.bf16.mxu0 %v4881_v0 }
0x1e58   :  { %4535 = vmatpush3.bf16.msra.mxu0 %v5129_v53 }
0x1e59   :  { %4543 = vmatprep.subr.bf16.mxu0 %v4542_v12 }
0x1f26   :  { %v1552_v39 = vpop.f32.mrb[24].mxu0 }
0x1f27   :  { %v1556_v3 = vadd.f32 %v1552_v39, %v1076_v25  ;;  %v4180_v40 = vpop.f32.mrb[25].mxu0 }
0x1f28   :  { %v1879_v40 = vld [vmem:[#allocation2 + $0x40] sm:$0xff] }
0x1f29   :  { %4734 = vtanh.f32 %v1556_v3  ;;  %v1557_v42 = vmul.f32 0.5, %v1556_v3 }
0x1f2b   :  { %4736 = vtanh.f32 %v1557_v42 }
0x1f33   :  { %v4735_v41 = vpop.eup %4734 }
0x1f34   :  { %1564 = vrot.lane.b32.xlu0 %v4735_v41, %s4884_s16  ;;  %v1880_v41 = vld [vmem:[#allocation2 + $0x48] sm:$0xff] }
0x1f35   :  { %v4737_v43 = vpop.eup %4736  ;;  %v5291_v42 = vpack.c.bf16 %v1880_v41, %v1879_v40 }
0x1f36   :  { %v1559_v44 = vmul.f32 0.5, %v4737_v43  ;;  %v1881_v43 = vld [vmem:[#allocation2 + $0x50] sm:$0xff] }
0x1f38   :  { %v1560_v45 = vadd.f32 0.5, %v1559_v44  ;;  %v1882_v44 = vld [vmem:[#allocation2 + $0x58] sm:$0xff] }
0x1f3a   :  { %v1562_v47 = vmul.f32 %v1560_v45, %v1474_v30 }
0x1fa6   :  { %v1565_v46 = vpop.permute.xlu0 %1564 }
0x1fa7   :  { %v1567_v33 = vmul.f32 %v1565_v46, %v1560_v45 }
0x1fa9   :  { %1569 = vrot.lane.b32.xlu1 %v1567_v33, %s4885_s17 }
0x201b   :  { %v1570_v48 = vpop.permute.xlu1 %1569 }
0x201c   :  { %v1572_v49 = vadd.f32 %v1570_v48, %v1562_v47  ;;  %v1091_v48 = vadd.f32 %v5183_v51, %v5154_v61 }
0x201e   :  { %4738 = vtanh.f32 %v1572_v49 }
0x2028   :  { %v4739_v38 = vpop.eup %4738 }
0x2029   :  { %1575 = vrot.lane.b32.xlu0 %v4739_v38, %s4884_s16 }
0x209b   :  { %v1576_v54 = vpop.permute.xlu0 %1575 }
0x209c   :  { %v1578_v55 = vmul.f32 %v1576_v54, %v1560_v45  ;;  %v5295_v45 = vpack.c.bf16 %v1882_v44, %v1881_v43 }
0x209e   :  { %1580 = vrot.lane.b32.xlu1 %v1578_v55, %s4885_s17  ;;  %v5320_v55 = vld [vmem:[%s5617_s3 + $0x2] ss:$0 sm:$0xff] }
0x2110   :  { %v1581_v56 = vpop.permute.xlu1 %1580 }
0x2111   :  { %4190 = vmatmul.mubr.msk.f32.vlgmr.msra.gmra.mrb[16].mxu1 %vm54_vm1, %v1581_v56 }
0x2112   :  { %4538 = vmatpush3.bf16.msra.mxu1 %v5125_v50  ;;  %4211 = vmatprep.mubr.msk.f32.mxu1 %vm4882_vm0, %v4883_v1 }
0x2113   :  { %4539 = vmatprep.subr.bf16.mxu1 %v4881_v0 }
0x2116   :  { %4541 = vmatpush3.bf16.msra.mxu1 %v5129_v53 }
0x2117   :  { %4550 = vmatprep.subr.bf16.mxu1 %v4881_v0 }
0x21e4   :  { %v1650_v59 = vpop.f32.mrb[16].mxu1 }
0x21e5   :  { %v1654_v60 = vadd.f32 %v1650_v59, %v1081_v58  ;;  %v4191_v63 = vpop.f32.mrb[17].mxu1 }
0x21e7   :  { %4740 = vtanh.f32 %v1654_v60  ;;  %v1655_v50 = vmul.f32 0.5, %v1654_v60 }
0x21e9   :  { %4742 = vtanh.f32 %v1655_v50 }
0x21f1   :  { %v4741_v5 = vpop.eup %4740 }
0x21f2   :  { %1662 = vrot.lane.b32.xlu0 %v4741_v5, %s4884_s16 }
0x21f3   :  { %v4743_v6 = vpop.eup %4742 }
0x21f4   :  { %v1657_v7 = vmul.f32 0.5, %v4743_v6 }
0x21f6   :  { %v1658_v8 = vadd.f32 0.5, %v1657_v7 }
0x21f8   :  { %v1660_v53 = vmul.f32 %v1658_v8, %v1572_v49 }
0x2264   :  { %v1663_v10 = vpop.permute.xlu0 %1662 }
0x2265   :  { %v1665_v16 = vmul.f32 %v1663_v10, %v1658_v8 }
0x2267   :  { %1667 = vrot.lane.b32.xlu1 %v1665_v16, %s4885_s17 }
0x22d9   :  { %v1668_v2 = vpop.permute.xlu1 %1667 }
0x22da   :  { %v1670_v9 = vadd.f32 %v1668_v2, %v1660_v53 }
0x22dc   :  { %4744 = vtanh.f32 %v1670_v9 }
0x22e6   :  { %v4745_v35 = vpop.eup %4744 }
0x22e7   :  { %1673 = vrot.lane.b32.xlu0 %v4745_v35, %s4884_s16 }
0x2359   :  { %v1674_v13 = vpop.permute.xlu0 %1673 }
0x235a   :  { %v1676_v15 = vmul.f32 %v1674_v13, %v1658_v8 }
0x235c   :  { %1678 = vrot.lane.b32.xlu1 %v1676_v15, %s4885_s17 }
0x23ce   :  { %v1679_v62 = vpop.permute.xlu1 %1678 }
0x23cf   :  { %4201 = vmatmul.mubr.msk.f32.vlgmr.msra.gmra.mrb[26].mxu0 %vm54_vm1, %v1679_v62 }
0x23d0   :  { %4545 = vmatpush3.bf16.msra.mxu0 %v4542_v12  ;;  %4222 = vmatprep.mubr.msk.f32.mxu0 %vm54_vm1, %v5163_v27  ;;  %v1086_v27 = vadd.f32 %v5154_v61, %v5185_v52 }
0x23d1   :  { %4547 = vmatprep.subr.bf16.mxu0 %v4546_v19 }
0x23d4   :  { %4549 = vmatpush3.bf16.msra.mxu0 %v4546_v19 }
0x23d5   :  { %4562 = vmatprep.subr.bf16.mxu0 %v4881_v0 }
0x23d7   :  { %4223 = vmatmul.mubr.msk.f32.vlgmr.msra.gmra.mrb[28].mxu0 %vm54_vm1, %v5189_v57 }
0x23d8   :  { %4225 = vmatprep.mubr.msk.f32.mxu0 %vm54_vm1, %v5205_v17  ;;  %4564 = vmatpush3.bf16.msra.mxu0 %v5291_v42 }
0x23d9   :  { %4565 = vmatprep.subr.bf16.mxu0 %v4881_v0 }
0x23db   :  { %4226 = vmatmul.mubr.msk.f32.gmra.mrb[30].mxu0 %vm54_vm1, %v5221_v4 }
0x23dc   :  { %4228 = vmatprep.mubr.msk.f32.mxu0 %vm54_vm1, %v1581_v56  ;;  %4567 = vmatpush3.bf16.msra.mxu0 %v5295_v45 }
0x23dd   :  { %4574 = vmatprep.subr.bf16.mxu0 %v4881_v0 }
0x23df   :  { %4229 = vmatmul.mubr.msk.f32.gmra.mrb[32].mxu0 %vm54_vm1, %v1679_v62 }
0x24a2   :  { %v1748_v20 = vpop.f32.mrb[26].mxu0 }
0x24a3   :  { %v1752_v21 = vadd.f32 %v1748_v20, %v1086_v27  ;;  %v4202_v22 = vpop.f32.mrb[27].mxu0 }
0x24a5   :  { %4746 = vtanh.f32 %v1752_v21  ;;  %v1753_v36 = vmul.f32 0.5, %v1752_v21 }
0x24a7   :  { %4748 = vtanh.f32 %v1753_v36 }
0x24aa   :  { %v5275_v23 = vpop.f32.mrb[28].mxu0 }
0x24ab   :  { %v1962_v57 = vpop.f32.mrb[29].mxu0 }
0x24ac   :  { %v1963_v56 = vadd.f32 %v5320_v55, %v1962_v57  ;;  %v1968_v57 = vadd.f32 %v5275_v23, %v5320_v55 }
0x24ae   :  { %v5277_v24 = vpop.f32.mrb[30].mxu0 }
0x24af   :  { %v4747_v17 = vpop.eup %4746  ;;  %v5279_v26 = vpop.f32.mrb[31].mxu0 }
0x24b0   :  { %1760 = vrot.lane.b32.xlu0 %v4747_v17, %s4884_s16 }
0x24b1   :  { %v4749_v52 = vpop.eup %4748 }
0x24b2   :  { %v5282_v28 = vpop.f32.mrb[32].mxu0  ;;  %v1755_v30 = vmul.f32 0.5, %v4749_v52 }
0x24b3   :  { %v5284_v29 = vpop.f32.mrb[33].mxu0 }
0x24b4   :  { %v1756_v34 = vadd.f32 0.5, %v1755_v30 }
0x24b6   :  { %v1758_v4 = vmul.f32 %v1756_v34, %v1670_v9 }
0x2522   :  { %v1761_v31 = vpop.permute.xlu0 %1760 }
0x2523   :  { %v1763_v32 = vmul.f32 %v1761_v31, %v1756_v34 }
0x2525   :  { %1765 = vrot.lane.b32.xlu1 %v1763_v32, %s4885_s17 }
0x2597   :  { %v1766_v25 = vpop.permute.xlu1 %1765 }
0x2598   :  { %v5287_v39 = vadd.f32 %v1766_v25, %v1758_v4 }
0x259a   :  { %4750 = vtanh.f32 %v5287_v39 }
0x25a4   :  { %v4751_v3 = vpop.eup %4750 }
0x25a5   :  { %1771 = vrot.lane.b32.xlu0 %v4751_v3, %s4884_s16 }
0x2617   :  { %v1772_v46 = vpop.permute.xlu0 %1771 }
0x2618   :  { %v1774_v33 = vmul.f32 %v1772_v46, %v1756_v34 }
0x261a   :  { %1776 = vrot.lane.b32.xlu1 %v1774_v33, %s4885_s17 }
0x268c   :  { %v1777_v47 = vpop.permute.xlu1 %1776 }
0x268d   :  { %4212 = vmatmul.mubr.msk.f32.vlgmr.msra.gmra.mrb[18].mxu1 %vm54_vm1, %v1777_v47  ;;  %4231 = vmatprep.mubr.msk.f32.mxu0 %vm54_vm1, %v1777_v47 }
0x268e   :  { %4552 = vmatpush3.bf16.msra.mxu1 %v5291_v42  ;;  %4242 = vmatprep.mubr.msk.f32.mxu1 %vm4882_vm0, %v4883_v1 }
0x268f   :  { %4553 = vmatprep.subr.bf16.mxu1 %v4881_v0 }
0x2692   :  { %4555 = vmatpush3.bf16.msra.mxu1 %v5295_v45 }
0x2693   :  { %4556 = vmatprep.subr.bf16.mxu1 %v4881_v0 }
0x2695   :  { %4243 = vmatmul.mubr.f32.vlgmr.msra.gmra.mrb[20].mxu1 %v4883_v1 }
0x2696   :  { %4558 = vmatpush3.bf16.msra.mxu1 %v5291_v42  ;;  %4253 = vmatprep.mubr.msk.f32.mxu1 %vm4882_vm0, %v4883_v1 }
0x2697   :  { %4559 = vmatprep.subr.bf16.mxu1 %v4881_v0 }
0x269a   :  { %4561 = vmatpush3.bf16.msra.mxu1 %v5295_v45 }
0x269b   :  { %4568 = vmatprep.subr.bf16.mxu1 %v4881_v0 }
0x2760   :  { %v1846_v49 = vpop.f32.mrb[18].mxu1 }
0x2761   :  { %v1850_v38 = vadd.f32 %v1846_v49, %v1091_v48  ;;  %v4213_v54 = vpop.f32.mrb[19].mxu1  ;;  %v1973_v49 = vadd.f32 %v5320_v55, %v5279_v26 }
0x2763   :  { %v1851_v9 = vmul.f32 0.5, %v1850_v38 }
0x2768   :  { %v2067_v58 = vpop.f32.mrb[20].mxu1 }
0x2769   :  { %v2071_v59 = vadd.f32 %v2067_v58, %v1963_v56  ;;  %v4244_v60 = vpop.f32.mrb[21].mxu1 }
0x276b   :  { %4752 = vtanh.f32 %v2071_v59  ;;  %v2072_v5 = vmul.f32 0.5, %v2071_v59 }
0x276d   :  { %4754 = vtanh.f32 %v2072_v5 }
0x2775   :  { %v4753_v63 = vpop.eup %4752 }
0x2776   :  { %2079 = vrot.lane.b32.xlu0 %v4753_v63, %s4884_s16 }
0x2777   :  { %v4755_v61 = vpop.eup %4754 }
0x2778   :  { %v2074_v51 = vmul.f32 0.5, %v4755_v61 }
0x277a   :  { %v2075_v50 = vadd.f32 0.5, %v2074_v51 }
0x277c   :  { %v2077_v8 = vmul.f32 0.0, %v2075_v50 }
0x27e8   :  { %v2080_v6 = vpop.permute.xlu0 %2079 }
0x27e9   :  { %v2082_v7 = vmul.f32 %v2080_v6, %v2075_v50 }
0x27eb   :  { %2084 = vrot.lane.b32.xlu1 %v2082_v7, %s4885_s17 }
0x285d   :  { %v2085_v10 = vpop.permute.xlu1 %2084 }
0x285e   :  { %v2087_v16 = vadd.f32 %v2085_v10, %v2077_v8 }
0x2860   :  { %4756 = vtanh.f32 %v2087_v16 }
0x2861   :  { %4758 = vtanh.f32 %v1850_v38 }
0x2862   :  { %4760 = vtanh.f32 %v1851_v9 }
0x286a   :  { %v4757_v53 = vpop.eup %4756 }
0x286b   :  { %2090 = vrot.lane.b32.xlu0 %v4757_v53, %s4884_s16  ;;  %v4759_v2 = vpop.eup %4758  ;;  %v1978_v53 = vadd.f32 %v5277_v24, %v5320_v55 }
0x286c   :  { %v4761_v37 = vpop.eup %4760 }
0x286d   :  { %v1853_v11 = vmul.f32 0.5, %v4761_v37 }
0x286f   :  { %1858 = vrot.lane.b32.xlu0 %v4759_v2, %s4884_s16  ;;  %v1854_v13 = vadd.f32 0.5, %v1853_v11 }
0x2871   :  { %v1856_v19 = vmul.f32 %v1854_v13, %v5287_v39 }
0x28dd   :  { %v2091_v12 = vpop.permute.xlu0 %2090 }
0x28de   :  { %v2093_v35 = vmul.f32 %v2091_v12, %v2075_v50 }
0x28e0   :  { %2095 = vrot.lane.b32.xlu1 %v2093_v35, %s4885_s17 }
0x28e1   :  { %v1859_v15 = vpop.permute.xlu0 %1858 }
0x28e2   :  { %v1861_v14 = vmul.f32 %v1859_v15, %v1854_v13 }
0x28e4   :  { %1863 = vrot.lane.b32.xlu0 %v1861_v14, %s4885_s17 }
0x2952   :  { %v5329_v18 = vpop.permute.xlu1 %2095 }
0x2953   :  { %4254 = vmatmul.mubr.msk.f32.vlgmr.msra.gmra.mrb[22].mxu1 %vm54_vm1, %v5329_v18 }
0x2954   :  { %4570 = vmatpush3.bf16.msra.mxu1 %v5291_v42  ;;  %4275 = vmatprep.mubr.msk.f32.mxu1 %vm4882_vm0, %v4883_v1 }
0x2955   :  { %4571 = vmatprep.subr.bf16.mxu1 %v4881_v0 }
0x2956   :  { %v1864_v62 = vpop.permute.xlu0 %1863 }
0x2957   :  { %v1866_v27 = vadd.f32 %v1864_v62, %v1856_v19 }
0x2958   :  { %4573 = vmatpush3.bf16.msra.mxu1 %v5295_v45 }
0x2959   :  { %4762 = vtanh.f32 %v1866_v27  ;;  %4580 = vmatprep.subr.bf16.mxu1 %v4881_v0 }
0x2963   :  { %v4763_v20 = vpop.eup %4762 }
0x2964   :  { %1869 = vrot.lane.b32.xlu0 %v4763_v20, %s4884_s16 }
0x29d6   :  { %v1870_v21 = vpop.permute.xlu0 %1869 }
0x29d7   :  { %v1872_v22 = vmul.f32 %v1870_v21, %v1854_v13 }
0x29d9   :  { %1892 = vrot.lane.b32.xlu0 %v1872_v22, %s4885_s17 }
0x2a26   :  { %v2165_v17 = vpop.f32.mrb[22].mxu1 }
0x2a27   :  { %v2169_v36 = vadd.f32 %v2165_v17, %v1968_v57  ;;  %v4255_v52 = vpop.f32.mrb[23].mxu1  ;;  %v1983_v17 = vadd.f32 %v5320_v55, %v5284_v29 }
0x2a29   :  { %4764 = vtanh.f32 %v2169_v36  ;;  %v2170_v31 = vmul.f32 0.5, %v2169_v36 }
0x2a2b   :  { %4766 = vtanh.f32 %v2170_v31 }
0x2a33   :  { %v4765_v30 = vpop.eup %4764 }
0x2a34   :  { %2177 = vrot.lane.b32.xlu1 %v4765_v30, %s4884_s16 }
0x2a35   :  { %v4767_v32 = vpop.eup %4766 }
0x2a36   :  { %v2172_v4 = vmul.f32 0.5, %v4767_v32 }
0x2a38   :  { %v2173_v25 = vadd.f32 0.5, %v2172_v4 }
0x2a3a   :  { %v2175_v3 = vmul.f32 %v2173_v25, %v2087_v16 }
0x2a4b   :  { %v1893_v34 = vpop.permute.xlu0 %1892 }
0x2a4c   :  { %4232 = vmatmul.mubr.msk.f32.gmra.mrb[34].mxu0 %vm54_vm1, %v1893_v34 }
0x2a4d   :  { %4264 = vmatprep.mubr.msk.f32.mxu0 %vm4882_vm0, %v4883_v1 }
0x2aa6   :  { %v2178_v39 = vpop.permute.xlu1 %2177 }
0x2aa7   :  { %v2180_v23 = vmul.f32 %v2178_v39, %v2173_v25 }
0x2aa9   :  { %2182 = vrot.lane.b32.xlu1 %v2180_v23, %s4885_s17 }
0x2b1b   :  { %v2183_v40 = vpop.permute.xlu1 %2182 }
0x2b1c   :  { %v2185_v41 = vadd.f32 %v2183_v40, %v2175_v3 }
0x2b1e   :  { %4768 = vtanh.f32 %v2185_v41 }
0x2b1f   :  { %v5349_v43 = vpop.f32.mrb[34].mxu0 }
0x2b20   :  { %v5351_v44 = vpop.f32.mrb[35].mxu0 }
0x2b28   :  { %v4769_v46 = vpop.eup %4768 }
0x2b29   :  { %2188 = vrot.lane.b32.xlu1 %v4769_v46, %s4884_s16 }
0x2b9b   :  { %v2189_v33 = vpop.permute.xlu1 %2188 }
0x2b9c   :  { %v2191_v47 = vmul.f32 %v2189_v33, %v2173_v25 }
0x2b9e   :  { %2193 = vrot.lane.b32.xlu1 %v2191_v47, %s4885_s17 }
0x2c10   :  { %v5355_v48 = vpop.permute.xlu1 %2193 }
0x2c11   :  { %4265 = vmatmul.mubr.msk.f32.vlgmr.msra.gmra.mrb[36].mxu0 %vm54_vm1, %v5355_v48 }
0x2c12   :  { %4576 = vmatpush3.bf16.msra.mxu0 %v5291_v42  ;;  %4286 = vmatprep.mubr.msk.f32.mxu0 %vm4882_vm0, %v4883_v1 }
0x2c13   :  { %4577 = vmatprep.subr.bf16.mxu0 %v4881_v0 }
0x2c16   :  { %4579 = vmatpush3.bf16.msra.mxu0 %v5295_v45 }
0x2c17   :  { %4586 = vmatprep.subr.bf16.mxu0 %v4881_v0 }
0x2ce4   :  { %v2263_v38 = vpop.f32.mrb[36].mxu0 }
0x2ce5   :  { %v2267_v54 = vadd.f32 %v2263_v38, %v1973_v49  ;;  %v4266_v56 = vpop.f32.mrb[37].mxu0  ;;  %v1988_v49 = vadd.f32 %v5282_v28, %v5320_v55  ;;  %v3769_v28 = vld [vmem:[%s5615_s1 + $0x60] sm:$0xff] }
0x2ce7   :  { %4770 = vtanh.f32 %v2267_v54  ;;  %v2268_v59 = vmul.f32 0.5, %v2267_v54 }
0x2ce9   :  { %4772 = vtanh.f32 %v2268_v59 }
0x2cf1   :  { %v4771_v58 = vpop.eup %4770 }
0x2cf2   :  { %2275 = vrot.lane.b32.xlu0 %v4771_v58, %s4884_s16 }
0x2cf3   :  { %v4773_v60 = vpop.eup %4772 }
0x2cf4   :  { %v2270_v63 = vmul.f32 0.5, %v4773_v60 }
0x2cf6   :  { %v2271_v5 = vadd.f32 0.5, %v2270_v63 }
0x2cf8   :  { %v2273_v50 = vmul.f32 %v2271_v5, %v2185_v41 }
0x2d64   :  { %v2276_v61 = vpop.permute.xlu0 %2275 }
0x2d65   :  { %v2278_v51 = vmul.f32 %v2276_v61, %v2271_v5 }
0x2d67   :  { %2280 = vrot.lane.b32.xlu1 %v2278_v51, %s4885_s17 }
0x2dd9   :  { %v2281_v6 = vpop.permute.xlu1 %2280 }
0x2dda   :  { %v2283_v7 = vadd.f32 %v2281_v6, %v2273_v50  ;;  %v3770_v6 = vld [vmem:[%s5615_s1 + $0x68] sm:$0xff] }
0x2ddc   :  { %4774 = vtanh.f32 %v2283_v7 }
0x2de6   :  { %v4775_v26 = vpop.eup %4774 }
0x2de7   :  { %2286 = vrot.lane.b32.xlu0 %v4775_v26, %s4884_s16 }
0x2e59   :  { %v2287_v8 = vpop.permute.xlu0 %2286 }
0x2e5a   :  { %v2289_v10 = vmul.f32 %v2287_v8, %v2271_v5 }
0x2e5c   :  { %2291 = vrot.lane.b32.xlu1 %v2289_v10, %s4885_s17 }
0x2ece   :  { %v5371_v16 = vpop.permute.xlu1 %2291 }
0x2ecf   :  { %4276 = vmatmul.mubr.msk.f32.vlgmr.msra.gmra.mrb[24].mxu1 %vm54_vm1, %v5371_v16 }
0x2ed0   :  { %4582 = vmatpush3.bf16.msra.mxu1 %v5291_v42  ;;  %4297 = vmatprep.mubr.msk.f32.mxu1 %vm4882_vm0, %v4883_v1 }
0x2ed1   :  { %4583 = vmatprep.subr.bf16.mxu1 %v4881_v0 }
0x2ed4   :  { %4585 = vmatpush3.bf16.msra.mxu1 %v5295_v45 }
0x2ed5   :  { %4592 = vmatprep.subr.bf16.mxu1 %v4881_v0 }
0x2fa2   :  { %v2361_v2 = vpop.f32.mrb[24].mxu1 }
0x2fa3   :  { %v2365_v9 = vadd.f32 %v2361_v2, %v1978_v53  ;;  %v4277_v37 = vpop.f32.mrb[25].mxu1  ;;  %v3771_v53 = vld [vmem:[%s5615_s1 + $0x70] sm:$0xff]  ;;  %v3772_v2 = vld [vmem:[%s5615_s1 + $0x78] sm:$0xff] }
0x2fa5   :  { %4776 = vtanh.f32 %v2365_v9  ;;  %v2366_v12 = vmul.f32 0.5, %v2365_v9  ;;  %v4602_v9 = vpack.c.bf16 %v3772_v2, %v3771_v53 }
0x2fa7   :  { %4778 = vtanh.f32 %v2366_v12 }
0x2faf   :  { %v4777_v11 = vpop.eup %4776 }
0x2fb0   :  { %2373 = vrot.lane.b32.xlu0 %v4777_v11, %s4884_s16 }
0x2fb1   :  { %v4779_v35 = vpop.eup %4778 }
0x2fb2   :  { %v2368_v13 = vmul.f32 0.5, %v4779_v35 }
0x2fb4   :  { %v2369_v15 = vadd.f32 0.5, %v2368_v13 }
0x2fb6   :  { %v2371_v62 = vmul.f32 %v2369_v15, %v2283_v7  ;;  %v4598_v7 = vpack.c.bf16 %v3770_v6, %v3769_v28 }
0x3022   :  { %v2374_v14 = vpop.permute.xlu0 %2373 }
0x3023   :  { %v2376_v19 = vmul.f32 %v2374_v14, %v2369_v15 }
0x3025   :  { %2378 = vrot.lane.b32.xlu1 %v2376_v19, %s4885_s17 }
0x3097   :  { %v2379_v27 = vpop.permute.xlu1 %2378 }
0x3098   :  { %v2381_v20 = vadd.f32 %v2379_v27, %v2371_v62 }
0x309a   :  { %4780 = vtanh.f32 %v2381_v20 }
0x30a4   :  { %v4781_v24 = vpop.eup %4780 }
0x30a5   :  { %2384 = vrot.lane.b32.xlu0 %v4781_v24, %s4884_s16 }
0x3117   :  { %v2385_v21 = vpop.permute.xlu0 %2384 }
0x3118   :  { %v2387_v22 = vmul.f32 %v2385_v21, %v2369_v15 }
0x311a   :  { %2389 = vrot.lane.b32.xlu1 %v2387_v22, %s4885_s17 }
0x318c   :  { %v5387_v57 = vpop.permute.xlu1 %2389 }
0x318d   :  { %4287 = vmatmul.mubr.msk.f32.vlgmr.msra.gmra.mrb[38].mxu0 %vm54_vm1, %v5387_v57 }
0x318e   :  { %4588 = vmatpush3.bf16.msra.mxu0 %v5291_v42  ;;  %4308 = vmatprep.mubr.msk.f32.mxu0 %vm4882_vm0, %v4883_v1 }
0x318f   :  { %4589 = vmatprep.subr.bf16.mxu0 %v4881_v0 }
0x3192   :  { %4591 = vmatpush3.bf16.msra.mxu0 %v5295_v45 }
0x3193   :  { %4599 = vmatprep.subr.bf16.mxu0 %v4598_v7 }
0x3260   :  { %v2459_v36 = vpop.f32.mrb[38].mxu0 }
0x3261   :  { %v2463_v52 = vadd.f32 %v2459_v36, %v1983_v17  ;;  %v4288_v30 = vpop.f32.mrb[39].mxu0 }
0x3262   :  { %v2786_v30 = vld [vmem:[#allocation2 + $0x60] sm:$0xff] }
0x3263   :  { %4782 = vtanh.f32 %v2463_v52  ;;  %v2464_v31 = vmul.f32 0.5, %v2463_v52 }
0x3265   :  { %4784 = vtanh.f32 %v2464_v31 }
0x326d   :  { %v4783_v34 = vpop.eup %4782 }
0x326e   :  { %2471 = vrot.lane.b32.xlu0 %v4783_v34, %s4884_s16  ;;  %v2787_v34 = vld [vmem:[#allocation2 + $0x68] sm:$0xff] }
0x326f   :  { %v4785_v32 = vpop.eup %4784  ;;  %v5457_v31 = vpack.c.bf16 %v2787_v34, %v2786_v30 }
0x3270   :  { %v2466_v4 = vmul.f32 0.5, %v4785_v32  ;;  %v2788_v32 = vld [vmem:[#allocation2 + $0x70] sm:$0xff] }
0x3272   :  { %v2467_v25 = vadd.f32 0.5, %v2466_v4  ;;  %v2789_v4 = vld [vmem:[#allocation2 + $0x78] sm:$0xff] }
0x3274   :  { %v2469_v3 = vmul.f32 %v2467_v25, %v2381_v20 }
0x32e0   :  { %v2472_v39 = vpop.permute.xlu0 %2471 }
0x32e1   :  { %v2474_v23 = vmul.f32 %v2472_v39, %v2467_v25 }
0x32e3   :  { %2476 = vrot.lane.b32.xlu1 %v2474_v23, %s4885_s17 }
0x3355   :  { %v2477_v40 = vpop.permute.xlu1 %2476 }
0x3356   :  { %v2479_v41 = vadd.f32 %v2477_v40, %v2469_v3  ;;  %v1998_v40 = vadd.f32 %v5349_v43, %v5320_v55 }
0x3358   :  { %4786 = vtanh.f32 %v2479_v41 }
0x3362   :  { %v4787_v29 = vpop.eup %4786 }
0x3363   :  { %2482 = vrot.lane.b32.xlu0 %v4787_v29, %s4884_s16 }
0x33d5   :  { %v2483_v46 = vpop.permute.xlu0 %2482 }
0x33d6   :  { %v2485_v33 = vmul.f32 %v2483_v46, %v2467_v25  ;;  %v5461_v25 = vpack.c.bf16 %v2789_v4, %v2788_v32 }
0x33d8   :  { %2487 = vrot.lane.b32.xlu1 %v2485_v33, %s4885_s17  ;;  %v5486_v33 = vld [vmem:[%s5617_s3 + $0x3] ss:$0 sm:$0xff] }
0x344a   :  { %v2488_v47 = vpop.permute.xlu1 %2487 }
0x344b   :  { %4298 = vmatmul.mubr.msk.f32.vlgmr.msra.gmra.mrb[26].mxu1 %vm54_vm1, %v2488_v47 }
0x344c   :  { %4594 = vmatpush3.bf16.msra.mxu1 %v5291_v42  ;;  %4319 = vmatprep.mubr.msk.f32.mxu1 %vm4882_vm0, %v4883_v1 }
0x344d   :  { %4595 = vmatprep.subr.bf16.mxu1 %v4881_v0 }
0x3450   :  { %4597 = vmatpush3.bf16.msra.mxu1 %v5295_v45 }
0x3451   :  { %4606 = vmatprep.subr.bf16.mxu1 %v4881_v0 }
0x351e   :  { %v2557_v38 = vpop.f32.mrb[26].mxu1 }
0x351f   :  { %v2561_v54 = vadd.f32 %v2557_v38, %v1988_v49  ;;  %v4299_v56 = vpop.f32.mrb[27].mxu1 }
0x3521   :  { %4788 = vtanh.f32 %v2561_v54  ;;  %v2562_v42 = vmul.f32 0.5, %v2561_v54 }
0x3523   :  { %4790 = vtanh.f32 %v2562_v42 }
0x352b   :  { %v4789_v58 = vpop.eup %4788 }
0x352c   :  { %2569 = vrot.lane.b32.xlu0 %v4789_v58, %s4884_s16 }
0x352d   :  { %v4791_v59 = vpop.eup %4790 }
0x352e   :  { %v2564_v60 = vmul.f32 0.5, %v4791_v59 }
0x3530   :  { %v2565_v63 = vadd.f32 0.5, %v2564_v60 }
0x3532   :  { %v2567_v45 = vmul.f32 %v2565_v63, %v2479_v41 }
0x359e   :  { %v2570_v5 = vpop.permute.xlu0 %2569 }
0x359f   :  { %v2572_v61 = vmul.f32 %v2570_v5, %v2565_v63 }
0x35a1   :  { %2574 = vrot.lane.b32.xlu1 %v2572_v61, %s4885_s17 }
0x3613   :  { %v2575_v51 = vpop.permute.xlu1 %2574 }
0x3614   :  { %v2577_v50 = vadd.f32 %v2575_v51, %v2567_v45 }
0x3616   :  { %4792 = vtanh.f32 %v2577_v50 }
0x3620   :  { %v4793_v26 = vpop.eup %4792 }
0x3621   :  { %2580 = vrot.lane.b32.xlu0 %v4793_v26, %s4884_s16 }
0x3693   :  { %v2581_v8 = vpop.permute.xlu0 %2580 }
0x3694   :  { %v2583_v10 = vmul.f32 %v2581_v8, %v2565_v63 }
0x3696   :  { %2585 = vrot.lane.b32.xlu1 %v2583_v10, %s4885_s17 }
0x3708   :  { %v2586_v37 = vpop.permute.xlu1 %2585 }
0x3709   :  { %4309 = vmatmul.mubr.msk.f32.vlgmr.msra.gmra.mrb[40].mxu0 %vm54_vm1, %v2586_v37 }
0x370a   :  { %4601 = vmatpush3.bf16.msra.mxu0 %v4598_v7  ;;  %4330 = vmatprep.mubr.msk.f32.mxu0 %vm54_vm1, %v5329_v18  ;;  %v1993_v18 = vadd.f32 %v5320_v55, %v5351_v44 }
0x370b   :  { %4603 = vmatprep.subr.bf16.mxu0 %v4602_v9 }
0x370e   :  { %4605 = vmatpush3.bf16.msra.mxu0 %v4602_v9 }
0x370f   :  { %4618 = vmatprep.subr.bf16.mxu0 %v4881_v0 }
0x3711   :  { %4331 = vmatmul.mubr.msk.f32.vlgmr.msra.gmra.mrb[42].mxu0 %vm54_vm1, %v5355_v48 }
0x3712   :  { %4333 = vmatprep.mubr.msk.f32.mxu0 %vm54_vm1, %v5371_v16  ;;  %4620 = vmatpush3.bf16.msra.mxu0 %v5457_v31 }
0x3713   :  { %4621 = vmatprep.subr.bf16.mxu0 %v4881_v0 }
0x3715   :  { %4334 = vmatmul.mubr.msk.f32.gmra.mrb[44].mxu0 %vm54_vm1, %v5387_v57 }
0x3716   :  { %4336 = vmatprep.mubr.msk.f32.mxu0 %vm54_vm1, %v2488_v47  ;;  %4623 = vmatpush3.bf16.msra.mxu0 %v5461_v25 }
0x3717   :  { %4630 = vmatprep.subr.bf16.mxu0 %v4881_v0 }
0x3719   :  { %4337 = vmatmul.mubr.msk.f32.gmra.mrb[46].mxu0 %vm54_vm1, %v2586_v37 }
0x37dc   :  { %v2655_v11 = vpop.f32.mrb[40].mxu0 }
0x37dd   :  { %v2659_v12 = vadd.f32 %v2655_v11, %v1993_v18  ;;  %v4310_v35 = vpop.f32.mrb[41].mxu0 }
0x37df   :  { %4794 = vtanh.f32 %v2659_v12  ;;  %v2660_v27 = vmul.f32 0.5, %v2659_v12 }
0x37e1   :  { %4796 = vtanh.f32 %v2660_v27 }
0x37e4   :  { %v5441_v13 = vpop.f32.mrb[42].mxu0 }
0x37e5   :  { %v2869_v48 = vpop.f32.mrb[43].mxu0 }
0x37e6   :  { %v2870_v47 = vadd.f32 %v5486_v33, %v2869_v48  ;;  %v2875_v48 = vadd.f32 %v5441_v13, %v5486_v33 }
0x37e8   :  { %v5443_v15 = vpop.f32.mrb[44].mxu0 }
0x37e9   :  { %v4795_v16 = vpop.eup %4794  ;;  %v5445_v14 = vpop.f32.mrb[45].mxu0 }
0x37ea   :  { %2667 = vrot.lane.b32.xlu0 %v4795_v16, %s4884_s16 }
0x37eb   :  { %v4797_v44 = vpop.eup %4796 }
0x37ec   :  { %v5448_v19 = vpop.f32.mrb[46].mxu0  ;;  %v2662_v20 = vmul.f32 0.5, %v4797_v44 }
0x37ed   :  { %v5450_v62 = vpop.f32.mrb[47].mxu0 }
0x37ee   :  { %v2663_v24 = vadd.f32 0.5, %v2662_v20 }
0x37f0   :  { %v2665_v57 = vmul.f32 %v2663_v24, %v2577_v50 }
0x385c   :  { %v2668_v21 = vpop.permute.xlu0 %2667 }
0x385d   :  { %v2670_v22 = vmul.f32 %v2668_v21, %v2663_v24 }
0x385f   :  { %2672 = vrot.lane.b32.xlu1 %v2670_v22, %s4885_s17 }
0x38d1   :  { %v2673_v17 = vpop.permute.xlu1 %2672 }
0x38d2   :  { %v5453_v36 = vadd.f32 %v2673_v17, %v2665_v57 }
0x38d4   :  { %4798 = vtanh.f32 %v5453_v36 }
0x38de   :  { %v4799_v52 = vpop.eup %4798 }
0x38df   :  { %2678 = vrot.lane.b32.xlu0 %v4799_v52, %s4884_s16 }
0x3951   :  { %v2679_v39 = vpop.permute.xlu0 %2678 }
0x3952   :  { %v2681_v23 = vmul.f32 %v2679_v39, %v2663_v24 }
0x3954   :  { %2683 = vrot.lane.b32.xlu1 %v2681_v23, %s4885_s17 }
0x39c6   :  { %v2684_v3 = vpop.permute.xlu1 %2683 }
0x39c7   :  { %4320 = vmatmul.mubr.msk.f32.vlgmr.msra.gmra.mrb[28].mxu1 %vm54_vm1, %v2684_v3  ;;  %4339 = vmatprep.mubr.msk.f32.mxu0 %vm54_vm1, %v2684_v3 }
0x39c8   :  { %4608 = vmatpush3.bf16.msra.mxu1 %v5457_v31  ;;  %4350 = vmatprep.mubr.msk.f32.mxu1 %vm4882_vm0, %v4883_v1 }
0x39c9   :  { %4609 = vmatprep.subr.bf16.mxu1 %v4881_v0 }
0x39cc   :  { %4611 = vmatpush3.bf16.msra.mxu1 %v5461_v25 }
0x39cd   :  { %4612 = vmatprep.subr.bf16.mxu1 %v4881_v0 }
0x39cf   :  { %4351 = vmatmul.mubr.f32.vlgmr.msra.gmra.mrb[30].mxu1 %v4883_v1 }
0x39d0   :  { %4614 = vmatpush3.bf16.msra.mxu1 %v5457_v31  ;;  %4361 = vmatprep.mubr.msk.f32.mxu1 %vm4882_vm0, %v4883_v1 }
0x39d1   :  { %4615 = vmatprep.subr.bf16.mxu1 %v4881_v0 }
0x39d4   :  { %4617 = vmatpush3.bf16.msra.mxu1 %v5461_v25 }
0x39d5   :  { %4624 = vmatprep.subr.bf16.mxu1 %v4881_v0 }
0x3a9a   :  { %v2753_v41 = vpop.f32.mrb[28].mxu1 }
0x3a9b   :  { %v2757_v29 = vadd.f32 %v2753_v41, %v1998_v40  ;;  %v4321_v46 = vpop.f32.mrb[29].mxu1  ;;  %v2880_v41 = vadd.f32 %v5486_v33, %v5445_v14 }
0x3a9d   :  { %v2758_v50 = vmul.f32 0.5, %v2757_v29 }
0x3aa2   :  { %v2974_v49 = vpop.f32.mrb[30].mxu1 }
0x3aa3   :  { %v2978_v38 = vadd.f32 %v2974_v49, %v2870_v47  ;;  %v4352_v54 = vpop.f32.mrb[31].mxu1 }
0x3aa5   :  { %4800 = vtanh.f32 %v2978_v38  ;;  %v2979_v58 = vmul.f32 0.5, %v2978_v38 }
0x3aa7   :  { %4802 = vtanh.f32 %v2979_v58 }
0x3aaf   :  { %v4801_v56 = vpop.eup %4800 }
0x3ab0   :  { %2986 = vrot.lane.b32.xlu0 %v4801_v56, %s4884_s16 }
0x3ab1   :  { %v4803_v55 = vpop.eup %4802 }
0x3ab2   :  { %v2981_v43 = vmul.f32 0.5, %v4803_v55 }
0x3ab4   :  { %v2982_v42 = vadd.f32 0.5, %v2981_v43 }
0x3ab6   :  { %v2984_v63 = vmul.f32 0.0, %v2982_v42 }
0x3b22   :  { %v2987_v59 = vpop.permute.xlu0 %2986 }
0x3b23   :  { %v2989_v60 = vmul.f32 %v2987_v59, %v2982_v42 }
0x3b25   :  { %2991 = vrot.lane.b32.xlu1 %v2989_v60, %s4885_s17 }
0x3b97   :  { %v2992_v5 = vpop.permute.xlu1 %2991 }
0x3b98   :  { %v2994_v61 = vadd.f32 %v2992_v5, %v2984_v63 }
0x3b9a   :  { %4804 = vtanh.f32 %v2994_v61 }
0x3b9b   :  { %4806 = vtanh.f32 %v2757_v29 }
0x3b9c   :  { %4808 = vtanh.f32 %v2758_v50 }
0x3ba4   :  { %v4805_v45 = vpop.eup %4804 }
0x3ba5   :  { %2997 = vrot.lane.b32.xlu0 %v4805_v45, %s4884_s16  ;;  %v4807_v51 = vpop.eup %4806  ;;  %v2885_v45 = vadd.f32 %v5443_v15, %v5486_v33 }
0x3ba6   :  { %v4809_v28 = vpop.eup %4808 }
0x3ba7   :  { %v2760_v6 = vmul.f32 0.5, %v4809_v28 }
0x3ba9   :  { %2765 = vrot.lane.b32.xlu0 %v4807_v51, %s4884_s16  ;;  %v2761_v8 = vadd.f32 0.5, %v2760_v6 }
0x3bab   :  { %v2763_v9 = vmul.f32 %v2761_v8, %v5453_v36 }
0x3c17   :  { %v2998_v7 = vpop.permute.xlu0 %2997 }
0x3c18   :  { %v3000_v26 = vmul.f32 %v2998_v7, %v2982_v42 }
0x3c1a   :  { %3002 = vrot.lane.b32.xlu1 %v3000_v26, %s4885_s17 }
0x3c1b   :  { %v2766_v10 = vpop.permute.xlu0 %2765 }
0x3c1c   :  { %v2768_v53 = vmul.f32 %v2766_v10, %v2761_v8 }
0x3c1e   :  { %2770 = vrot.lane.b32.xlu0 %v2768_v53, %s4885_s17 }
0x3c8c   :  { %v3003_v2 = vpop.permute.xlu1 %3002 }
0x3c8d   :  { %3698 = vst.msk [vmem:[%s5618_s4] sm:$0xff] %vm54_vm1, %v3003_v2  ;;  %4362 = vmatmul.mubr.msk.f32.vlgmr.msra.gmra.mrb[32].mxu1 %vm54_vm1, %v3003_v2 }
0x3c8e   :  { %4626 = vmatpush3.bf16.msra.mxu1 %v5457_v31  ;;  %4383 = vmatprep.mubr.msk.f32.mxu1 %vm4882_vm0, %v4883_v1 }
0x3c8f   :  { %4627 = vmatprep.subr.bf16.mxu1 %v4881_v0 }
0x3c90   :  { %v2771_v37 = vpop.permute.xlu0 %2770 }
0x3c91   :  { %v2773_v18 = vadd.f32 %v2771_v37, %v2763_v9 }
0x3c92   :  { %4629 = vmatpush3.bf16.msra.mxu1 %v5461_v25 }
0x3c93   :  { %4810 = vtanh.f32 %v2773_v18  ;;  %4636 = vmatprep.subr.bf16.mxu1 %v4881_v0 }
0x3c9d   :  { %v4811_v11 = vpop.eup %4810 }
0x3c9e   :  { %2776 = vrot.lane.b32.xlu0 %v4811_v11, %s4884_s16 }
0x3d10   :  { %v2777_v12 = vpop.permute.xlu0 %2776 }
0x3d11   :  { %v2779_v35 = vmul.f32 %v2777_v12, %v2761_v8 }
0x3d13   :  { %2799 = vrot.lane.b32.xlu0 %v2779_v35, %s4885_s17 }
0x3d60   :  { %v3072_v16 = vpop.f32.mrb[32].mxu1 }
0x3d61   :  { %v3076_v27 = vadd.f32 %v3072_v16, %v2875_v48  ;;  %v4363_v44 = vpop.f32.mrb[33].mxu1  ;;  %v2890_v48 = vadd.f32 %v5486_v33, %v5450_v62 }
0x3d63   :  { %4812 = vtanh.f32 %v3076_v27  ;;  %v3077_v21 = vmul.f32 0.5, %v3076_v27 }
0x3d65   :  { %4814 = vtanh.f32 %v3077_v21 }
0x3d6d   :  { %v4813_v20 = vpop.eup %4812 }
0x3d6e   :  { %3084 = vrot.lane.b32.xlu1 %v4813_v20, %s4884_s16 }
0x3d6f   :  { %v4815_v22 = vpop.eup %4814 }
0x3d70   :  { %v3079_v57 = vmul.f32 0.5, %v4815_v22 }
0x3d72   :  { %v3080_v17 = vadd.f32 0.5, %v3079_v57 }
0x3d74   :  { %v3082_v52 = vmul.f32 %v3080_v17, %v2994_v61 }
0x3d85   :  { %v2800_v24 = vpop.permute.xlu0 %2799 }
0x3d86   :  { %4340 = vmatmul.mubr.msk.f32.gmra.mrb[48].mxu0 %vm54_vm1, %v2800_v24 }
0x3d87   :  { %4372 = vmatprep.mubr.msk.f32.mxu0 %vm4882_vm0, %v4883_v1 }
0x3de0   :  { %v3085_v36 = vpop.permute.xlu1 %3084 }
0x3de1   :  { %v3087_v13 = vmul.f32 %v3085_v36, %v3080_v17 }
0x3de3   :  { %3089 = vrot.lane.b32.xlu1 %v3087_v13, %s4885_s17 }
0x3e55   :  { %v3090_v30 = vpop.permute.xlu1 %3089 }
0x3e56   :  { %v3092_v34 = vadd.f32 %v3090_v30, %v3082_v52 }
0x3e58   :  { %4816 = vtanh.f32 %v3092_v34 }
0x3e59   :  { %v5516_v32 = vpop.f32.mrb[48].mxu0 }
0x3e5a   :  { %v5518_v4 = vpop.f32.mrb[49].mxu0 }
0x3e62   :  { %v4817_v39 = vpop.eup %4816 }
0x3e63   :  { %3095 = vrot.lane.b32.xlu1 %v4817_v39, %s4884_s16 }
0x3ed5   :  { %v3096_v23 = vpop.permute.xlu1 %3095 }
0x3ed6   :  { %v3098_v3 = vmul.f32 %v3096_v23, %v3080_v17 }
0x3ed8   :  { %3100 = vrot.lane.b32.xlu1 %v3098_v3, %s4885_s17  ;;  %v2895_v3 = vadd.f32 %v5448_v19, %v5486_v33 }
0x3f4a   :  { %v3101_v40 = vpop.permute.xlu1 %3100 }
0x3f4b   :  { %3699 = vst.msk [vmem:[%s5618_s4 + $0x8] sm:$0xff] %vm54_vm1, %v3101_v40  ;;  %4373 = vmatmul.mubr.msk.f32.vlgmr.msra.gmra.mrb[50].mxu0 %vm54_vm1, %v3101_v40 }
0x3f4c   :  { %4632 = vmatpush3.bf16.msra.mxu0 %v5457_v31  ;;  %4394 = vmatprep.mubr.msk.f32.mxu0 %vm4882_vm0, %v4883_v1 }
0x3f4d   :  { %4633 = vmatprep.subr.bf16.mxu0 %v4881_v0 }
0x3f50   :  { %4635 = vmatpush3.bf16.msra.mxu0 %v5461_v25 }
0x3f51   :  { %4642 = vmatprep.subr.bf16.mxu0 %v4881_v0 }
0x401e   :  { %v3170_v29 = vpop.f32.mrb[50].mxu0 }
0x401f   :  { %v3174_v46 = vadd.f32 %v3170_v29, %v2880_v41  ;;  %v4374_v47 = vpop.f32.mrb[51].mxu0 }
0x4021   :  { %4818 = vtanh.f32 %v3174_v46  ;;  %v3175_v38 = vmul.f32 0.5, %v3174_v46 }
0x4023   :  { %4820 = vtanh.f32 %v3175_v38 }
0x402b   :  { %v4819_v49 = vpop.eup %4818 }
0x402c   :  { %3182 = vrot.lane.b32.xlu0 %v4819_v49, %s4884_s16 }
0x402d   :  { %v4821_v54 = vpop.eup %4820 }
0x402e   :  { %v3177_v56 = vmul.f32 0.5, %v4821_v54 }
0x4030   :  { %v3178_v58 = vadd.f32 0.5, %v3177_v56 }
0x4032   :  { %v3180_v42 = vmul.f32 %v3178_v58, %v3092_v34 }
0x409e   :  { %v3183_v55 = vpop.permute.xlu0 %3182 }
0x409f   :  { %v3185_v43 = vmul.f32 %v3183_v55, %v3178_v58 }
0x40a1   :  { %3187 = vrot.lane.b32.xlu1 %v3185_v43, %s4885_s17 }
0x4113   :  { %v3188_v59 = vpop.permute.xlu1 %3187 }
0x4114   :  { %v3190_v60 = vadd.f32 %v3188_v59, %v3180_v42  ;;  %v2900_v42 = vadd.f32 %v5486_v33, %v5518_v4 }
0x4116   :  { %4822 = vtanh.f32 %v3190_v60 }
0x4120   :  { %v4823_v14 = vpop.eup %4822 }
0x4121   :  { %3193 = vrot.lane.b32.xlu0 %v4823_v14, %s4884_s16 }
0x4193   :  { %v3194_v63 = vpop.permute.xlu0 %3193 }
0x4194   :  { %v3196_v5 = vmul.f32 %v3194_v63, %v3178_v58 }
0x4196   :  { %3198 = vrot.lane.b32.xlu1 %v3196_v5, %s4885_s17 }
0x4208   :  { %v3199_v61 = vpop.permute.xlu1 %3198 }
0x4209   :  { %3700 = vst.msk [vmem:[%s5618_s4 + $0x10] sm:$0xff] %vm54_vm1, %v3199_v61  ;;  %4384 = vmatmul.mubr.msk.f32.vlgmr.msra.gmra.mrb[34].mxu1 %vm54_vm1, %v3199_v61 }
0x420a   :  { %4638 = vmatpush3.bf16.msra.mxu1 %v5457_v31  ;;  %4405 = vmatprep.mubr.msk.f32.mxu1 %vm4882_vm0, %v4883_v1 }
0x420b   :  { %4639 = vmatprep.subr.bf16.mxu1 %v4881_v0 }
0x420e   :  { %4641 = vmatpush3.bf16.msra.mxu1 %v5461_v25 }
0x420f   :  { %4648 = vmatprep.subr.bf16.mxu1 %v4881_v0 }
0x42dc   :  { %v3268_v51 = vpop.f32.mrb[34].mxu1 }
0x42dd   :  { %v3272_v50 = vadd.f32 %v3268_v51, %v2885_v45  ;;  %v4385_v28 = vpop.f32.mrb[35].mxu1 }
0x42df   :  { %4824 = vtanh.f32 %v3272_v50  ;;  %v3273_v7 = vmul.f32 0.5, %v3272_v50 }
0x42e1   :  { %4826 = vtanh.f32 %v3273_v7 }
0x42e9   :  { %v4825_v6 = vpop.eup %4824 }
0x42ea   :  { %3280 = vrot.lane.b32.xlu0 %v4825_v6, %s4884_s16 }
0x42eb   :  { %v4827_v26 = vpop.eup %4826 }
0x42ec   :  { %v3275_v8 = vmul.f32 0.5, %v4827_v26 }
0x42ee   :  { %v3276_v10 = vadd.f32 0.5, %v3275_v8 }
0x42f0   :  { %v3278_v9 = vmul.f32 %v3276_v10, %v3190_v60 }
0x435c   :  { %v3281_v53 = vpop.permute.xlu0 %3280 }
0x435d   :  { %v3283_v2 = vmul.f32 %v3281_v53, %v3276_v10 }
0x435f   :  { %3285 = vrot.lane.b32.xlu1 %v3283_v2, %s4885_s17  ;;  %v2905_v2 = vadd.f32 %v5516_v32, %v5486_v33 }
0x43d1   :  { %v3286_v37 = vpop.permute.xlu1 %3285 }
0x43d2   :  { %v3288_v18 = vadd.f32 %v3286_v37, %v3278_v9 }
0x43d4   :  { %4828 = vtanh.f32 %v3288_v18 }
0x43de   :  { %v4829_v15 = vpop.eup %4828 }
0x43df   :  { %3291 = vrot.lane.b32.xlu0 %v4829_v15, %s4884_s16 }
0x4451   :  { %v3292_v11 = vpop.permute.xlu0 %3291 }
0x4452   :  { %v3294_v12 = vmul.f32 %v3292_v11, %v3276_v10 }
0x4454   :  { %3296 = vrot.lane.b32.xlu1 %v3294_v12, %s4885_s17 }
0x44c6   :  { %v3297_v35 = vpop.permute.xlu1 %3296 }
0x44c7   :  { %3701 = vst.msk [vmem:[%s5618_s4 + $0x18] sm:$0xff] %vm54_vm1, %v3297_v35  ;;  %4395 = vmatmul.mubr.msk.f32.vlgmr.msra.gmra.mrb[52].mxu0 %vm54_vm1, %v3297_v35 }
0x44c8   :  { %4644 = vmatpush3.bf16.msra.mxu0 %v5457_v31  ;;  %4416 = vmatprep.mubr.msk.f32.mxu0 %vm4882_vm0, %v4883_v1 }
0x44c9   :  { %4645 = vmatprep.subr.bf16.mxu0 %v4881_v0 }
0x44cc   :  { %4647 = vmatpush3.bf16.msra.mxu0 %v5461_v25 }
0x459a   :  { %v3366_v16 = vpop.f32.mrb[52].mxu0 }
0x459b   :  { %v3370_v27 = vadd.f32 %v3366_v16, %v2890_v48  ;;  %v4396_v44 = vpop.f32.mrb[53].mxu0 }
0x459d   :  { %4830 = vtanh.f32 %v3370_v27  ;;  %v3371_v24 = vmul.f32 0.5, %v3370_v27 }
0x459f   :  { %4832 = vtanh.f32 %v3371_v24 }
0x45a7   :  { %v4831_v20 = vpop.eup %4830 }
0x45a8   :  { %3378 = vrot.lane.b32.xlu0 %v4831_v20, %s4884_s16 }
0x45a9   :  { %v4833_v21 = vpop.eup %4832 }
0x45aa   :  { %v3373_v22 = vmul.f32 0.5, %v4833_v21 }
0x45ac   :  { %v3374_v57 = vadd.f32 0.5, %v3373_v22 }
0x45ae   :  { %v3376_v13 = vmul.f32 %v3374_v57, %v3288_v18 }
0x461a   :  { %v3379_v17 = vpop.permute.xlu0 %3378 }
0x461b   :  { %v3381_v36 = vmul.f32 %v3379_v17, %v3374_v57 }
0x461d   :  { %3383 = vrot.lane.b32.xlu1 %v3381_v36, %s4885_s17 }
0x468f   :  { %v3384_v52 = vpop.permute.xlu1 %3383 }
0x4690   :  { %v3386_v30 = vadd.f32 %v3384_v52, %v3376_v13 }
0x4692   :  { %4834 = vtanh.f32 %v3386_v30 }
0x469c   :  { %v4835_v62 = vpop.eup %4834 }
0x469d   :  { %3389 = vrot.lane.b32.xlu0 %v4835_v62, %s4884_s16 }
0x470f   :  { %v3390_v34 = vpop.permute.xlu0 %3389 }
0x4710   :  { %v3392_v39 = vmul.f32 %v3390_v34, %v3374_v57 }
0x4712   :  { %3394 = vrot.lane.b32.xlu1 %v3392_v39, %s4885_s17 }
0x4784   :  { %v3395_v23 = vpop.permute.xlu1 %3394 }
0x4785   :  { %3702 = vst.msk [vmem:[%s5618_s4 + $0x20] sm:$0xff] %vm54_vm1, %v3395_v23  ;;  %4406 = vmatmul.mubr.msk.f32.vlgmr.msra.gmra.mrb[36].mxu1 %vm54_vm1, %v3395_v23 }
0x4786   :  { %4650 = vmatpush3.bf16.msra.mxu1 %v5457_v31  ;;  %4427 = vmatprep.mubr.msk.f32.mxu1 %vm4882_vm0, %v4883_v1 }
0x4787   :  { %4651 = vmatprep.subr.bf16.mxu1 %v4881_v0 }
0x478a   :  { %4653 = vmatpush3.bf16.msra.mxu1 %v5461_v25 }
0x4858   :  { %v3464_v40 = vpop.f32.mrb[36].mxu1 }
0x4859   :  { %v3468_v41 = vadd.f32 %v3464_v40, %v2895_v3  ;;  %v4407_v29 = vpop.f32.mrb[37].mxu1 }
0x485b   :  { %4836 = vtanh.f32 %v3468_v41  ;;  %v3469_v47 = vmul.f32 0.5, %v3468_v41 }
0x485d   :  { %4838 = vtanh.f32 %v3469_v47 }
0x4865   :  { %v4837_v46 = vpop.eup %4836 }
0x4866   :  { %3476 = vrot.lane.b32.xlu0 %v4837_v46, %s4884_s16 }
0x4867   :  { %v4839_v31 = vpop.eup %4838 }
0x4868   :  { %v3471_v49 = vmul.f32 0.5, %v4839_v31 }
0x486a   :  { %v3472_v38 = vadd.f32 0.5, %v3471_v49 }
0x486c   :  { %v3474_v0 = vmul.f32 %v3472_v38, %v3386_v30 }
0x48d8   :  { %v3477_v1 = vpop.permute.xlu0 %3476 }
0x48d9   :  { %v3479_v54 = vmul.f32 %v3477_v1, %v3472_v38 }
0x48db   :  { %3481 = vrot.lane.b32.xlu1 %v3479_v54, %s4885_s17 }
0x494d   :  { %v3482_v25 = vpop.permute.xlu1 %3481 }
0x494e   :  { %v3484_v56 = vadd.f32 %v3482_v25, %v3474_v0 }
0x4950   :  { %4840 = vtanh.f32 %v3484_v56 }
0x495a   :  { %v4841_v19 = vpop.eup %4840 }
0x495b   :  { %3487 = vrot.lane.b32.xlu0 %v4841_v19, %s4884_s16 }
0x49cd   :  { %v3488_v58 = vpop.permute.xlu0 %3487 }
0x49ce   :  { %v3490_v55 = vmul.f32 %v3488_v58, %v3472_v38 }
0x49d0   :  { %3492 = vrot.lane.b32.xlu1 %v3490_v55, %s4885_s17 }
0x4a42   :  { %v3493_v43 = vpop.permute.xlu1 %3492 }
0x4a43   :  { %3703 = vst.msk [vmem:[%s5618_s4 + $0x28] sm:$0xff] %vm54_vm1, %v3493_v43  ;;  %4417 = vmatmul.mubr.msk.f32.vlgmr.msra.gmra.mrb[54].mxu0 %vm54_vm1, %v3493_v43 }
0x4b16   :  { %v3562_v59 = vpop.f32.mrb[54].mxu0 }
0x4b17   :  { %v3566_v60 = vadd.f32 %v3562_v59, %v2900_v42  ;;  %v4418_v14 = vpop.f32.mrb[55].mxu0 }
0x4b19   :  { %4842 = vtanh.f32 %v3566_v60  ;;  %v3567_v5 = vmul.f32 0.5, %v3566_v60 }
0x4b1b   :  { %4844 = vtanh.f32 %v3567_v5 }
0x4b23   :  { %v4843_v63 = vpop.eup %4842 }
0x4b24   :  { %3574 = vrot.lane.b32.xlu0 %v4843_v63, %s4884_s16 }
0x4b25   :  { %v4845_v61 = vpop.eup %4844 }
0x4b26   :  { %v3569_v45 = vmul.f32 0.5, %v4845_v61 }
0x4b28   :  { %v3570_v51 = vadd.f32 0.5, %v3569_v45 }
0x4b2a   :  { %v3572_v6 = vmul.f32 %v3570_v51, %v3484_v56 }
0x4b96   :  { %v3575_v50 = vpop.permute.xlu0 %3574 }
0x4b97   :  { %v3577_v28 = vmul.f32 %v3575_v50, %v3570_v51 }
0x4b99   :  { %3579 = vrot.lane.b32.xlu1 %v3577_v28, %s4885_s17 }
0x4c0b   :  { %v3580_v7 = vpop.permute.xlu1 %3579 }
0x4c0c   :  { %v3582_v26 = vadd.f32 %v3580_v7, %v3572_v6 }
0x4c0e   :  { %4846 = vtanh.f32 %v3582_v26 }
0x4c18   :  { %v4847_v4 = vpop.eup %4846 }
0x4c19   :  { %3585 = vrot.lane.b32.xlu0 %v4847_v4, %s4884_s16 }
0x4c8b   :  { %v3586_v8 = vpop.permute.xlu0 %3585 }
0x4c8c   :  { %v3588_v10 = vmul.f32 %v3586_v8, %v3570_v51 }
0x4c8e   :  { %3590 = vrot.lane.b32.xlu1 %v3588_v10, %s4885_s17 }
0x4d00   :  { %v3591_v53 = vpop.permute.xlu1 %3590 }
0x4d01   :  { %3704 = vst.msk [vmem:[%s5618_s4 + $0x30] sm:$0xff] %vm54_vm1, %v3591_v53  ;;  %4428 = vmatmul.mubr.msk.f32.vlgmr.msra.gmra.mrb[38].mxu1 %vm54_vm1, %v3591_v53 }
0x4dd4   :  { %v3660_v9 = vpop.f32.mrb[38].mxu1 }
0x4dd5   :  { %v3664_v37 = vadd.f32 %v3660_v9, %v2905_v2  ;;  %v4429_v18 = vpop.f32.mrb[39].mxu1 }
0x4dd7   :  { %4848 = vtanh.f32 %v3664_v37  ;;  %v3665_v11 = vmul.f32 0.5, %v3664_v37 }
0x4dd9   :  { %4850 = vtanh.f32 %v3665_v11 }
0x4de1   :  { %v4849_v15 = vpop.eup %4848 }
0x4de2   :  { %3672 = vrot.lane.b32.xlu0 %v4849_v15, %s4884_s16 }
0x4de3   :  { %v4851_v12 = vpop.eup %4850 }
0x4de4   :  { %v3667_v35 = vmul.f32 0.5, %v4851_v12 }
0x4de6   :  { %v3668_v48 = vadd.f32 0.5, %v3667_v35 }
0x4de8   :  { %v3670_v44 = vmul.f32 %v3668_v48, %v3582_v26 }
0x4e54   :  { %v3673_v16 = vpop.permute.xlu0 %3672 }
0x4e55   :  { %v3675_v27 = vmul.f32 %v3673_v16, %v3668_v48 }
0x4e57   :  { %3677 = vrot.lane.b32.xlu1 %v3675_v27, %s4885_s17 }
0x4ec9   :  { %v3678_v20 = vpop.permute.xlu1 %3677 }
0x4eca   :  { %v3680_v24 = vadd.f32 %v3678_v20, %v3670_v44 }
0x4ecc   :  { %4852 = vtanh.f32 %v3680_v24 }
0x4ed6   :  { %v4853_v33 = vpop.eup %4852 }
0x4ed7   :  { %3683 = vrot.lane.b32.xlu0 %v4853_v33, %s4884_s16 }
0x4f49   :  { %v3684_v32 = vpop.permute.xlu0 %3683 }
0x4f4a   :  { %v3686_v21 = vmul.f32 %v3684_v32, %v3668_v48 }
0x4f4c   :  { %3688 = vrot.lane.b32.xlu1 %v3686_v21, %s4885_s17 }
0x4fbe   :  { %v3689_v22 = vpop.permute.xlu1 %3688 }
0x4fbf   :  { %3705 = vst.msk [vmem:[%s5618_s4 + $0x38] sm:$0xff] %vm54_vm1, %v3689_v22 }
0x4fc0   :  { %3710 = vsyncpa [#allocation3], 1 }

</bundles_post_ra>
